<compile_context>
chip_gen: v6e
topology: v6e:2x2x1
jax: 0.10.0
libtpu: 0.0.40
codegen_flags: <defaults>
</compile_context>

<pallas_src>
import functools
import math

import numpy as np
import jax
import jax.numpy as jnp
from jax.experimental import pallas as pl
from jax.experimental.pallas import tpu as pltpu


_BN_SCALE = 1.0 / math.sqrt(1.0 + 1e-5)   # gamma=1, beta=0, mean=0, var=1, eps=1e-5


def _round_up(x, m):
    return (x + m - 1) // m * m


# ----------------------------------------------------------------------------
# Fused per-image kernel: stem conv -> maxpool -> 3 bottlenecks -> avgpool -> FC
# ----------------------------------------------------------------------------

def _proprionet_kernel(patches_ref, wstem_ref, gpool_ref, sconv_ref,
                       b0_w1, b0_w2, b0_w3, b0_wd,
                       b1_w1, b1_w2, b1_w3,
                       b2_w1, b2_w2, b2_w3,
                       fcw_ref, fcb_ref, o_ref):
    bf16 = jnp.bfloat16

    def mm(a, b):
        return jnp.dot(a, b, preferred_element_type=jnp.float32)

    # ---- stem: conv 7x7/s2/p3 (+ folded BN) + ReLU (this image only) -------
    stem = jnp.maximum(mm(patches_ref[...], wstem_ref[...]), 0.0)     # (256, 64) f32
    stem_b = stem.astype(bf16)

    # ---- maxpool 3x3/s2/p1: 9 per-image 0/1 gather matmuls + max -----------
    # stem is post-ReLU (>= 0), so all-zero rows for out-of-range taps never
    # win the max -> exact maxpool.
    x = mm(gpool_ref[0], stem_b)                                      # (64, 64) f32
    for t in range(1, 9):
        x = jnp.maximum(x, mm(gpool_ref[t], stem_b))

    pool_rows = gpool_ref.shape[1]                                    # 64

    # ---- resnet50 layer1: 3 bottleneck blocks, all VMEM-resident -----------
    def bottleneck(xin, w1, w2cat, w3, wd):
        xb = xin.astype(bf16)
        h1 = jnp.maximum(mm(xb, w1[...]), 0.0).astype(bf16)           # (64, 64)
        # 3x3 conv (s1, p1): ONE wide matmul against the concatenated tap
        # weights, then 9 tiny 0/1 shift matmuls (per-image blocks).
        hw = mm(h1, w2cat[...]).astype(bf16)                          # (64, 576)
        acc = mm(sconv_ref[0], hw[:, 0:64])
        for t in range(1, 9):
            acc += mm(sconv_ref[t], hw[:, t * 64:(t + 1) * 64])
        h2 = jnp.maximum(acc, 0.0).astype(bf16)                       # (64, 64)
        h3 = mm(h2, w3[...])                                          # (64, 256)
        ident = mm(xb, wd[...]) if wd is not None else xin
        return jnp.maximum(h3 + ident, 0.0)                           # residual + ReLU

    x = bottleneck(x, b0_w1, b0_w2, b0_w3, b0_wd)
    x = bottleneck(x, b1_w1, b1_w2, b1_w3, None)
    x = bottleneck(x, b2_w1, b2_w2, b2_w3, None)

    # ---- adaptive avgpool(1,1) as an averaging matmul (in-kernel constant),
    #      then Linear + tanh * pi/2 ------------------------------------------
    avg = jnp.full((8, pool_rows), 1.0 / pool_rows, bf16)             # rows identical
    pooled = mm(avg, x.astype(bf16))                                  # (8, 256)
    y = mm(pooled.astype(bf16), fcw_ref[...]) + fcb_ref[...]          # (8, cols)
    o_ref[...] = jnp.tanh(y) * (math.pi / 2.0)


# ----------------------------------------------------------------------------
# Wrapper-side glue (plain JAX): NCHW->NHWC, one im2col for the stem conv.
# ----------------------------------------------------------------------------

def im2col(x, kh, kw, stride, pad):
    """x: NHWC -> patches [N*OH*OW, kh*kw*C] ordered (kh, kw, c)."""
    N, H, W, C = x.shape
    xp = jnp.pad(x, ((0, 0), (pad, pad), (pad, pad), (0, 0)))
    OH = (H + 2 * pad - kh) // stride + 1
    OW = (W + 2 * pad - kw) // stride + 1
    cols = []
    for i in range(kh):
        for j in range(kw):
            cols.append(xp[:, i:i + stride * OH:stride, j:j + stride * OW:stride, :])
    patches = jnp.stack(cols, axis=3)                # [N, OH, OW, kh*kw, C]
    return patches.reshape(N * OH * OW, kh * kw * C)


@functools.partial(jax.jit, static_argnames=("state_dim",))
def proprionet_forward(x_nchw, kp, *, state_dim):
    n = x_nchw.shape[0]
    x = jnp.transpose(x_nchw, (0, 2, 3, 1)).astype(jnp.float32)       # NCHW -> NHWC

    patches = im2col(x, 7, 7, 2, 3)                                   # (n*256, 147)
    kpad = kp["w_stem"].shape[0]
    patches = jnp.pad(patches, ((0, 0), (0, kpad - patches.shape[1])))
    patches = patches.astype(jnp.bfloat16)
    rows_per_img = patches.shape[0] // n                              # oh1*ow1

    cols = kp["fc_w"].shape[1]                                        # padded state_dim

    def const2(shape):
        return pl.BlockSpec(shape, lambda b: (0, 0))

    def const3(shape):
        return pl.BlockSpec(shape, lambda b: (0, 0, 0))

    grid_spec = pltpu.PrefetchScalarGridSpec(
        num_scalar_prefetch=0,
        grid=(n,),
        in_specs=[
            pl.BlockSpec((rows_per_img, kpad), lambda b: (b, 0)),     # per-image patches
            const2(kp["w_stem"].shape),
            const3(kp["gpool"].shape),
            const3(kp["sconv"].shape),
            const2(kp["b0_w1"].shape), const2(kp["b0_w2"].shape),
            const2(kp["b0_w3"].shape), const2(kp["b0_wd"].shape),
            const2(kp["b1_w1"].shape), const2(kp["b1_w2"].shape),
            const2(kp["b1_w3"].shape),
            const2(kp["b2_w1"].shape), const2(kp["b2_w2"].shape),
            const2(kp["b2_w3"].shape),
            const2(kp["fc_w"].shape), const2(kp["fc_b"].shape),
        ],
        out_specs=pl.BlockSpec((8, cols), lambda b: (b, 0)),
    )

    out = pl.pallas_call(
        _proprionet_kernel,
        out_shape=jax.ShapeDtypeStruct((n * 8, cols), jnp.float32),
        grid_spec=grid_spec,
        compiler_params=pltpu.CompilerParams(
            dimension_semantics=("parallel",)),                        # 2 TCs on v7x
    )(patches, kp["w_stem"], kp["gpool"], kp["sconv"],
      kp["b0_w1"], kp["b0_w2"], kp["b0_w3"], kp["b0_wd"],
      kp["b1_w1"], kp["b1_w2"], kp["b1_w3"],
      kp["b2_w1"], kp["b2_w2"], kp["b2_w3"],
      kp["fc_w"], kp["fc_b"])
    return out.reshape(n, 8, cols)[:, 0, :state_dim]


# ----------------------------------------------------------------------------
# One-time parameter / constant preparation (BN fold, bf16 cast, per-image
# 0/1 gather / shift matrices, concatenated 3x3 tap weights).
# ----------------------------------------------------------------------------

def _pool_gather_matrices(ih, iw, oh, ow):
    """Per-image 0/1 matrices G[t] s.t. G[t] @ x gathers tap t of every
    3x3/s2/p1 pooling window (rows for out-of-range taps are all zero)."""
    G = np.zeros((9, oh * ow, ih * iw), np.float32)
    for oi in range(oh):
        for oj in range(ow):
            ro = oi * ow + oj
            for di in range(3):
                for dj in range(3):
                    i, j = 2 * oi - 1 + di, 2 * oj - 1 + dj
                    if 0 <= i < ih and 0 <= j < iw:
                        G[di * 3 + dj, ro, i * iw + j] = 1.0
    return G


def _conv3x3_shift_matrices(h, w):
    """Per-image 0/1 matrices S[t] s.t. S[t] @ x shifts the (h,w)-flattened
    rows by 3x3 tap t with zero padding (stride=1, pad=1)."""
    S = np.zeros((9, h * w, h * w), np.float32)
    for i in range(h):
        for j in range(w):
            ro = i * w + j
            for di in range(3):
                for dj in range(3):
                    ii, jj = i + di - 1, j + dj - 1
                    if 0 <= ii < h and 0 <= jj < w:
                        S[di * 3 + dj, ro, ii * w + jj] = 1.0
    return S


def prepare_params(params, state_dim, in_hw):
    h, w = in_hw
    oh1, ow1 = (h + 6 - 7) // 2 + 1, (w + 6 - 7) // 2 + 1       # after conv1 7x7/s2/p3
    ph, pw = (oh1 + 2 - 3) // 2 + 1, (ow1 + 2 - 3) // 2 + 1     # after maxpool 3x3/s2/p1

    def conv1x1(wt):                                 # torch (cout, cin, 1, 1)
        return (wt[:, :, 0, 0].T * _BN_SCALE).astype(jnp.bfloat16)

    def conv3x3_cat(wt):                             # torch (cout, cin, 3, 3) -> (cin, 9*cout)
        cout, cin = wt.shape[0], wt.shape[1]
        t = jnp.transpose(wt, (2, 3, 1, 0)).reshape(9, cin, cout)   # tap-major (di*3+dj)
        t = jnp.transpose(t, (1, 0, 2)).reshape(cin, 9 * cout)
        return (t * _BN_SCALE).astype(jnp.bfloat16)

    # stem weight -> [kh*kw*cin, cout], BN folded, K zero-padded to a lane multiple.
    ws = jnp.transpose(params["conv1"], (2, 3, 1, 0)).reshape(7 * 7 * 3, 64) * _BN_SCALE
    kpad = _round_up(ws.shape[0], 128)
    ws = jnp.pad(ws, ((0, kpad - ws.shape[0]), (0, 0))).astype(jnp.bfloat16)

    kp = {"w_stem": ws}
    for b, blk in enumerate(params["layer1"]):
        kp[f"b{b}_w1"] = conv1x1(blk["conv1"])
        kp[f"b{b}_w2"] = conv3x3_cat(blk["conv2"])
        kp[f"b{b}_w3"] = conv1x1(blk["conv3"])
        if "downsample" in blk:
            kp[f"b{b}_wd"] = conv1x1(blk["downsample"])

    cols = _round_up(state_dim, 128)
    kp["fc_w"] = (jnp.zeros((256, cols), jnp.float32)
                  .at[:, :state_dim].set(params["fc_w"].T)).astype(jnp.bfloat16)
    kp["fc_b"] = jnp.zeros((1, cols), jnp.float32).at[0, :state_dim].set(params["fc_b"])

    kp["gpool"] = jnp.asarray(_pool_gather_matrices(oh1, ow1, ph, pw)).astype(jnp.bfloat16)
    kp["sconv"] = jnp.asarray(_conv3x3_shift_matrices(ph, pw)).astype(jnp.bfloat16)
    return kp


# ----------------------------------------------------------------------------
# Deterministic parameter initialization (xavier_uniform, like init_weights)
# ----------------------------------------------------------------------------

def _xavier_uniform(key, shape):
    if len(shape) == 4:                       # conv: (Cout, Cin, KH, KW)
        cout, cin, kh, kw = shape
        fan_in, fan_out = cin * kh * kw, cout * kh * kw
    else:                                     # linear: (out, in)
        fan_out, fan_in = shape
    bound = math.sqrt(6.0 / (fan_in + fan_out))
    return jax.random.uniform(key, shape, jnp.float32, -bound, bound)


def init_params(key, state_dim):
    keys = jax.random.split(key, 16)
    ki = 0

    def nxt():
        nonlocal ki
        k = keys[ki]
        ki += 1
        return k

    params = {"conv1": _xavier_uniform(nxt(), (64, 3, 7, 7))}
    layer1 = []
    cin = 64
    for b in range(3):
        blk = {
            "conv1": _xavier_uniform(nxt(), (64, cin, 1, 1)),
            "conv2": _xavier_uniform(nxt(), (64, 64, 3, 3)),
            "conv3": _xavier_uniform(nxt(), (256, 64, 1, 1)),
        }
        if b == 0:
            blk["downsample"] = _xavier_uniform(nxt(), (256, 64, 1, 1))
        layer1.append(blk)
        cin = 256
    params["layer1"] = layer1
    params["fc_w"] = _xavier_uniform(nxt(), (state_dim, 256))
    bound = 1.0 / math.sqrt(256.0)
    params["fc_b"] = jax.random.uniform(nxt(), (state_dim,), jnp.float32, -bound, bound)
    return params


if __name__ == "__main__":
    key = jax.random.PRNGKey(0)
    pkey, xkey = jax.random.split(key)

    state_dim = 7
    batch, in_hw = 2, (32, 32)          # both spatial dims % 4 == 0 (module assert)
    x = jax.random.normal(xkey, (batch, 3, in_hw[0], in_hw[1]), jnp.float32)

    params = init_params(pkey, state_dim)
    kp = prepare_params(params, state_dim, in_hw)

    out = proprionet_forward(x, kp, state_dim=state_dim)
    out = jax.block_until_ready(out)

    assert out.shape == (batch, state_dim), out.shape
    assert bool(jnp.all(jnp.isfinite(out)))
    assert bool(jnp.all(jnp.abs(out) <= math.pi / 2 + 1e-4))
    print("KERNEL_OK")
</pallas_src>

<mosaic_0001>
module attributes {stable_mosaic.version = 11 : i64} {
  func.func @_proprionet_kernel(%arg0: i32, %arg1: memref<256x256xbf16, #tpu.memory_space<vmem>>, %arg2: memref<256x64xbf16, #tpu.memory_space<vmem>>, %arg3: memref<9x64x256xbf16, #tpu.memory_space<vmem>>, %arg4: memref<9x64x64xbf16, #tpu.memory_space<vmem>>, %arg5: memref<64x64xbf16, #tpu.memory_space<vmem>>, %arg6: memref<64x576xbf16, #tpu.memory_space<vmem>>, %arg7: memref<64x256xbf16, #tpu.memory_space<vmem>>, %arg8: memref<64x256xbf16, #tpu.memory_space<vmem>>, %arg9: memref<256x64xbf16, #tpu.memory_space<vmem>>, %arg10: memref<64x576xbf16, #tpu.memory_space<vmem>>, %arg11: memref<64x256xbf16, #tpu.memory_space<vmem>>, %arg12: memref<256x64xbf16, #tpu.memory_space<vmem>>, %arg13: memref<64x576xbf16, #tpu.memory_space<vmem>>, %arg14: memref<64x256xbf16, #tpu.memory_space<vmem>>, %arg15: memref<256x128xbf16, #tpu.memory_space<vmem>>, %arg16: memref<1x128xf32, #tpu.memory_space<vmem>>, %arg17: memref<8x128xf32, #tpu.memory_space<vmem>>) attributes {dimension_semantics = [#tpu.dimension_semantics<parallel>], iteration_bounds = array<i64: 2>, scalar_prefetch = 0 : i64, scratch_operands = 0 : i64, tpu.core_type = #tpu.core_type<tc>, window_params = [{transform_indices = @transform_0, window_bounds = array<i64: 256, 256>}, {pipeline_mode = #tpu.pipeline_mode<synchronous>, transform_indices = @transform_1, window_bounds = array<i64: 256, 64>}, {pipeline_mode = #tpu.pipeline_mode<synchronous>, transform_indices = @transform_2, window_bounds = array<i64: 9, 64, 256>}, {pipeline_mode = #tpu.pipeline_mode<synchronous>, transform_indices = @transform_3, window_bounds = array<i64: 9, 64, 64>}, {pipeline_mode = #tpu.pipeline_mode<synchronous>, transform_indices = @transform_4, window_bounds = array<i64: 64, 64>}, {pipeline_mode = #tpu.pipeline_mode<synchronous>, transform_indices = @transform_5, window_bounds = array<i64: 64, 576>}, {pipeline_mode = #tpu.pipeline_mode<synchronous>, transform_indices = @transform_6, window_bounds = array<i64: 64, 256>}, {pipeline_mode = #tpu.pipeline_mode<synchronous>, transform_indices = @transform_7, window_bounds = array<i64: 64, 256>}, {pipeline_mode = #tpu.pipeline_mode<synchronous>, transform_indices = @transform_8, window_bounds = array<i64: 256, 64>}, {pipeline_mode = #tpu.pipeline_mode<synchronous>, transform_indices = @transform_9, window_bounds = array<i64: 64, 576>}, {pipeline_mode = #tpu.pipeline_mode<synchronous>, transform_indices = @transform_10, window_bounds = array<i64: 64, 256>}, {pipeline_mode = #tpu.pipeline_mode<synchronous>, transform_indices = @transform_11, window_bounds = array<i64: 256, 64>}, {pipeline_mode = #tpu.pipeline_mode<synchronous>, transform_indices = @transform_12, window_bounds = array<i64: 64, 576>}, {pipeline_mode = #tpu.pipeline_mode<synchronous>, transform_indices = @transform_13, window_bounds = array<i64: 64, 256>}, {pipeline_mode = #tpu.pipeline_mode<synchronous>, transform_indices = @transform_14, window_bounds = array<i64: 256, 128>}, {pipeline_mode = #tpu.pipeline_mode<synchronous>, transform_indices = @transform_15, window_bounds = array<i64: 1, 128>}, {transform_indices = @transform_16, window_bounds = array<i64: 8, 128>}]} {
    %c0 = arith.constant 0 : index
    %c0_0 = arith.constant 0 : index
    %0 = vector.load %arg1[%c0, %c0_0] : memref<256x256xbf16, #tpu.memory_space<vmem>>, vector<256x256xbf16>
    %c0_1 = arith.constant 0 : index
    %c0_2 = arith.constant 0 : index
    %1 = vector.load %arg2[%c0_1, %c0_2] : memref<256x64xbf16, #tpu.memory_space<vmem>>, vector<256x64xbf16>
    %cst = arith.constant dense<0.000000e+00> : vector<256x64xf32>
    %2 = tpu.matmul %0, %1, %cst {dimension_numbers = #tpu.dot_dimension_numbers<[1], [0], [0], [1], [0, 0, 1, 1], [], []>} : vector<256x256xbf16>, vector<256x64xbf16>, vector<256x64xf32> -> vector<256x64xf32>
    %cst_3 = arith.constant 0.000000e+00 : f32
    %3 = vector.broadcast %cst_3 : f32 to vector<256x64xf32>
    %4 = arith.maximumf %2, %3 : vector<256x64xf32>
    %5 = arith.truncf %4 : vector<256x64xf32> to vector<256x64xbf16>
    %c0_4 = arith.constant 0 : index
    %c0_5 = arith.constant 0 : index
    %c0_6 = arith.constant 0 : index
    %6 = vector.load %arg3[%c0_4, %c0_5, %c0_6] : memref<9x64x256xbf16, #tpu.memory_space<vmem>>, vector<1x64x256xbf16>
    %7 = vector.shape_cast %6 : vector<1x64x256xbf16> to vector<64x256xbf16>
    %cst_7 = arith.constant dense<0.000000e+00> : vector<64x64xf32>
    %8 = tpu.matmul %7, %5, %cst_7 {dimension_numbers = #tpu.dot_dimension_numbers<[1], [0], [0], [1], [0, 0, 1, 1], [], []>} : vector<64x256xbf16>, vector<256x64xbf16>, vector<64x64xf32> -> vector<64x64xf32>
    %c1 = arith.constant 1 : index
    %c0_8 = arith.constant 0 : index
    %c0_9 = arith.constant 0 : index
    %9 = vector.load %arg3[%c1, %c0_8, %c0_9] : memref<9x64x256xbf16, #tpu.memory_space<vmem>>, vector<1x64x256xbf16>
    %10 = vector.shape_cast %9 : vector<1x64x256xbf16> to vector<64x256xbf16>
    %cst_10 = arith.constant dense<0.000000e+00> : vector<64x64xf32>
    %11 = tpu.matmul %10, %5, %cst_10 {dimension_numbers = #tpu.dot_dimension_numbers<[1], [0], [0], [1], [0, 0, 1, 1], [], []>} : vector<64x256xbf16>, vector<256x64xbf16>, vector<64x64xf32> -> vector<64x64xf32>
    %12 = arith.maximumf %8, %11 : vector<64x64xf32>
    %c2 = arith.constant 2 : index
    %c0_11 = arith.constant 0 : index
    %c0_12 = arith.constant 0 : index
    %13 = vector.load %arg3[%c2, %c0_11, %c0_12] : memref<9x64x256xbf16, #tpu.memory_space<vmem>>, vector<1x64x256xbf16>
    %14 = vector.shape_cast %13 : vector<1x64x256xbf16> to vector<64x256xbf16>
    %cst_13 = arith.constant dense<0.000000e+00> : vector<64x64xf32>
    %15 = tpu.matmul %14, %5, %cst_13 {dimension_numbers = #tpu.dot_dimension_numbers<[1], [0], [0], [1], [0, 0, 1, 1], [], []>} : vector<64x256xbf16>, vector<256x64xbf16>, vector<64x64xf32> -> vector<64x64xf32>
    %16 = arith.maximumf %12, %15 : vector<64x64xf32>
    %c3 = arith.constant 3 : index
    %c0_14 = arith.constant 0 : index
    %c0_15 = arith.constant 0 : index
    %17 = vector.load %arg3[%c3, %c0_14, %c0_15] : memref<9x64x256xbf16, #tpu.memory_space<vmem>>, vector<1x64x256xbf16>
    %18 = vector.shape_cast %17 : vector<1x64x256xbf16> to vector<64x256xbf16>
    %cst_16 = arith.constant dense<0.000000e+00> : vector<64x64xf32>
    %19 = tpu.matmul %18, %5, %cst_16 {dimension_numbers = #tpu.dot_dimension_numbers<[1], [0], [0], [1], [0, 0, 1, 1], [], []>} : vector<64x256xbf16>, vector<256x64xbf16>, vector<64x64xf32> -> vector<64x64xf32>
    %20 = arith.maximumf %16, %19 : vector<64x64xf32>
    %c4 = arith.constant 4 : index
    %c0_17 = arith.constant 0 : index
    %c0_18 = arith.constant 0 : index
    %21 = vector.load %arg3[%c4, %c0_17, %c0_18] : memref<9x64x256xbf16, #tpu.memory_space<vmem>>, vector<1x64x256xbf16>
    %22 = vector.shape_cast %21 : vector<1x64x256xbf16> to vector<64x256xbf16>
    %cst_19 = arith.constant dense<0.000000e+00> : vector<64x64xf32>
    %23 = tpu.matmul %22, %5, %cst_19 {dimension_numbers = #tpu.dot_dimension_numbers<[1], [0], [0], [1], [0, 0, 1, 1], [], []>} : vector<64x256xbf16>, vector<256x64xbf16>, vector<64x64xf32> -> vector<64x64xf32>
    %24 = arith.maximumf %20, %23 : vector<64x64xf32>
    %c5 = arith.constant 5 : index
    %c0_20 = arith.constant 0 : index
    %c0_21 = arith.constant 0 : index
    %25 = vector.load %arg3[%c5, %c0_20, %c0_21] : memref<9x64x256xbf16, #tpu.memory_space<vmem>>, vector<1x64x256xbf16>
    %26 = vector.shape_cast %25 : vector<1x64x256xbf16> to vector<64x256xbf16>
    %cst_22 = arith.constant dense<0.000000e+00> : vector<64x64xf32>
    %27 = tpu.matmul %26, %5, %cst_22 {dimension_numbers = #tpu.dot_dimension_numbers<[1], [0], [0], [1], [0, 0, 1, 1], [], []>} : vector<64x256xbf16>, vector<256x64xbf16>, vector<64x64xf32> -> vector<64x64xf32>
    %28 = arith.maximumf %24, %27 : vector<64x64xf32>
    %c6 = arith.constant 6 : index
    %c0_23 = arith.constant 0 : index
    %c0_24 = arith.constant 0 : index
    %29 = vector.load %arg3[%c6, %c0_23, %c0_24] : memref<9x64x256xbf16, #tpu.memory_space<vmem>>, vector<1x64x256xbf16>
    %30 = vector.shape_cast %29 : vector<1x64x256xbf16> to vector<64x256xbf16>
    %cst_25 = arith.constant dense<0.000000e+00> : vector<64x64xf32>
    %31 = tpu.matmul %30, %5, %cst_25 {dimension_numbers = #tpu.dot_dimension_numbers<[1], [0], [0], [1], [0, 0, 1, 1], [], []>} : vector<64x256xbf16>, vector<256x64xbf16>, vector<64x64xf32> -> vector<64x64xf32>
    %32 = arith.maximumf %28, %31 : vector<64x64xf32>
    %c7 = arith.constant 7 : index
    %c0_26 = arith.constant 0 : index
    %c0_27 = arith.constant 0 : index
    %33 = vector.load %arg3[%c7, %c0_26, %c0_27] : memref<9x64x256xbf16, #tpu.memory_space<vmem>>, vector<1x64x256xbf16>
    %34 = vector.shape_cast %33 : vector<1x64x256xbf16> to vector<64x256xbf16>
    %cst_28 = arith.constant dense<0.000000e+00> : vector<64x64xf32>
    %35 = tpu.matmul %34, %5, %cst_28 {dimension_numbers = #tpu.dot_dimension_numbers<[1], [0], [0], [1], [0, 0, 1, 1], [], []>} : vector<64x256xbf16>, vector<256x64xbf16>, vector<64x64xf32> -> vector<64x64xf32>
    %36 = arith.maximumf %32, %35 : vector<64x64xf32>
    %c8 = arith.constant 8 : index
    %c0_29 = arith.constant 0 : index
    %c0_30 = arith.constant 0 : index
    %37 = vector.load %arg3[%c8, %c0_29, %c0_30] : memref<9x64x256xbf16, #tpu.memory_space<vmem>>, vector<1x64x256xbf16>
    %38 = vector.shape_cast %37 : vector<1x64x256xbf16> to vector<64x256xbf16>
    %cst_31 = arith.constant dense<0.000000e+00> : vector<64x64xf32>
    %39 = tpu.matmul %38, %5, %cst_31 {dimension_numbers = #tpu.dot_dimension_numbers<[1], [0], [0], [1], [0, 0, 1, 1], [], []>} : vector<64x256xbf16>, vector<256x64xbf16>, vector<64x64xf32> -> vector<64x64xf32>
    %40 = arith.maximumf %36, %39 : vector<64x64xf32>
    %41 = arith.truncf %40 : vector<64x64xf32> to vector<64x64xbf16>
    %c0_32 = arith.constant 0 : index
    %c0_33 = arith.constant 0 : index
    %42 = vector.load %arg5[%c0_32, %c0_33] : memref<64x64xbf16, #tpu.memory_space<vmem>>, vector<64x64xbf16>
    %cst_34 = arith.constant dense<0.000000e+00> : vector<64x64xf32>
    %43 = tpu.matmul %41, %42, %cst_34 {dimension_numbers = #tpu.dot_dimension_numbers<[1], [0], [0], [1], [0, 0, 1, 1], [], []>} : vector<64x64xbf16>, vector<64x64xbf16>, vector<64x64xf32> -> vector<64x64xf32>
    %cst_35 = arith.constant 0.000000e+00 : f32
    %44 = vector.broadcast %cst_35 : f32 to vector<64x64xf32>
    %45 = arith.maximumf %43, %44 : vector<64x64xf32>
    %46 = arith.truncf %45 : vector<64x64xf32> to vector<64x64xbf16>
    %c0_36 = arith.constant 0 : index
    %c0_37 = arith.constant 0 : index
    %47 = vector.load %arg6[%c0_36, %c0_37] : memref<64x576xbf16, #tpu.memory_space<vmem>>, vector<64x576xbf16>
    %cst_38 = arith.constant dense<0.000000e+00> : vector<64x576xf32>
    %48 = tpu.matmul %46, %47, %cst_38 {dimension_numbers = #tpu.dot_dimension_numbers<[1], [0], [0], [1], [0, 0, 1, 1], [], []>} : vector<64x64xbf16>, vector<64x576xbf16>, vector<64x576xf32> -> vector<64x576xf32>
    %49 = arith.truncf %48 : vector<64x576xf32> to vector<64x576xbf16>
    %c0_39 = arith.constant 0 : index
    %c0_40 = arith.constant 0 : index
    %c0_41 = arith.constant 0 : index
    %50 = vector.load %arg4[%c0_39, %c0_40, %c0_41] : memref<9x64x64xbf16, #tpu.memory_space<vmem>>, vector<1x64x64xbf16>
    %51 = vector.shape_cast %50 : vector<1x64x64xbf16> to vector<64x64xbf16>
    %52 = vector.extract_strided_slice %49 {offsets = [0, 0], sizes = [64, 64], strides = [1, 1]} : vector<64x576xbf16> to vector<64x64xbf16>
    %cst_42 = arith.constant dense<0.000000e+00> : vector<64x64xf32>
    %53 = tpu.matmul %51, %52, %cst_42 {dimension_numbers = #tpu.dot_dimension_numbers<[1], [0], [0], [1], [0, 0, 1, 1], [], []>} : vector<64x64xbf16>, vector<64x64xbf16>, vector<64x64xf32> -> vector<64x64xf32>
    %c1_43 = arith.constant 1 : index
    %c0_44 = arith.constant 0 : index
    %c0_45 = arith.constant 0 : index
    %54 = vector.load %arg4[%c1_43, %c0_44, %c0_45] : memref<9x64x64xbf16, #tpu.memory_space<vmem>>, vector<1x64x64xbf16>
    %55 = vector.shape_cast %54 : vector<1x64x64xbf16> to vector<64x64xbf16>
    %56 = vector.extract_strided_slice %49 {offsets = [0, 64], sizes = [64, 64], strides = [1, 1]} : vector<64x576xbf16> to vector<64x64xbf16>
    %cst_46 = arith.constant dense<0.000000e+00> : vector<64x64xf32>
    %57 = tpu.matmul %55, %56, %cst_46 {dimension_numbers = #tpu.dot_dimension_numbers<[1], [0], [0], [1], [0, 0, 1, 1], [], []>} : vector<64x64xbf16>, vector<64x64xbf16>, vector<64x64xf32> -> vector<64x64xf32>
    %58 = arith.addf %53, %57 : vector<64x64xf32>
    %c2_47 = arith.constant 2 : index
    %c0_48 = arith.constant 0 : index
    %c0_49 = arith.constant 0 : index
    %59 = vector.load %arg4[%c2_47, %c0_48, %c0_49] : memref<9x64x64xbf16, #tpu.memory_space<vmem>>, vector<1x64x64xbf16>
    %60 = vector.shape_cast %59 : vector<1x64x64xbf16> to vector<64x64xbf16>
    %61 = vector.extract_strided_slice %49 {offsets = [0, 128], sizes = [64, 64], strides = [1, 1]} : vector<64x576xbf16> to vector<64x64xbf16>
    %cst_50 = arith.constant dense<0.000000e+00> : vector<64x64xf32>
    %62 = tpu.matmul %60, %61, %cst_50 {dimension_numbers = #tpu.dot_dimension_numbers<[1], [0], [0], [1], [0, 0, 1, 1], [], []>} : vector<64x64xbf16>, vector<64x64xbf16>, vector<64x64xf32> -> vector<64x64xf32>
    %63 = arith.addf %58, %62 : vector<64x64xf32>
    %c3_51 = arith.constant 3 : index
    %c0_52 = arith.constant 0 : index
    %c0_53 = arith.constant 0 : index
    %64 = vector.load %arg4[%c3_51, %c0_52, %c0_53] : memref<9x64x64xbf16, #tpu.memory_space<vmem>>, vector<1x64x64xbf16>
    %65 = vector.shape_cast %64 : vector<1x64x64xbf16> to vector<64x64xbf16>
    %66 = vector.extract_strided_slice %49 {offsets = [0, 192], sizes = [64, 64], strides = [1, 1]} : vector<64x576xbf16> to vector<64x64xbf16>
    %cst_54 = arith.constant dense<0.000000e+00> : vector<64x64xf32>
    %67 = tpu.matmul %65, %66, %cst_54 {dimension_numbers = #tpu.dot_dimension_numbers<[1], [0], [0], [1], [0, 0, 1, 1], [], []>} : vector<64x64xbf16>, vector<64x64xbf16>, vector<64x64xf32> -> vector<64x64xf32>
    %68 = arith.addf %63, %67 : vector<64x64xf32>
    %c4_55 = arith.constant 4 : index
    %c0_56 = arith.constant 0 : index
    %c0_57 = arith.constant 0 : index
    %69 = vector.load %arg4[%c4_55, %c0_56, %c0_57] : memref<9x64x64xbf16, #tpu.memory_space<vmem>>, vector<1x64x64xbf16>
    %70 = vector.shape_cast %69 : vector<1x64x64xbf16> to vector<64x64xbf16>
    %71 = vector.extract_strided_slice %49 {offsets = [0, 256], sizes = [64, 64], strides = [1, 1]} : vector<64x576xbf16> to vector<64x64xbf16>
    %cst_58 = arith.constant dense<0.000000e+00> : vector<64x64xf32>
    %72 = tpu.matmul %70, %71, %cst_58 {dimension_numbers = #tpu.dot_dimension_numbers<[1], [0], [0], [1], [0, 0, 1, 1], [], []>} : vector<64x64xbf16>, vector<64x64xbf16>, vector<64x64xf32> -> vector<64x64xf32>
    %73 = arith.addf %68, %72 : vector<64x64xf32>
    %c5_59 = arith.constant 5 : index
    %c0_60 = arith.constant 0 : index
    %c0_61 = arith.constant 0 : index
    %74 = vector.load %arg4[%c5_59, %c0_60, %c0_61] : memref<9x64x64xbf16, #tpu.memory_space<vmem>>, vector<1x64x64xbf16>
    %75 = vector.shape_cast %74 : vector<1x64x64xbf16> to vector<64x64xbf16>
    %76 = vector.extract_strided_slice %49 {offsets = [0, 320], sizes = [64, 64], strides = [1, 1]} : vector<64x576xbf16> to vector<64x64xbf16>
    %cst_62 = arith.constant dense<0.000000e+00> : vector<64x64xf32>
    %77 = tpu.matmul %75, %76, %cst_62 {dimension_numbers = #tpu.dot_dimension_numbers<[1], [0], [0], [1], [0, 0, 1, 1], [], []>} : vector<64x64xbf16>, vector<64x64xbf16>, vector<64x64xf32> -> vector<64x64xf32>
    %78 = arith.addf %73, %77 : vector<64x64xf32>
    %c6_63 = arith.constant 6 : index
    %c0_64 = arith.constant 0 : index
    %c0_65 = arith.constant 0 : index
    %79 = vector.load %arg4[%c6_63, %c0_64, %c0_65] : memref<9x64x64xbf16, #tpu.memory_space<vmem>>, vector<1x64x64xbf16>
    %80 = vector.shape_cast %79 : vector<1x64x64xbf16> to vector<64x64xbf16>
    %81 = vector.extract_strided_slice %49 {offsets = [0, 384], sizes = [64, 64], strides = [1, 1]} : vector<64x576xbf16> to vector<64x64xbf16>
    %cst_66 = arith.constant dense<0.000000e+00> : vector<64x64xf32>
    %82 = tpu.matmul %80, %81, %cst_66 {dimension_numbers = #tpu.dot_dimension_numbers<[1], [0], [0], [1], [0, 0, 1, 1], [], []>} : vector<64x64xbf16>, vector<64x64xbf16>, vector<64x64xf32> -> vector<64x64xf32>
    %83 = arith.addf %78, %82 : vector<64x64xf32>
    %c7_67 = arith.constant 7 : index
    %c0_68 = arith.constant 0 : index
    %c0_69 = arith.constant 0 : index
    %84 = vector.load %arg4[%c7_67, %c0_68, %c0_69] : memref<9x64x64xbf16, #tpu.memory_space<vmem>>, vector<1x64x64xbf16>
    %85 = vector.shape_cast %84 : vector<1x64x64xbf16> to vector<64x64xbf16>
    %86 = vector.extract_strided_slice %49 {offsets = [0, 448], sizes = [64, 64], strides = [1, 1]} : vector<64x576xbf16> to vector<64x64xbf16>
    %cst_70 = arith.constant dense<0.000000e+00> : vector<64x64xf32>
    %87 = tpu.matmul %85, %86, %cst_70 {dimension_numbers = #tpu.dot_dimension_numbers<[1], [0], [0], [1], [0, 0, 1, 1], [], []>} : vector<64x64xbf16>, vector<64x64xbf16>, vector<64x64xf32> -> vector<64x64xf32>
    %88 = arith.addf %83, %87 : vector<64x64xf32>
    %c8_71 = arith.constant 8 : index
    %c0_72 = arith.constant 0 : index
    %c0_73 = arith.constant 0 : index
    %89 = vector.load %arg4[%c8_71, %c0_72, %c0_73] : memref<9x64x64xbf16, #tpu.memory_space<vmem>>, vector<1x64x64xbf16>
    %90 = vector.shape_cast %89 : vector<1x64x64xbf16> to vector<64x64xbf16>
    %91 = vector.extract_strided_slice %49 {offsets = [0, 512], sizes = [64, 64], strides = [1, 1]} : vector<64x576xbf16> to vector<64x64xbf16>
    %cst_74 = arith.constant dense<0.000000e+00> : vector<64x64xf32>
    %92 = tpu.matmul %90, %91, %cst_74 {dimension_numbers = #tpu.dot_dimension_numbers<[1], [0], [0], [1], [0, 0, 1, 1], [], []>} : vector<64x64xbf16>, vector<64x64xbf16>, vector<64x64xf32> -> vector<64x64xf32>
    %93 = arith.addf %88, %92 : vector<64x64xf32>
    %cst_75 = arith.constant 0.000000e+00 : f32
    %94 = vector.broadcast %cst_75 : f32 to vector<64x64xf32>
    %95 = arith.maximumf %93, %94 : vector<64x64xf32>
    %96 = arith.truncf %95 : vector<64x64xf32> to vector<64x64xbf16>
    %c0_76 = arith.constant 0 : index
    %c0_77 = arith.constant 0 : index
    %97 = vector.load %arg7[%c0_76, %c0_77] : memref<64x256xbf16, #tpu.memory_space<vmem>>, vector<64x256xbf16>
    %cst_78 = arith.constant dense<0.000000e+00> : vector<64x256xf32>
    %98 = tpu.matmul %96, %97, %cst_78 {dimension_numbers = #tpu.dot_dimension_numbers<[1], [0], [0], [1], [0, 0, 1, 1], [], []>} : vector<64x64xbf16>, vector<64x256xbf16>, vector<64x256xf32> -> vector<64x256xf32>
    %c0_79 = arith.constant 0 : index
    %c0_80 = arith.constant 0 : index
    %99 = vector.load %arg8[%c0_79, %c0_80] : memref<64x256xbf16, #tpu.memory_space<vmem>>, vector<64x256xbf16>
    %cst_81 = arith.constant dense<0.000000e+00> : vector<64x256xf32>
    %100 = tpu.matmul %41, %99, %cst_81 {dimension_numbers = #tpu.dot_dimension_numbers<[1], [0], [0], [1], [0, 0, 1, 1], [], []>} : vector<64x64xbf16>, vector<64x256xbf16>, vector<64x256xf32> -> vector<64x256xf32>
    %101 = arith.addf %98, %100 : vector<64x256xf32>
    %cst_82 = arith.constant 0.000000e+00 : f32
    %102 = vector.broadcast %cst_82 : f32 to vector<64x256xf32>
    %103 = arith.maximumf %101, %102 : vector<64x256xf32>
    %104 = arith.truncf %103 : vector<64x256xf32> to vector<64x256xbf16>
    %c0_83 = arith.constant 0 : index
    %c0_84 = arith.constant 0 : index
    %105 = vector.load %arg9[%c0_83, %c0_84] : memref<256x64xbf16, #tpu.memory_space<vmem>>, vector<256x64xbf16>
    %cst_85 = arith.constant dense<0.000000e+00> : vector<64x64xf32>
    %106 = tpu.matmul %104, %105, %cst_85 {dimension_numbers = #tpu.dot_dimension_numbers<[1], [0], [0], [1], [0, 0, 1, 1], [], []>} : vector<64x256xbf16>, vector<256x64xbf16>, vector<64x64xf32> -> vector<64x64xf32>
    %cst_86 = arith.constant 0.000000e+00 : f32
    %107 = vector.broadcast %cst_86 : f32 to vector<64x64xf32>
    %108 = arith.maximumf %106, %107 : vector<64x64xf32>
    %109 = arith.truncf %108 : vector<64x64xf32> to vector<64x64xbf16>
    %c0_87 = arith.constant 0 : index
    %c0_88 = arith.constant 0 : index
    %110 = vector.load %arg10[%c0_87, %c0_88] : memref<64x576xbf16, #tpu.memory_space<vmem>>, vector<64x576xbf16>
    %cst_89 = arith.constant dense<0.000000e+00> : vector<64x576xf32>
    %111 = tpu.matmul %109, %110, %cst_89 {dimension_numbers = #tpu.dot_dimension_numbers<[1], [0], [0], [1], [0, 0, 1, 1], [], []>} : vector<64x64xbf16>, vector<64x576xbf16>, vector<64x576xf32> -> vector<64x576xf32>
    %112 = arith.truncf %111 : vector<64x576xf32> to vector<64x576xbf16>
    %c0_90 = arith.constant 0 : index
    %c0_91 = arith.constant 0 : index
    %c0_92 = arith.constant 0 : index
    %113 = vector.load %arg4[%c0_90, %c0_91, %c0_92] : memref<9x64x64xbf16, #tpu.memory_space<vmem>>, vector<1x64x64xbf16>
    %114 = vector.shape_cast %113 : vector<1x64x64xbf16> to vector<64x64xbf16>
    %115 = vector.extract_strided_slice %112 {offsets = [0, 0], sizes = [64, 64], strides = [1, 1]} : vector<64x576xbf16> to vector<64x64xbf16>
    %cst_93 = arith.constant dense<0.000000e+00> : vector<64x64xf32>
    %116 = tpu.matmul %114, %115, %cst_93 {dimension_numbers = #tpu.dot_dimension_numbers<[1], [0], [0], [1], [0, 0, 1, 1], [], []>} : vector<64x64xbf16>, vector<64x64xbf16>, vector<64x64xf32> -> vector<64x64xf32>
    %c1_94 = arith.constant 1 : index
    %c0_95 = arith.constant 0 : index
    %c0_96 = arith.constant 0 : index
    %117 = vector.load %arg4[%c1_94, %c0_95, %c0_96] : memref<9x64x64xbf16, #tpu.memory_space<vmem>>, vector<1x64x64xbf16>
    %118 = vector.shape_cast %117 : vector<1x64x64xbf16> to vector<64x64xbf16>
    %119 = vector.extract_strided_slice %112 {offsets = [0, 64], sizes = [64, 64], strides = [1, 1]} : vector<64x576xbf16> to vector<64x64xbf16>
    %cst_97 = arith.constant dense<0.000000e+00> : vector<64x64xf32>
    %120 = tpu.matmul %118, %119, %cst_97 {dimension_numbers = #tpu.dot_dimension_numbers<[1], [0], [0], [1], [0, 0, 1, 1], [], []>} : vector<64x64xbf16>, vector<64x64xbf16>, vector<64x64xf32> -> vector<64x64xf32>
    %121 = arith.addf %116, %120 : vector<64x64xf32>
    %c2_98 = arith.constant 2 : index
    %c0_99 = arith.constant 0 : index
    %c0_100 = arith.constant 0 : index
    %122 = vector.load %arg4[%c2_98, %c0_99, %c0_100] : memref<9x64x64xbf16, #tpu.memory_space<vmem>>, vector<1x64x64xbf16>
    %123 = vector.shape_cast %122 : vector<1x64x64xbf16> to vector<64x64xbf16>
    %124 = vector.extract_strided_slice %112 {offsets = [0, 128], sizes = [64, 64], strides = [1, 1]} : vector<64x576xbf16> to vector<64x64xbf16>
    %cst_101 = arith.constant dense<0.000000e+00> : vector<64x64xf32>
    %125 = tpu.matmul %123, %124, %cst_101 {dimension_numbers = #tpu.dot_dimension_numbers<[1], [0], [0], [1], [0, 0, 1, 1], [], []>} : vector<64x64xbf16>, vector<64x64xbf16>, vector<64x64xf32> -> vector<64x64xf32>
    %126 = arith.addf %121, %125 : vector<64x64xf32>
    %c3_102 = arith.constant 3 : index
    %c0_103 = arith.constant 0 : index
    %c0_104 = arith.constant 0 : index
    %127 = vector.load %arg4[%c3_102, %c0_103, %c0_104] : memref<9x64x64xbf16, #tpu.memory_space<vmem>>, vector<1x64x64xbf16>
    %128 = vector.shape_cast %127 : vector<1x64x64xbf16> to vector<64x64xbf16>
    %129 = vector.extract_strided_slice %112 {offsets = [0, 192], sizes = [64, 64], strides = [1, 1]} : vector<64x576xbf16> to vector<64x64xbf16>
    %cst_105 = arith.constant dense<0.000000e+00> : vector<64x64xf32>
    %130 = tpu.matmul %128, %129, %cst_105 {dimension_numbers = #tpu.dot_dimension_numbers<[1], [0], [0], [1], [0, 0, 1, 1], [], []>} : vector<64x64xbf16>, vector<64x64xbf16>, vector<64x64xf32> -> vector<64x64xf32>
    %131 = arith.addf %126, %130 : vector<64x64xf32>
    %c4_106 = arith.constant 4 : index
    %c0_107 = arith.constant 0 : index
    %c0_108 = arith.constant 0 : index
    %132 = vector.load %arg4[%c4_106, %c0_107, %c0_108] : memref<9x64x64xbf16, #tpu.memory_space<vmem>>, vector<1x64x64xbf16>
    %133 = vector.shape_cast %132 : vector<1x64x64xbf16> to vector<64x64xbf16>
    %134 = vector.extract_strided_slice %112 {offsets = [0, 256], sizes = [64, 64], strides = [1, 1]} : vector<64x576xbf16> to vector<64x64xbf16>
    %cst_109 = arith.constant dense<0.000000e+00> : vector<64x64xf32>
    %135 = tpu.matmul %133, %134, %cst_109 {dimension_numbers = #tpu.dot_dimension_numbers<[1], [0], [0], [1], [0, 0, 1, 1], [], []>} : vector<64x64xbf16>, vector<64x64xbf16>, vector<64x64xf32> -> vector<64x64xf32>
    %136 = arith.addf %131, %135 : vector<64x64xf32>
    %c5_110 = arith.constant 5 : index
    %c0_111 = arith.constant 0 : index
    %c0_112 = arith.constant 0 : index
    %137 = vector.load %arg4[%c5_110, %c0_111, %c0_112] : memref<9x64x64xbf16, #tpu.memory_space<vmem>>, vector<1x64x64xbf16>
    %138 = vector.shape_cast %137 : vector<1x64x64xbf16> to vector<64x64xbf16>
    %139 = vector.extract_strided_slice %112 {offsets = [0, 320], sizes = [64, 64], strides = [1, 1]} : vector<64x576xbf16> to vector<64x64xbf16>
    %cst_113 = arith.constant dense<0.000000e+00> : vector<64x64xf32>
    %140 = tpu.matmul %138, %139, %cst_113 {dimension_numbers = #tpu.dot_dimension_numbers<[1], [0], [0], [1], [0, 0, 1, 1], [], []>} : vector<64x64xbf16>, vector<64x64xbf16>, vector<64x64xf32> -> vector<64x64xf32>
    %141 = arith.addf %136, %140 : vector<64x64xf32>
    %c6_114 = arith.constant 6 : index
    %c0_115 = arith.constant 0 : index
    %c0_116 = arith.constant 0 : index
    %142 = vector.load %arg4[%c6_114, %c0_115, %c0_116] : memref<9x64x64xbf16, #tpu.memory_space<vmem>>, vector<1x64x64xbf16>
    %143 = vector.shape_cast %142 : vector<1x64x64xbf16> to vector<64x64xbf16>
    %144 = vector.extract_strided_slice %112 {offsets = [0, 384], sizes = [64, 64], strides = [1, 1]} : vector<64x576xbf16> to vector<64x64xbf16>
    %cst_117 = arith.constant dense<0.000000e+00> : vector<64x64xf32>
    %145 = tpu.matmul %143, %144, %cst_117 {dimension_numbers = #tpu.dot_dimension_numbers<[1], [0], [0], [1], [0, 0, 1, 1], [], []>} : vector<64x64xbf16>, vector<64x64xbf16>, vector<64x64xf32> -> vector<64x64xf32>
    %146 = arith.addf %141, %145 : vector<64x64xf32>
    %c7_118 = arith.constant 7 : index
    %c0_119 = arith.constant 0 : index
    %c0_120 = arith.constant 0 : index
    %147 = vector.load %arg4[%c7_118, %c0_119, %c0_120] : memref<9x64x64xbf16, #tpu.memory_space<vmem>>, vector<1x64x64xbf16>
    %148 = vector.shape_cast %147 : vector<1x64x64xbf16> to vector<64x64xbf16>
    %149 = vector.extract_strided_slice %112 {offsets = [0, 448], sizes = [64, 64], strides = [1, 1]} : vector<64x576xbf16> to vector<64x64xbf16>
    %cst_121 = arith.constant dense<0.000000e+00> : vector<64x64xf32>
    %150 = tpu.matmul %148, %149, %cst_121 {dimension_numbers = #tpu.dot_dimension_numbers<[1], [0], [0], [1], [0, 0, 1, 1], [], []>} : vector<64x64xbf16>, vector<64x64xbf16>, vector<64x64xf32> -> vector<64x64xf32>
    %151 = arith.addf %146, %150 : vector<64x64xf32>
    %c8_122 = arith.constant 8 : index
    %c0_123 = arith.constant 0 : index
    %c0_124 = arith.constant 0 : index
    %152 = vector.load %arg4[%c8_122, %c0_123, %c0_124] : memref<9x64x64xbf16, #tpu.memory_space<vmem>>, vector<1x64x64xbf16>
    %153 = vector.shape_cast %152 : vector<1x64x64xbf16> to vector<64x64xbf16>
    %154 = vector.extract_strided_slice %112 {offsets = [0, 512], sizes = [64, 64], strides = [1, 1]} : vector<64x576xbf16> to vector<64x64xbf16>
    %cst_125 = arith.constant dense<0.000000e+00> : vector<64x64xf32>
    %155 = tpu.matmul %153, %154, %cst_125 {dimension_numbers = #tpu.dot_dimension_numbers<[1], [0], [0], [1], [0, 0, 1, 1], [], []>} : vector<64x64xbf16>, vector<64x64xbf16>, vector<64x64xf32> -> vector<64x64xf32>
    %156 = arith.addf %151, %155 : vector<64x64xf32>
    %cst_126 = arith.constant 0.000000e+00 : f32
    %157 = vector.broadcast %cst_126 : f32 to vector<64x64xf32>
    %158 = arith.maximumf %156, %157 : vector<64x64xf32>
    %159 = arith.truncf %158 : vector<64x64xf32> to vector<64x64xbf16>
    %c0_127 = arith.constant 0 : index
    %c0_128 = arith.constant 0 : index
    %160 = vector.load %arg11[%c0_127, %c0_128] : memref<64x256xbf16, #tpu.memory_space<vmem>>, vector<64x256xbf16>
    %cst_129 = arith.constant dense<0.000000e+00> : vector<64x256xf32>
    %161 = tpu.matmul %159, %160, %cst_129 {dimension_numbers = #tpu.dot_dimension_numbers<[1], [0], [0], [1], [0, 0, 1, 1], [], []>} : vector<64x64xbf16>, vector<64x256xbf16>, vector<64x256xf32> -> vector<64x256xf32>
    %162 = arith.addf %161, %103 : vector<64x256xf32>
    %cst_130 = arith.constant 0.000000e+00 : f32
    %163 = vector.broadcast %cst_130 : f32 to vector<64x256xf32>
    %164 = arith.maximumf %162, %163 : vector<64x256xf32>
    %165 = arith.truncf %164 : vector<64x256xf32> to vector<64x256xbf16>
    %c0_131 = arith.constant 0 : index
    %c0_132 = arith.constant 0 : index
    %166 = vector.load %arg12[%c0_131, %c0_132] : memref<256x64xbf16, #tpu.memory_space<vmem>>, vector<256x64xbf16>
    %cst_133 = arith.constant dense<0.000000e+00> : vector<64x64xf32>
    %167 = tpu.matmul %165, %166, %cst_133 {dimension_numbers = #tpu.dot_dimension_numbers<[1], [0], [0], [1], [0, 0, 1, 1], [], []>} : vector<64x256xbf16>, vector<256x64xbf16>, vector<64x64xf32> -> vector<64x64xf32>
    %cst_134 = arith.constant 0.000000e+00 : f32
    %168 = vector.broadcast %cst_134 : f32 to vector<64x64xf32>
    %169 = arith.maximumf %167, %168 : vector<64x64xf32>
    %170 = arith.truncf %169 : vector<64x64xf32> to vector<64x64xbf16>
    %c0_135 = arith.constant 0 : index
    %c0_136 = arith.constant 0 : index
    %171 = vector.load %arg13[%c0_135, %c0_136] : memref<64x576xbf16, #tpu.memory_space<vmem>>, vector<64x576xbf16>
    %cst_137 = arith.constant dense<0.000000e+00> : vector<64x576xf32>
    %172 = tpu.matmul %170, %171, %cst_137 {dimension_numbers = #tpu.dot_dimension_numbers<[1], [0], [0], [1], [0, 0, 1, 1], [], []>} : vector<64x64xbf16>, vector<64x576xbf16>, vector<64x576xf32> -> vector<64x576xf32>
    %173 = arith.truncf %172 : vector<64x576xf32> to vector<64x576xbf16>
    %c0_138 = arith.constant 0 : index
    %c0_139 = arith.constant 0 : index
    %c0_140 = arith.constant 0 : index
    %174 = vector.load %arg4[%c0_138, %c0_139, %c0_140] : memref<9x64x64xbf16, #tpu.memory_space<vmem>>, vector<1x64x64xbf16>
    %175 = vector.shape_cast %174 : vector<1x64x64xbf16> to vector<64x64xbf16>
    %176 = vector.extract_strided_slice %173 {offsets = [0, 0], sizes = [64, 64], strides = [1, 1]} : vector<64x576xbf16> to vector<64x64xbf16>
    %cst_141 = arith.constant dense<0.000000e+00> : vector<64x64xf32>
    %177 = tpu.matmul %175, %176, %cst_141 {dimension_numbers = #tpu.dot_dimension_numbers<[1], [0], [0], [1], [0, 0, 1, 1], [], []>} : vector<64x64xbf16>, vector<64x64xbf16>, vector<64x64xf32> -> vector<64x64xf32>
    %c1_142 = arith.constant 1 : index
    %c0_143 = arith.constant 0 : index
    %c0_144 = arith.constant 0 : index
    %178 = vector.load %arg4[%c1_142, %c0_143, %c0_144] : memref<9x64x64xbf16, #tpu.memory_space<vmem>>, vector<1x64x64xbf16>
    %179 = vector.shape_cast %178 : vector<1x64x64xbf16> to vector<64x64xbf16>
    %180 = vector.extract_strided_slice %173 {offsets = [0, 64], sizes = [64, 64], strides = [1, 1]} : vector<64x576xbf16> to vector<64x64xbf16>
    %cst_145 = arith.constant dense<0.000000e+00> : vector<64x64xf32>
    %181 = tpu.matmul %179, %180, %cst_145 {dimension_numbers = #tpu.dot_dimension_numbers<[1], [0], [0], [1], [0, 0, 1, 1], [], []>} : vector<64x64xbf16>, vector<64x64xbf16>, vector<64x64xf32> -> vector<64x64xf32>
    %182 = arith.addf %177, %181 : vector<64x64xf32>
    %c2_146 = arith.constant 2 : index
    %c0_147 = arith.constant 0 : index
    %c0_148 = arith.constant 0 : index
    %183 = vector.load %arg4[%c2_146, %c0_147, %c0_148] : memref<9x64x64xbf16, #tpu.memory_space<vmem>>, vector<1x64x64xbf16>
    %184 = vector.shape_cast %183 : vector<1x64x64xbf16> to vector<64x64xbf16>
    %185 = vector.extract_strided_slice %173 {offsets = [0, 128], sizes = [64, 64], strides = [1, 1]} : vector<64x576xbf16> to vector<64x64xbf16>
    %cst_149 = arith.constant dense<0.000000e+00> : vector<64x64xf32>
    %186 = tpu.matmul %184, %185, %cst_149 {dimension_numbers = #tpu.dot_dimension_numbers<[1], [0], [0], [1], [0, 0, 1, 1], [], []>} : vector<64x64xbf16>, vector<64x64xbf16>, vector<64x64xf32> -> vector<64x64xf32>
    %187 = arith.addf %182, %186 : vector<64x64xf32>
    %c3_150 = arith.constant 3 : index
    %c0_151 = arith.constant 0 : index
    %c0_152 = arith.constant 0 : index
    %188 = vector.load %arg4[%c3_150, %c0_151, %c0_152] : memref<9x64x64xbf16, #tpu.memory_space<vmem>>, vector<1x64x64xbf16>
    %189 = vector.shape_cast %188 : vector<1x64x64xbf16> to vector<64x64xbf16>
    %190 = vector.extract_strided_slice %173 {offsets = [0, 192], sizes = [64, 64], strides = [1, 1]} : vector<64x576xbf16> to vector<64x64xbf16>
    %cst_153 = arith.constant dense<0.000000e+00> : vector<64x64xf32>
    %191 = tpu.matmul %189, %190, %cst_153 {dimension_numbers = #tpu.dot_dimension_numbers<[1], [0], [0], [1], [0, 0, 1, 1], [], []>} : vector<64x64xbf16>, vector<64x64xbf16>, vector<64x64xf32> -> vector<64x64xf32>
    %192 = arith.addf %187, %191 : vector<64x64xf32>
    %c4_154 = arith.constant 4 : index
    %c0_155 = arith.constant 0 : index
    %c0_156 = arith.constant 0 : index
    %193 = vector.load %arg4[%c4_154, %c0_155, %c0_156] : memref<9x64x64xbf16, #tpu.memory_space<vmem>>, vector<1x64x64xbf16>
    %194 = vector.shape_cast %193 : vector<1x64x64xbf16> to vector<64x64xbf16>
    %195 = vector.extract_strided_slice %173 {offsets = [0, 256], sizes = [64, 64], strides = [1, 1]} : vector<64x576xbf16> to vector<64x64xbf16>
    %cst_157 = arith.constant dense<0.000000e+00> : vector<64x64xf32>
    %196 = tpu.matmul %194, %195, %cst_157 {dimension_numbers = #tpu.dot_dimension_numbers<[1], [0], [0], [1], [0, 0, 1, 1], [], []>} : vector<64x64xbf16>, vector<64x64xbf16>, vector<64x64xf32> -> vector<64x64xf32>
    %197 = arith.addf %192, %196 : vector<64x64xf32>
    %c5_158 = arith.constant 5 : index
    %c0_159 = arith.constant 0 : index
    %c0_160 = arith.constant 0 : index
    %198 = vector.load %arg4[%c5_158, %c0_159, %c0_160] : memref<9x64x64xbf16, #tpu.memory_space<vmem>>, vector<1x64x64xbf16>
    %199 = vector.shape_cast %198 : vector<1x64x64xbf16> to vector<64x64xbf16>
    %200 = vector.extract_strided_slice %173 {offsets = [0, 320], sizes = [64, 64], strides = [1, 1]} : vector<64x576xbf16> to vector<64x64xbf16>
    %cst_161 = arith.constant dense<0.000000e+00> : vector<64x64xf32>
    %201 = tpu.matmul %199, %200, %cst_161 {dimension_numbers = #tpu.dot_dimension_numbers<[1], [0], [0], [1], [0, 0, 1, 1], [], []>} : vector<64x64xbf16>, vector<64x64xbf16>, vector<64x64xf32> -> vector<64x64xf32>
    %202 = arith.addf %197, %201 : vector<64x64xf32>
    %c6_162 = arith.constant 6 : index
    %c0_163 = arith.constant 0 : index
    %c0_164 = arith.constant 0 : index
    %203 = vector.load %arg4[%c6_162, %c0_163, %c0_164] : memref<9x64x64xbf16, #tpu.memory_space<vmem>>, vector<1x64x64xbf16>
    %204 = vector.shape_cast %203 : vector<1x64x64xbf16> to vector<64x64xbf16>
    %205 = vector.extract_strided_slice %173 {offsets = [0, 384], sizes = [64, 64], strides = [1, 1]} : vector<64x576xbf16> to vector<64x64xbf16>
    %cst_165 = arith.constant dense<0.000000e+00> : vector<64x64xf32>
    %206 = tpu.matmul %204, %205, %cst_165 {dimension_numbers = #tpu.dot_dimension_numbers<[1], [0], [0], [1], [0, 0, 1, 1], [], []>} : vector<64x64xbf16>, vector<64x64xbf16>, vector<64x64xf32> -> vector<64x64xf32>
    %207 = arith.addf %202, %206 : vector<64x64xf32>
    %c7_166 = arith.constant 7 : index
    %c0_167 = arith.constant 0 : index
    %c0_168 = arith.constant 0 : index
    %208 = vector.load %arg4[%c7_166, %c0_167, %c0_168] : memref<9x64x64xbf16, #tpu.memory_space<vmem>>, vector<1x64x64xbf16>
    %209 = vector.shape_cast %208 : vector<1x64x64xbf16> to vector<64x64xbf16>
    %210 = vector.extract_strided_slice %173 {offsets = [0, 448], sizes = [64, 64], strides = [1, 1]} : vector<64x576xbf16> to vector<64x64xbf16>
    %cst_169 = arith.constant dense<0.000000e+00> : vector<64x64xf32>
    %211 = tpu.matmul %209, %210, %cst_169 {dimension_numbers = #tpu.dot_dimension_numbers<[1], [0], [0], [1], [0, 0, 1, 1], [], []>} : vector<64x64xbf16>, vector<64x64xbf16>, vector<64x64xf32> -> vector<64x64xf32>
    %212 = arith.addf %207, %211 : vector<64x64xf32>
    %c8_170 = arith.constant 8 : index
    %c0_171 = arith.constant 0 : index
    %c0_172 = arith.constant 0 : index
    %213 = vector.load %arg4[%c8_170, %c0_171, %c0_172] : memref<9x64x64xbf16, #tpu.memory_space<vmem>>, vector<1x64x64xbf16>
    %214 = vector.shape_cast %213 : vector<1x64x64xbf16> to vector<64x64xbf16>
    %215 = vector.extract_strided_slice %173 {offsets = [0, 512], sizes = [64, 64], strides = [1, 1]} : vector<64x576xbf16> to vector<64x64xbf16>
    %cst_173 = arith.constant dense<0.000000e+00> : vector<64x64xf32>
    %216 = tpu.matmul %214, %215, %cst_173 {dimension_numbers = #tpu.dot_dimension_numbers<[1], [0], [0], [1], [0, 0, 1, 1], [], []>} : vector<64x64xbf16>, vector<64x64xbf16>, vector<64x64xf32> -> vector<64x64xf32>
    %217 = arith.addf %212, %216 : vector<64x64xf32>
    %cst_174 = arith.constant 0.000000e+00 : f32
    %218 = vector.broadcast %cst_174 : f32 to vector<64x64xf32>
    %219 = arith.maximumf %217, %218 : vector<64x64xf32>
    %220 = arith.truncf %219 : vector<64x64xf32> to vector<64x64xbf16>
    %c0_175 = arith.constant 0 : index
    %c0_176 = arith.constant 0 : index
    %221 = vector.load %arg14[%c0_175, %c0_176] : memref<64x256xbf16, #tpu.memory_space<vmem>>, vector<64x256xbf16>
    %cst_177 = arith.constant dense<0.000000e+00> : vector<64x256xf32>
    %222 = tpu.matmul %220, %221, %cst_177 {dimension_numbers = #tpu.dot_dimension_numbers<[1], [0], [0], [1], [0, 0, 1, 1], [], []>} : vector<64x64xbf16>, vector<64x256xbf16>, vector<64x256xf32> -> vector<64x256xf32>
    %223 = arith.addf %222, %164 : vector<64x256xf32>
    %cst_178 = arith.constant 0.000000e+00 : f32
    %224 = vector.broadcast %cst_178 : f32 to vector<64x256xf32>
    %225 = arith.maximumf %223, %224 : vector<64x256xf32>
    %cst_179 = arith.constant 1.562500e-02 : bf16
    %226 = vector.broadcast %cst_179 : bf16 to vector<8x64xbf16>
    %227 = arith.truncf %225 : vector<64x256xf32> to vector<64x256xbf16>
    %cst_180 = arith.constant dense<0.000000e+00> : vector<8x256xf32>
    %228 = tpu.matmul %226, %227, %cst_180 {dimension_numbers = #tpu.dot_dimension_numbers<[1], [0], [0], [1], [0, 0, 1, 1], [], []>} : vector<8x64xbf16>, vector<64x256xbf16>, vector<8x256xf32> -> vector<8x256xf32>
    %229 = arith.truncf %228 : vector<8x256xf32> to vector<8x256xbf16>
    %c0_181 = arith.constant 0 : index
    %c0_182 = arith.constant 0 : index
    %230 = vector.load %arg15[%c0_181, %c0_182] : memref<256x128xbf16, #tpu.memory_space<vmem>>, vector<256x128xbf16>
    %cst_183 = arith.constant dense<0.000000e+00> : vector<8x128xf32>
    %231 = tpu.matmul %229, %230, %cst_183 {dimension_numbers = #tpu.dot_dimension_numbers<[1], [0], [0], [1], [0, 0, 1, 1], [], []>} : vector<8x256xbf16>, vector<256x128xbf16>, vector<8x128xf32> -> vector<8x128xf32>
    %c0_184 = arith.constant 0 : index
    %c0_185 = arith.constant 0 : index
    %232 = vector.load %arg16[%c0_184, %c0_185] : memref<1x128xf32, #tpu.memory_space<vmem>>, vector<1x128xf32>
    %233 = vector.broadcast %232 : vector<1x128xf32> to vector<8x128xf32>
    %234 = arith.addf %231, %233 : vector<8x128xf32>
    %235 = math.tanh %234 : vector<8x128xf32>
    %cst_186 = arith.constant 1.57079637 : f32
    %236 = vector.broadcast %cst_186 : f32 to vector<8x128xf32>
    %237 = arith.mulf %235, %236 : vector<8x128xf32>
    %c0_187 = arith.constant 0 : index
    %c0_188 = arith.constant 0 : index
    %238 = vector.load %arg17[%c0_187, %c0_188] : memref<8x128xf32, #tpu.memory_space<vmem>>, vector<8x128xf32>
    tpu.vector_store %arg17[%c0_187, %c0_188], %237 {strides = array<i32>} : memref<8x128xf32, #tpu.memory_space<vmem>>, vector<8x128xf32>,
    return
  }
  func.func @transform_0(%arg0: i32) -> (i32, i32) {
    %c0_i32 = arith.constant 0 : i32
    %c0_i32_0 = arith.constant 0 : i32
    return %arg0, %c0_i32 : i32, i32
  }
  func.func @transform_1(%arg0: i32) -> (i32, i32) {
    %c0_i32 = arith.constant 0 : i32
    %c0_i32_0 = arith.constant 0 : i32
    %c0_i32_1 = arith.constant 0 : i32
    return %c0_i32, %c0_i32_0 : i32, i32
  }
  func.func @transform_2(%arg0: i32) -> (i32, i32, i32) {
    %c0_i32 = arith.constant 0 : i32
    %c0_i32_0 = arith.constant 0 : i32
    %c0_i32_1 = arith.constant 0 : i32
    %c0_i32_2 = arith.constant 0 : i32
    return %c0_i32, %c0_i32_0, %c0_i32_1 : i32, i32, i32
  }
  func.func @transform_3(%arg0: i32) -> (i32, i32, i32) {
    %c0_i32 = arith.constant 0 : i32
    %c0_i32_0 = arith.constant 0 : i32
    %c0_i32_1 = arith.constant 0 : i32
    %c0_i32_2 = arith.constant 0 : i32
    return %c0_i32, %c0_i32_0, %c0_i32_1 : i32, i32, i32
  }
  func.func @transform_4(%arg0: i32) -> (i32, i32) {
    %c0_i32 = arith.constant 0 : i32
    %c0_i32_0 = arith.constant 0 : i32
    %c0_i32_1 = arith.constant 0 : i32
    return %c0_i32, %c0_i32_0 : i32, i32
  }
  func.func @transform_5(%arg0: i32) -> (i32, i32) {
    %c0_i32 = arith.constant 0 : i32
    %c0_i32_0 = arith.constant 0 : i32
    %c0_i32_1 = arith.constant 0 : i32
    return %c0_i32, %c0_i32_0 : i32, i32
  }
  func.func @transform_6(%arg0: i32) -> (i32, i32) {
    %c0_i32 = arith.constant 0 : i32
    %c0_i32_0 = arith.constant 0 : i32
    %c0_i32_1 = arith.constant 0 : i32
    return %c0_i32, %c0_i32_0 : i32, i32
  }
  func.func @transform_7(%arg0: i32) -> (i32, i32) {
    %c0_i32 = arith.constant 0 : i32
    %c0_i32_0 = arith.constant 0 : i32
    %c0_i32_1 = arith.constant 0 : i32
    return %c0_i32, %c0_i32_0 : i32, i32
  }
  func.func @transform_8(%arg0: i32) -> (i32, i32) {
    %c0_i32 = arith.constant 0 : i32
    %c0_i32_0 = arith.constant 0 : i32
    %c0_i32_1 = arith.constant 0 : i32
    return %c0_i32, %c0_i32_0 : i32, i32
  }
  func.func @transform_9(%arg0: i32) -> (i32, i32) {
    %c0_i32 = arith.constant 0 : i32
    %c0_i32_0 = arith.constant 0 : i32
    %c0_i32_1 = arith.constant 0 : i32
    return %c0_i32, %c0_i32_0 : i32, i32
  }
  func.func @transform_10(%arg0: i32) -> (i32, i32) {
    %c0_i32 = arith.constant 0 : i32
    %c0_i32_0 = arith.constant 0 : i32
    %c0_i32_1 = arith.constant 0 : i32
    return %c0_i32, %c0_i32_0 : i32, i32
  }
  func.func @transform_11(%arg0: i32) -> (i32, i32) {
    %c0_i32 = arith.constant 0 : i32
    %c0_i32_0 = arith.constant 0 : i32
    %c0_i32_1 = arith.constant 0 : i32
    return %c0_i32, %c0_i32_0 : i32, i32
  }
  func.func @transform_12(%arg0: i32) -> (i32, i32) {
    %c0_i32 = arith.constant 0 : i32
    %c0_i32_0 = arith.constant 0 : i32
    %c0_i32_1 = arith.constant 0 : i32
    return %c0_i32, %c0_i32_0 : i32, i32
  }
  func.func @transform_13(%arg0: i32) -> (i32, i32) {
    %c0_i32 = arith.constant 0 : i32
    %c0_i32_0 = arith.constant 0 : i32
    %c0_i32_1 = arith.constant 0 : i32
    return %c0_i32, %c0_i32_0 : i32, i32
  }
  func.func @transform_14(%arg0: i32) -> (i32, i32) {
    %c0_i32 = arith.constant 0 : i32
    %c0_i32_0 = arith.constant 0 : i32
    %c0_i32_1 = arith.constant 0 : i32
    return %c0_i32, %c0_i32_0 : i32, i32
  }
  func.func @transform_15(%arg0: i32) -> (i32, i32) {
    %c0_i32 = arith.constant 0 : i32
    %c0_i32_0 = arith.constant 0 : i32
    %c0_i32_1 = arith.constant 0 : i32
    return %c0_i32, %c0_i32_0 : i32, i32
  }
  func.func @transform_16(%arg0: i32) -> (i32, i32) {
    %c0_i32 = arith.constant 0 : i32
    %c0_i32_0 = arith.constant 0 : i32
    return %arg0, %c0_i32 : i32, i32
  }
}

</mosaic_0001>

<bundles_post_ra>
// kernel: proprionet_forward.1
= control target key start
LH: loop header
LB: loop body
LE: loop exit
PB: predicated region body
PF: predicated region fallthrough
CT: control target
= control target key end

     0   :  { %s9695_s21 = smov 0   ;;  %s11943_s0 = inlined_call_operand.vmem [shape: bf16[512,256], index: 0, kind: input, shape index: {}]   ;;  %s11944_s1 = inlined_call_operand.vmem [shape: bf16[256,64], index: 1, kind: input, shape index: {}]   ;;  %s11945_s2 = inlined_call_operand.vmem [shape: bf16[9,64,256], index: 2, kind: input, shape index: {}]   ;;  %s11946_s3 = inlined_call_operand.vmem [shape: bf16[9,64,64], index: 3, kind: input, shape index: {}]   ;;  %s11947_s4 = inlined_call_operand.vmem [shape: bf16[64,64], index: 4, kind: input, shape index: {}]   ;;  %s11948_s5 = inlined_call_operand.vmem [shape: bf16[64,576], index: 5, kind: input, shape index: {}]   ;;  %s11949_s6 = inlined_call_operand.vmem [shape: bf16[64,256], index: 6, kind: input, shape index: {}]   ;;  %s11950_s7 = inlined_call_operand.vmem [shape: bf16[64,256], index: 7, kind: input, shape index: {}]   ;;  %s11951_s8 = inlined_call_operand.vmem [shape: bf16[256,64], index: 8, kind: input, shape index: {}]   ;;  %s11952_s9 = inlined_call_operand.vmem [shape: bf16[64,576], index: 9, kind: input, shape index: {}]   ;;  %s11953_s10 = inlined_call_operand.vmem [shape: bf16[64,256], index: 10, kind: input, shape index: {}]   ;;  %s11954_s11 = inlined_call_operand.vmem [shape: bf16[256,64], index: 11, kind: input, shape index: {}]   ;;  %s11955_s12 = inlined_call_operand.vmem [shape: bf16[64,576], index: 12, kind: input, shape index: {}]   ;;  %s11956_s13 = inlined_call_operand.vmem [shape: bf16[64,256], index: 13, kind: input, shape index: {}]   ;;  %s11957_s14 = inlined_call_operand.vmem [shape: bf16[256,128], index: 14, kind: input, shape index: {}]   ;;  %s11958_s15 = inlined_call_operand.vmem [shape: f32[1,128], index: 15, kind: input, shape index: {}]   ;;  %s11959_s16 = inlined_call_operand.vmem [shape: f32[16,128], index: 16, kind: output, shape index: {}]  }
   0x1   :  { %12028 = sst [smem:[#allocation24_spill]] %s11943_s0 }
   0x2 LB: > { %s9701_s22 = sadd.s32 4294967295, %s9605_s21   ;;  %p7186_p0 = scmp.ge.s32.totalorder %s9605_s21, 1  ;;  %s9605_s21 = sphi %s9695_s21, %s26_s21  }
   0x3   : > { %p464_p1 = scmp.lt.s32.totalorder %s9605_s21, 3 }
   0x5   : > { %p465_p2 = pnand %p7186_p0, %p464_p1 }
   0x7   : > { %468 = sbr.rel (%p465_p2) target bundleno = 4344 (0x10f8), region = 84 }
   0xc   : > { %v9133_v0 = vld [vmem:[%s11944_s1 + $0x78] sm:$0xff]   ;;  %s7187_s25 = sshll.u32 %s9701_s22, 5  ;;  %v9135_v2 = vld [vmem:[%s11944_s1 + $0x70] sm:$0xff]   ;;  %v9137_v4 = vld [vmem:[%s11944_s1 + $0x68] sm:$0xff]   ;;  %s12029_s18 = sld [smem:[#allocation24_spill]]  ;;  %vm2181_vm0 = vcmask 523264  }
   0xd   : > { %v9134_v1 = vld [vmem:[%s11944_s1 + $0x38] sm:$0xff]   ;;  %7788 = vmatprep.subr.bf16.mxu0 %v9133_v0  ;;  %v9136_v3 = vld [vmem:[%s11944_s1 + $0x30] sm:$0xff]   ;;  %p515_p3 = scmp.lt.s32.totalorder %s7187_s25, 63  ;;  %v9138_v5 = vld [vmem:[%s11944_s1 + $0x28] sm:$0xff]   ;;  %p521_p4 = scmp.lt.s32.totalorder %s9701_s22, 1 }
   0xe   : > { %7789 = vmatpush3.bf16.msra.mxu0 %v9134_v1  ;;  %v9139_v6 = vld [vmem:[%s11944_s1 + $0x60] sm:$0xff]   ;;  %v9141_v8 = vld [vmem:[%s11944_s1 + $0x58] sm:$0xff]   ;;  %v9143_v10 = vld [vmem:[%s11944_s1 + $0x50] sm:$0xff]  }
   0xf   : > { %7790 = vmatprep.subr.bf16.mxu0 %v9135_v2  ;;  %s12168_s25 = smov (!%p515_p3, %s7187_s25), 63  ;;  %v9140_v7 = vld [vmem:[%s11944_s1 + $0x20] sm:$0xff]   ;;  %v9142_v9 = vld [vmem:[%s11944_s1 + $0x18] sm:$0xff]   ;;  %v9144_v12 = vld [vmem:[%s11944_s1 + $0x10] sm:$0xff]   ;;  %s12170_s22 = smov (!%p521_p4, %s9701_s22), 1 }
  0x10   : > { %s7787_s28 = sshll.u32 %s12168_s25, 3  ;;  %v9145_v13 = vld [vmem:[%s11944_s1 + $0x48] sm:$0xff]   ;;  %v9147_v15 = vld [vmem:[%s11944_s1 + $0x40] sm:$0xff]   ;;  %s7190_s26 = sshll.u32 %s12170_s22, 3 }
  0x11   : > { %v9146_v14 = vld [vmem:[%s11944_s1 + $0x8] sm:$0xff]   ;;  %v9148_v16 = vld [vmem:[%s11944_s1] sm:$0xff]   ;;  %s524_s29 = scalar_lea.vmem %s11959_s16, %s7190_s26 }
  0x12   : > { %7791 = vmatpush3.bf16.msra.mxu0 %v9136_v3  ;;  %s9736_s19 = scalar_lea.vmem %s12029_s18, %s7787_s28  ;;  %s9608_s18 = smov 64  }
  0x13   : > { %7792 = vmatprep.subr.bf16.mxu0 %v9137_v4  ;;  %v9151_v11 = vld [vmem:[%s9736_s19 + $0x4] ss:$8 sps:$4 sm:$0xff]   ;;  %v9149_v17 = vld [vmem:[%s9736_s19] ss:$8 sps:$4 sm:$0xff]   ;;  %v9152_v18 = vld [vmem:[%s9736_s19 + $0x14] ss:$8 sps:$4 sm:$0xff]  }
  0x14   : > { %879 = vmatprep.mubr.bf16.mxu0 %v9151_v11  ;;  %v9154_v19 = vld [vmem:[%s9736_s19 + $0x10] ss:$8 sps:$4 sm:$0xff]   ;;  %v9155_v20 = vld [vmem:[%s9736_s19 + $0x24] ss:$8 sps:$4 sm:$0xff]   ;;  %v9157_v21 = vld [vmem:[%s9736_s19 + $0x20] ss:$8 sps:$4 sm:$0xff]  }
  0x15   : > { %v9158_v22 = vld [vmem:[%s9736_s19 + $0x34] ss:$8 sps:$4 sm:$0xff]   ;;  %v9160_v23 = vld [vmem:[%s9736_s19 + $0x30] ss:$8 sps:$4 sm:$0xff]   ;;  %v9161_v24 = vld [vmem:[%s9736_s19 + $0x44] ss:$8 sps:$4 sm:$0xff]  }
  0x16   : > { %7793 = vmatpush3.bf16.msra.mxu0 %v9138_v5  ;;  %v9163_v25 = vld [vmem:[%s9736_s19 + $0x40] ss:$8 sps:$4 sm:$0xff]   ;;  %v9164_v26 = vld [vmem:[%s9736_s19 + $0x54] ss:$8 sps:$4 sm:$0xff]   ;;  %v9166_v27 = vld [vmem:[%s9736_s19 + $0x50] ss:$8 sps:$4 sm:$0xff]  }
  0x17   : > { %7794 = vmatprep.subr.bf16.mxu0 %v9139_v6  ;;  %v9167_v28 = vld [vmem:[%s9736_s19 + $0x64] ss:$8 sps:$4 sm:$0xff]   ;;  %v9169_v29 = vld [vmem:[%s9736_s19 + $0x60] ss:$8 sps:$4 sm:$0xff]   ;;  %v9170_v30 = vld [vmem:[%s9736_s19 + $0x74] ss:$8 sps:$4 sm:$0xff]  }
  0x18   : > { %v9172_v31 = vld [vmem:[%s9736_s19 + $0x70] ss:$8 sps:$4 sm:$0xff]   ;;  %v9173_v32 = vld [vmem:[%s9736_s19 + $0x84] ss:$8 sps:$4 sm:$0xff]   ;;  %v9175_v33 = vld [vmem:[%s9736_s19 + $0x80] ss:$8 sps:$4 sm:$0xff]  }
  0x19   : > { %v9176_v34 = vld [vmem:[%s9736_s19 + $0x94] ss:$8 sps:$4 sm:$0xff]   ;;  %v9178_v35 = vld [vmem:[%s9736_s19 + $0x90] ss:$8 sps:$4 sm:$0xff]   ;;  %v9179_v36 = vld [vmem:[%s9736_s19 + $0xa4] ss:$8 sps:$4 sm:$0xff]  }
  0x1a   : > { %7795 = vmatpush3.bf16.msra.mxu0 %v9140_v7  ;;  %v9181_v37 = vld [vmem:[%s9736_s19 + $0xa0] ss:$8 sps:$4 sm:$0xff]   ;;  %v9182_v38 = vld [vmem:[%s9736_s19 + $0xb4] ss:$8 sps:$4 sm:$0xff]   ;;  %v9184_v39 = vld [vmem:[%s9736_s19 + $0xb0] ss:$8 sps:$4 sm:$0xff]  }
  0x1b   : > { %7796 = vmatprep.subr.bf16.mxu0 %v9141_v8  ;;  %v9185_v40 = vld [vmem:[%s9736_s19 + $0xc4] ss:$8 sps:$4 sm:$0xff]   ;;  %v9187_v41 = vld [vmem:[%s9736_s19 + $0xc0] ss:$8 sps:$4 sm:$0xff]   ;;  %v9188_v42 = vld [vmem:[%s9736_s19 + $0xd4] ss:$8 sps:$4 sm:$0xff]  }
  0x1c   : > { %v9190_v43 = vld [vmem:[%s9736_s19 + $0xd0] ss:$8 sps:$4 sm:$0xff]   ;;  %v9191_v44 = vld [vmem:[%s9736_s19 + $0xe4] ss:$8 sps:$4 sm:$0xff]   ;;  %v9193_v45 = vld [vmem:[%s9736_s19 + $0xe0] ss:$8 sps:$4 sm:$0xff]  }
  0x1d   : > { %v9194_v46 = vld [vmem:[%s9736_s19 + $0xf4] ss:$8 sps:$4 sm:$0xff]   ;;  %v9196_v47 = vld [vmem:[%s9736_s19 + $0xf0] ss:$8 sps:$4 sm:$0xff]  }
  0x1e   : > { %7797 = vmatpush3.bf16.msra.mxu0 %v9142_v9 }
  0x1f   : > { %7798 = vmatprep.subr.bf16.mxu0 %v9143_v10 }
  0x22   : > { %7799 = vmatpush3.bf16.msra.mxu0 %v9144_v12 }
  0x23   : > { %7800 = vmatprep.subr.bf16.mxu0 %v9145_v13 }
  0x26   : > { %7801 = vmatpush3.bf16.msra.mxu0 %v9146_v14 }
  0x27   : > { %7802 = vmatprep.subr.bf16.mxu0 %v9147_v15 }
  0x2a   : > { %7803 = vmatpush3.bf16.msra.mxu0 %v9148_v16 }
  0x2d   : > { %880 = vmatmul.mubr.bf16.vlgmr.msra.gmra.mxu0 %v9149_v17 }
  0x2e   : > { %887 = vmatprep.mubr.bf16.mxu0 %v9152_v18 }
  0x35   : > { %888 = vmatmul.mubr.bf16.gmra.mxu0 %v9154_v19 }
  0x36   : > { %895 = vmatprep.mubr.bf16.mxu0 %v9155_v20 }
  0x3d   : > { %896 = vmatmul.mubr.bf16.gmra.mxu0 %v9157_v21  ;;  %v9199_v21 = vld [vmem:[%s11945_s2 + $0x4] ss:$8 sps:$4 sm:$0xff]  }
  0x3e   : > { %903 = vmatprep.mubr.bf16.mxu0 %v9158_v22  ;;  %1136 = vmatprep.mubr.bf16.mxu1 %v9199_v21 }
  0x45   : > { %904 = vmatmul.mubr.bf16.gmra.mxu0 %v9160_v23 }
  0x46   : > { %911 = vmatprep.mubr.bf16.mxu0 %v9161_v24  ;;  %v9202_v24 = vld [vmem:[%s11945_s2 + $0x104] ss:$8 sps:$4 sm:$0xff]  }
  0x4d   : > { %912 = vmatmul.mubr.bf16.gmra.mxu0 %v9163_v25 }
  0x4e   : > { %919 = vmatprep.mubr.bf16.mxu0 %v9164_v26 }
  0x55   : > { %920 = vmatmul.mubr.bf16.gmra.mxu0 %v9166_v27 }
  0x56   : > { %927 = vmatprep.mubr.bf16.mxu0 %v9167_v28 }
  0x5d   : > { %928 = vmatmul.mubr.bf16.gmra.mxu0 %v9169_v29 }
  0x5e   : > { %935 = vmatprep.mubr.bf16.mxu0 %v9170_v30 }
  0x65   : > { %936 = vmatmul.mubr.bf16.gmra.mxu0 %v9172_v31 }
  0x66   : > { %943 = vmatprep.mubr.bf16.mxu0 %v9173_v32 }
  0x6d   : > { %944 = vmatmul.mubr.bf16.gmra.mxu0 %v9175_v33 }
  0x6e   : > { %951 = vmatprep.mubr.bf16.mxu0 %v9176_v34 }
  0x75   : > { %952 = vmatmul.mubr.bf16.gmra.mxu0 %v9178_v35 }
  0x76   : > { %959 = vmatprep.mubr.bf16.mxu0 %v9179_v36 }
  0x7d   : > { %960 = vmatmul.mubr.bf16.gmra.mxu0 %v9181_v37 }
  0x7e   : > { %967 = vmatprep.mubr.bf16.mxu0 %v9182_v38 }
  0x85   : > { %968 = vmatmul.mubr.bf16.gmra.mxu0 %v9184_v39 }
  0x86   : > { %975 = vmatprep.mubr.bf16.mxu0 %v9185_v40 }
  0x8d   : > { %976 = vmatmul.mubr.bf16.gmra.mxu0 %v9187_v41 }
  0x8e   : > { %983 = vmatprep.mubr.bf16.mxu0 %v9188_v42 }
  0x95   : > { %984 = vmatmul.mubr.bf16.gmra.mxu0 %v9190_v43 }
  0x96   : > { %991 = vmatprep.mubr.bf16.mxu0 %v9191_v44 }
  0x9d   : > { %992 = vmatmul.mubr.bf16.gmra.mxu0 %v9193_v45 }
  0x9e   : > { %999 = vmatprep.mubr.bf16.mxu0 %v9194_v46 }
  0xa5   : > { %1000 = vmatmul.mubr.bf16.gmra.mxu0 %v9196_v47 }
  0xa6   : > { %1616 = vmatprep.mubr.bf16.mxu0 %v9202_v24 }
  0xed   : > { %v7804_v48 = vpop.f32.mrf.mxu0 }
  0xef   : > { %v7805_v49 = vpop.f32.mrf.mxu0 }
  0xf0   : > { %v7806_v50 = vadd.f32 %v7805_v49, %v7804_v48 }
  0xf1   : > { %v7807_v51 = vpop.f32.mrf.mxu0 }
  0xf2   : > { %v1008_v55 = vmax.f32 %v7806_v50, 0.0 }
  0xf3   : > { %v7808_v52 = vpop.f32.mrf.mxu0 }
  0xf4   : > { %v7809_v53 = vadd.f32 %v7808_v52, %v7807_v51 }
  0xf5   : > { %v7810_v54 = vpop.f32.mrf.mxu0 }
  0xf6   : > { %v1009_v56 = vmax.f32 %v7809_v53, 0.0 }
  0xf7   : > { %v7811_v57 = vpop.f32.mrf.mxu0 }
  0xf8   : > { %v9791_v58 = vpack.c.bf16 %v1009_v56, %v1008_v55  ;;  %v7812_v59 = vadd.f32 %v7811_v57, %v7810_v54 }
  0xf9   : > { %v7813_v60 = vpop.f32.mrf.mxu0 }
  0xfa   : > { %v1010_v0 = vmax.f32 %v7812_v59, 0.0 }
  0xfb   : > { %v7814_v61 = vpop.f32.mrf.mxu0 }
  0xfc   : > { %v7815_v62 = vadd.f32 %v7814_v61, %v7813_v60 }
  0xfd   : > { %v7816_v63 = vpop.f32.mrf.mxu0 }
  0xfe   : > { %v1011_v1 = vmax.f32 %v7815_v62, 0.0 }
  0xff   : > { %v7817_v2 = vpop.f32.mrf.mxu0 }
 0x100   : > { %v9793_v3 = vpack.c.bf16 %v1011_v1, %v1010_v0  ;;  %v7818_v4 = vadd.f32 %v7817_v2, %v7816_v63 }
 0x101   : > { %v7819_v5 = vpop.f32.mrf.mxu0 }
 0x102   : > { %v1012_v9 = vmax.f32 %v7818_v4, 0.0 }
 0x103   : > { %v7820_v6 = vpop.f32.mrf.mxu0 }
 0x104   : > { %v7821_v7 = vadd.f32 %v7820_v6, %v7819_v5 }
 0x105   : > { %v7822_v8 = vpop.f32.mrf.mxu0 }
 0x106   : > { %v1013_v10 = vmax.f32 %v7821_v7, 0.0 }
 0x107   : > { %v7823_v11 = vpop.f32.mrf.mxu0 }
 0x108   : > { %v9795_v12 = vpack.c.bf16 %v1013_v10, %v1012_v9  ;;  %v7824_v13 = vadd.f32 %v7823_v11, %v7822_v8 }
 0x109   : > { %v7825_v14 = vpop.f32.mrf.mxu0 }
 0x10a   : > { %v1014_v18 = vmax.f32 %v7824_v13, 0.0 }
 0x10b   : > { %v7826_v15 = vpop.f32.mrf.mxu0 }
 0x10c   : > { %v7827_v16 = vadd.f32 %v7826_v15, %v7825_v14 }
 0x10d   : > { %v7828_v17 = vpop.f32.mrf.mxu0 }
 0x10e   : > { %v1015_v19 = vmax.f32 %v7827_v16, 0.0 }
 0x10f   : > { %v7829_v20 = vpop.f32.mrf.mxu0 }
 0x110   : > { %v9800_v22 = vpack.c.bf16 %v1015_v19, %v1014_v18  ;;  %v7830_v23 = vadd.f32 %v7829_v20, %v7828_v17 }
 0x111   : > { %v7831_v25 = vpop.f32.mrf.mxu0 }
 0x112   : > { %v1016_v29 = vmax.f32 %v7830_v23, 0.0 }
 0x113   : > { %v7832_v26 = vpop.f32.mrf.mxu0 }
 0x114   : > { %v7833_v27 = vadd.f32 %v7832_v26, %v7831_v25 }
 0x115   : > { %v7834_v28 = vpop.f32.mrf.mxu0 }
 0x116   : > { %v1017_v30 = vmax.f32 %v7833_v27, 0.0 }
 0x117   : > { %v7835_v31 = vpop.f32.mrf.mxu0 }
 0x118   : > { %v9805_v32 = vpack.c.bf16 %v1017_v30, %v1016_v29  ;;  %v7836_v33 = vadd.f32 %v7835_v31, %v7834_v28 }
 0x119   : > { %v7837_v34 = vpop.f32.mrf.mxu0 }
 0x11a   : > { %v1018_v38 = vmax.f32 %v7836_v33, 0.0 }
 0x11b   : > { %v7838_v35 = vpop.f32.mrf.mxu0 }
 0x11c   : > { %v7839_v36 = vadd.f32 %v7838_v35, %v7837_v34 }
 0x11d   : > { %v7840_v37 = vpop.f32.mrf.mxu0 }
 0x11e   : > { %v1019_v39 = vmax.f32 %v7839_v36, 0.0 }
 0x11f   : > { %v7841_v40 = vpop.f32.mrf.mxu0 }
 0x120   : > { %v9807_v41 = vpack.c.bf16 %v1019_v39, %v1018_v38  ;;  %v7842_v42 = vadd.f32 %v7841_v40, %v7840_v37 }
 0x121   : > { %v7843_v43 = vpop.f32.mrf.mxu0 }
 0x122   : > { %v1020_v47 = vmax.f32 %v7842_v42, 0.0 }
 0x123   : > { %v7844_v44 = vpop.f32.mrf.mxu0 }
 0x124   : > { %v7845_v45 = vadd.f32 %v7844_v44, %v7843_v43 }
 0x125   : > { %v7846_v46 = vpop.f32.mrf.mxu0 }
 0x126   : > { %v1021_v48 = vmax.f32 %v7845_v45, 0.0 }
 0x127   : > { %v7847_v49 = vpop.f32.mrf.mxu0 }
 0x128   : > { %v9809_v50 = vpack.c.bf16 %v1021_v48, %v1020_v47  ;;  %v7848_v51 = vadd.f32 %v7847_v49, %v7846_v46 }
 0x129   : > { %v7849_v52 = vpop.f32.mrf.mxu0 }
 0x12a   : > { %v1022_v56 = vmax.f32 %v7848_v51, 0.0 }
 0x12b   : > { %v7850_v53 = vpop.f32.mrf.mxu0 }
 0x12c   : > { %v7851_v54 = vadd.f32 %v7850_v53, %v7849_v52 }
 0x12d   : > { %v7852_v55 = vpop.f32.mrf.mxu0 }
 0x12e   : > { %v1023_v57 = vmax.f32 %v7851_v54, 0.0 }
 0x12f   : > { %v7853_v59 = vpop.f32.mrf.mxu0 }
 0x130   : > { %v9811_v60 = vpack.c.bf16 %v1023_v57, %v1022_v56  ;;  %v7854_v61 = vadd.f32 %v7853_v59, %v7852_v55 }
 0x131   : > { %v7855_v62 = vpop.f32.mrf.mxu0 }
 0x132   : > { %v1024_v2 = vmax.f32 %v7854_v61, 0.0 }
 0x133   : > { %v7856_v63 = vpop.f32.mrf.mxu0 }
 0x134   : > { %v7857_v0 = vadd.f32 %v7856_v63, %v7855_v62 }
 0x135   : > { %v7858_v1 = vpop.f32.mrf.mxu0 }
 0x136   : > { %v1025_v4 = vmax.f32 %v7857_v0, 0.0 }
 0x137   : > { %v7859_v5 = vpop.f32.mrf.mxu0 }
 0x138   : > { %v9813_v6 = vpack.c.bf16 %v1025_v4, %v1024_v2  ;;  %v7860_v7 = vadd.f32 %v7859_v5, %v7858_v1 }
 0x139   : > { %v7861_v8 = vpop.f32.mrf.mxu0 }
 0x13a   : > { %v1026_v13 = vmax.f32 %v7860_v7, 0.0 }
 0x13b   : > { %v7862_v9 = vpop.f32.mrf.mxu0 }
 0x13c   : > { %v7863_v10 = vadd.f32 %v7862_v9, %v7861_v8 }
 0x13d   : > { %v9815_v11 = vpop.f32.mrf.mxu0 }
 0x13e   : > { %v1027_v14 = vmax.f32 %v7863_v10, 0.0 }
 0x13f   : > { %v7865_v15 = vpop.f32.mrf.mxu0 }
 0x140   : > { %v9817_v16 = vpack.c.bf16 %v1027_v14, %v1026_v13  ;;  %v7866_v7 = vadd.f32 %v7865_v15, %v9815_v11  ;;  %v9197_v11 = vld [vmem:[%s11945_s2] ss:$8 sps:$4 sm:$0xff]  }
 0x141   : > { %v7867_v17 = vpop.f32.mrf.mxu0  ;;  %v9200_v15 = vld [vmem:[%s11945_s2 + $0x100] ss:$8 sps:$4 sm:$0xff]  }
 0x142   : > { %v1028_v13 = vmax.f32 %v7866_v7, 0.0  ;;  %v9251_v7 = vld [vmem:[%s11945_s2 + $0xd4] ss:$8 sps:$4 sm:$0xff]  }
 0x143   : > { %v7868_v18 = vpop.f32.mrf.mxu0 }
 0x144   : > { %v7869_v2 = vadd.f32 %v7868_v18, %v7867_v17  ;;  %v9203_v17 = vld [vmem:[%s11945_s2 + $0x14] ss:$8 sps:$4 sm:$0xff]  }
 0x145   : > { %v7870_v19 = vpop.f32.mrf.mxu0  ;;  %v9206_v18 = vld [vmem:[%s11945_s2 + $0x114] ss:$8 sps:$4 sm:$0xff]  }
 0x146   : > { %v1029_v9 = vmax.f32 %v7869_v2, 0.0  ;;  %v9250_v2 = vld [vmem:[%s11945_s2 + $0xc4] ss:$8 sps:$4 sm:$0xff]  }
 0x147   : > { %v7871_v20 = vpop.f32.mrf.mxu0 }
 0x148   : > { %v7872_v0 = vadd.f32 %v7871_v20, %v7870_v19  ;;  %v9848_v14 = vpack.c.bf16 %v1029_v9, %v1028_v13  ;;  %v9205_v19 = vld [vmem:[%s11945_s2 + $0x10] ss:$8 sps:$4 sm:$0xff]   ;;  %v9254_v9 = vld [vmem:[%s11945_s2 + $0xe4] ss:$8 sps:$4 sm:$0xff]   ;;  %v9256_v13 = vld [vmem:[%s11945_s2 + $0xe0] ss:$8 sps:$4 sm:$0xff]  }
 0x149   : > { %v7873_v21 = vpop.f32.mrf.mxu0  ;;  %v9208_v20 = vld [vmem:[%s11945_s2 + $0x110] ss:$8 sps:$4 sm:$0xff]  }
 0x14a   : > { %v1030_v8 = vmax.f32 %v7872_v0, 0.0  ;;  %v9245_v0 = vld [vmem:[%s11945_s2 + $0xb4] ss:$8 sps:$4 sm:$0xff]  }
 0x14b   : > { %v7874_v23 = vpop.f32.mrf.mxu0 }
 0x14c   : > { %v7875_v61 = vadd.f32 %v7874_v23, %v7873_v21  ;;  %v9209_v21 = vld [vmem:[%s11945_s2 + $0x24] ss:$8 sps:$4 sm:$0xff]  }
 0x14d   : > { %v7876_v24 = vpop.f32.mrf.mxu0  ;;  %v9212_v23 = vld [vmem:[%s11945_s2 + $0x124] ss:$8 sps:$4 sm:$0xff]  }
 0x14e   : > { %v1031_v4 = vmax.f32 %v7875_v61, 0.0  ;;  %v9242_v61 = vld [vmem:[%s11945_s2 + $0xa4] ss:$8 sps:$4 sm:$0xff]  }
 0x14f   : > { %v7877_v25 = vpop.f32.mrf.mxu0 }
 0x150   : > { %v7878_v57 = vadd.f32 %v7877_v25, %v7876_v24  ;;  %v9842_v10 = vpack.c.bf16 %v1031_v4, %v1030_v8  ;;  %v9211_v24 = vld [vmem:[%s11945_s2 + $0x20] ss:$8 sps:$4 sm:$0xff]   ;;  %v9253_v8 = vld [vmem:[%s11945_s2 + $0xd0] ss:$8 sps:$4 sm:$0xff]  }
 0x151   : > { %v7879_v26 = vpop.f32.mrf.mxu0  ;;  %v9214_v25 = vld [vmem:[%s11945_s2 + $0x120] ss:$8 sps:$4 sm:$0xff]  }
 0x152   : > { %v1032_v1 = vmax.f32 %v7878_v57, 0.0  ;;  %v9241_v57 = vld [vmem:[%s11945_s2 + $0x90] ss:$8 sps:$4 sm:$0xff]   ;;  %v9248_v4 = vld [vmem:[%s11945_s2 + $0xc0] ss:$8 sps:$4 sm:$0xff]  }
 0x153   : > { %v7880_v27 = vpop.f32.mrf.mxu0 }
 0x154   : > { %v7881_v54 = vadd.f32 %v7880_v27, %v7879_v26  ;;  %v9215_v26 = vld [vmem:[%s11945_s2 + $0x34] ss:$8 sps:$4 sm:$0xff]  }
 0x155   : > { %v7882_v28 = vpop.f32.mrf.mxu0  ;;  %v9218_v27 = vld [vmem:[%s11945_s2 + $0x134] ss:$8 sps:$4 sm:$0xff]  }
 0x156   : > { %v1033_v62 = vmax.f32 %v7881_v54, 0.0  ;;  %v9239_v54 = vld [vmem:[%s11945_s2 + $0x94] ss:$8 sps:$4 sm:$0xff]  }
 0x157   : > { %v7883_v29 = vpop.f32.mrf.mxu0 }
 0x158   : > { %v7884_v51 = vadd.f32 %v7883_v29, %v7882_v28  ;;  %v9835_v5 = vpack.c.bf16 %v1033_v62, %v1032_v1  ;;  %v9217_v28 = vld [vmem:[%s11945_s2 + $0x30] ss:$8 sps:$4 sm:$0xff]   ;;  %v9244_v62 = vld [vmem:[%s11945_s2 + $0xa0] ss:$8 sps:$4 sm:$0xff]  }
 0x159   : > { %v7885_v30 = vpop.f32.mrf.mxu0  ;;  %v9220_v29 = vld [vmem:[%s11945_s2 + $0x130] ss:$8 sps:$4 sm:$0xff]  }
 0x15a   : > { %v1034_v59 = vmax.f32 %v7884_v51, 0.0  ;;  %v9236_v51 = vld [vmem:[%s11945_s2 + $0x80] ss:$8 sps:$4 sm:$0xff]   ;;  %v9247_v1 = vld [vmem:[%s11945_s2 + $0xb0] ss:$8 sps:$4 sm:$0xff]  }
 0x15b   : > { %v7886_v31 = vpop.f32.mrf.mxu0 }
 0x15c   : > { %v7887_v46 = vadd.f32 %v7886_v31, %v7885_v30  ;;  %v9223_v30 = vld [vmem:[%s11945_s2 + $0x44] ss:$8 sps:$4 sm:$0xff]  }
 0x15d   : > { %v7888_v33 = vpop.f32.mrf.mxu0  ;;  %v9226_v31 = vld [vmem:[%s11945_s2 + $0x184] ss:$8 sps:$4 sm:$0xff]  }
 0x15e   : > { %v1035_v55 = vmax.f32 %v7887_v46, 0.0  ;;  %v9235_v46 = vld [vmem:[%s11945_s2 + $0x70] ss:$8 sps:$4 sm:$0xff]  }
 0x15f   : > { %v7889_v34 = vpop.f32.mrf.mxu0 }
 0x160   : > { %v7890_v44 = vadd.f32 %v7889_v34, %v7888_v33  ;;  %v9829_v63 = vpack.c.bf16 %v1035_v55, %v1034_v59  ;;  %v9221_v33 = vld [vmem:[%s11945_s2 + $0x40] ss:$8 sps:$4 sm:$0xff]   ;;  %v9290_v55 = vld [vmem:[%s11945_s2 + $0x214] ss:$8 sps:$4 sm:$0xff]   ;;  %v9292_v59 = vld [vmem:[%s11945_s2 + $0x210] ss:$8 sps:$4 sm:$0xff]  }
 0x161   : > { %v7891_v35 = vpop.f32.mrf.mxu0  ;;  %v9224_v34 = vld [vmem:[%s11945_s2 + $0x180] ss:$8 sps:$4 sm:$0xff]  }
 0x162   : > { %v1036_v52 = vmax.f32 %v7890_v44, 0.0  ;;  %v9233_v44 = vld [vmem:[%s11945_s2 + $0x74] ss:$8 sps:$4 sm:$0xff]  }
 0x163   : > { %v7892_v36 = vpop.f32.mrf.mxu0 }
 0x164   : > { %v7893_v40 = vadd.f32 %v7892_v36, %v7891_v35  ;;  %v9227_v35 = vld [vmem:[%s11945_s2 + $0x54] ss:$8 sps:$4 sm:$0xff]  }
 0x165   : > { %v7894_v37 = vpop.f32.mrf.mxu0  ;;  %v9266_v36 = vld [vmem:[%s11945_s2 + $0x194] ss:$8 sps:$4 sm:$0xff]  }
 0x166   : > { %v1037_v47 = vmax.f32 %v7893_v40, 0.0  ;;  %v9272_v40 = vld [vmem:[%s11945_s2 + $0x1a4] ss:$8 sps:$4 sm:$0xff]  }
 0x167   : > { %v7895_v38 = vpop.f32.mrf.mxu0 }
 0x168   : > { %v7896_v42 = vadd.f32 %v7895_v38, %v7894_v37  ;;  %v9821_v56 = vpack.c.bf16 %v1037_v47, %v1036_v52  ;;  %v9229_v37 = vld [vmem:[%s11945_s2 + $0x50] ss:$8 sps:$4 sm:$0xff]   ;;  %v9284_v52 = vld [vmem:[%s11945_s2 + $0x200] ss:$8 sps:$4 sm:$0xff]  }
 0x169   : > { %v7897_v39 = vpop.f32.mrf.mxu0  ;;  %v9268_v38 = vld [vmem:[%s11945_s2 + $0x190] ss:$8 sps:$4 sm:$0xff]  }
 0x16a   : > { %v1038_v48 = vmax.f32 %v7896_v42, 0.0  ;;  %v9232_v42 = vld [vmem:[%s11945_s2 + $0x60] ss:$8 sps:$4 sm:$0xff]   ;;  %v9280_v47 = vld [vmem:[%s11945_s2 + $0x1b0] ss:$8 sps:$4 sm:$0xff]  }
 0x16b   : > { %v7898_v43 = vpop.f32.mrf.mxu0 }
 0x16c   : > { %v7899_v45 = vadd.f32 %v7898_v43, %v7897_v39  ;;  %v9230_v39 = vld [vmem:[%s11945_s2 + $0x64] ss:$8 sps:$4 sm:$0xff]   ;;  %v9274_v43 = vld [vmem:[%s11945_s2 + $0x1a0] ss:$8 sps:$4 sm:$0xff]  }
 0x16e   : > { %v1039_v49 = vmax.f32 %v7899_v45, 0.0  ;;  %v9278_v45 = vld [vmem:[%s11945_s2 + $0x1b4] ss:$8 sps:$4 sm:$0xff]  }
 0x170   : > { %v9819_v53 = vpack.c.bf16 %v1039_v49, %v1038_v48  ;;  %v9238_v48 = vld [vmem:[%s11945_s2 + $0x84] ss:$8 sps:$4 sm:$0xff]  }
 0x171   : > { %v9286_v49 = vld [vmem:[%s11945_s2 + $0x204] ss:$8 sps:$4 sm:$0xff]  }
 0x172   : > { %7900 = vmatprep.subr.bf16.mxu1 %v9819_v53  ;;  %8060 = vmatprep.subr.bf16.mxu0 %v9819_v53 }
 0x173   : > { %7901 = vmatpush3.bf16.msra.mxu1 %v9811_v60  ;;  %8061 = vmatpush3.bf16.msra.mxu0 %v9811_v60 }
 0x174   : > { %7902 = vmatprep.subr.bf16.mxu1 %v9821_v56  ;;  %8062 = vmatprep.subr.bf16.mxu0 %v9821_v56 }
 0x177   : > { %7903 = vmatpush3.bf16.msra.mxu1 %v9809_v50  ;;  %8063 = vmatpush3.bf16.msra.mxu0 %v9809_v50 }
 0x178   : > { %7904 = vmatprep.subr.bf16.mxu1 %v9829_v63  ;;  %8064 = vmatprep.subr.bf16.mxu0 %v9829_v63 }
 0x17b   : > { %7905 = vmatpush3.bf16.msra.mxu1 %v9807_v41  ;;  %8065 = vmatpush3.bf16.msra.mxu0 %v9807_v41 }
 0x17c   : > { %7906 = vmatprep.subr.bf16.mxu1 %v9835_v5  ;;  %8066 = vmatprep.subr.bf16.mxu0 %v9835_v5 }
 0x17f   : > { %7907 = vmatpush3.bf16.msra.mxu1 %v9805_v32  ;;  %8067 = vmatpush3.bf16.msra.mxu0 %v9805_v32 }
 0x180   : > { %7908 = vmatprep.subr.bf16.mxu1 %v9842_v10  ;;  %8068 = vmatprep.subr.bf16.mxu0 %v9842_v10 }
 0x183   : > { %7909 = vmatpush3.bf16.msra.mxu1 %v9800_v22  ;;  %8069 = vmatpush3.bf16.msra.mxu0 %v9800_v22 }
 0x184   : > { %7910 = vmatprep.subr.bf16.mxu1 %v9848_v14  ;;  %8070 = vmatprep.subr.bf16.mxu0 %v9848_v14 }
 0x187   : > { %7911 = vmatpush3.bf16.msra.mxu1 %v9795_v12  ;;  %8071 = vmatpush3.bf16.msra.mxu0 %v9795_v12 }
 0x188   : > { %7912 = vmatprep.subr.bf16.mxu1 %v9817_v16  ;;  %8072 = vmatprep.subr.bf16.mxu0 %v9817_v16 }
 0x18b   : > { %7913 = vmatpush3.bf16.msra.mxu1 %v9793_v3  ;;  %8073 = vmatpush3.bf16.msra.mxu0 %v9793_v3 }
 0x18c   : > { %7914 = vmatprep.subr.bf16.mxu1 %v9813_v6  ;;  %8074 = vmatprep.subr.bf16.mxu0 %v9813_v6 }
 0x18f   : > { %7915 = vmatpush3.bf16.msra.mxu1 %v9791_v58  ;;  %8075 = vmatpush3.bf16.msra.mxu0 %v9791_v58 }
 0x190   : > { %7940 = vmatprep.subr.bf16.mxu1 %v9819_v53  ;;  %8140 = vmatprep.subr.bf16.mxu0 %v9819_v53 }
 0x192   : > { %1137 = vmatmul.mubr.bf16.vlgmr.msra.gmra.mxu1 %v9197_v11  ;;  %1617 = vmatmul.mubr.bf16.vlgmr.msra.gmra.mxu0 %v9200_v15  ;;  %v9257_v11 = vld [vmem:[%s11945_s2 + $0xf4] ss:$8 sps:$4 sm:$0xff]   ;;  %v9259_v15 = vld [vmem:[%s11945_s2 + $0xf0] ss:$8 sps:$4 sm:$0xff]  }
 0x193   : > { %7941 = vmatpush3.bf16.msra.mxu1 %v9811_v60  ;;  %8141 = vmatpush3.bf16.msra.mxu0 %v9811_v60 }
 0x194   : > { %7942 = vmatprep.subr.bf16.mxu1 %v9821_v56  ;;  %8142 = vmatprep.subr.bf16.mxu0 %v9821_v56 }
 0x195   : > { %1144 = vmatprep.mubr.bf16.mxu1 %v9203_v17  ;;  %1624 = vmatprep.mubr.bf16.mxu0 %v9206_v18  ;;  %v9262_v17 = vld [vmem:[%s11945_s2 + $0x144] ss:$8 sps:$4 sm:$0xff]   ;;  %v9260_v18 = vld [vmem:[%s11945_s2 + $0x140] ss:$8 sps:$4 sm:$0xff]  }
 0x197   : > { %7943 = vmatpush3.bf16.msra.mxu1 %v9809_v50  ;;  %8143 = vmatpush3.bf16.msra.mxu0 %v9809_v50 }
 0x198   : > { %7944 = vmatprep.subr.bf16.mxu1 %v9829_v63  ;;  %8144 = vmatprep.subr.bf16.mxu0 %v9829_v63 }
 0x19a   : > { %1145 = vmatmul.mubr.bf16.gmra.mxu1 %v9205_v19  ;;  %1625 = vmatmul.mubr.bf16.gmra.mxu0 %v9208_v20  ;;  %v9263_v19 = vld [vmem:[%s11945_s2 + $0x154] ss:$8 sps:$4 sm:$0xff]   ;;  %v9265_v20 = vld [vmem:[%s11945_s2 + $0x150] ss:$8 sps:$4 sm:$0xff]  }
 0x19b   : > { %7945 = vmatpush3.bf16.msra.mxu1 %v9807_v41  ;;  %8145 = vmatpush3.bf16.msra.mxu0 %v9807_v41 }
 0x19c   : > { %7946 = vmatprep.subr.bf16.mxu1 %v9835_v5  ;;  %8146 = vmatprep.subr.bf16.mxu0 %v9835_v5 }
 0x19d   : > { %1152 = vmatprep.mubr.bf16.mxu1 %v9209_v21  ;;  %1632 = vmatprep.mubr.bf16.mxu0 %v9212_v23  ;;  %v9269_v21 = vld [vmem:[%s11945_s2 + $0x164] ss:$8 sps:$4 sm:$0xff]   ;;  %v9271_v23 = vld [vmem:[%s11945_s2 + $0x160] ss:$8 sps:$4 sm:$0xff]  }
 0x19f   : > { %7947 = vmatpush3.bf16.msra.mxu1 %v9805_v32  ;;  %8147 = vmatpush3.bf16.msra.mxu0 %v9805_v32 }
 0x1a0   : > { %7948 = vmatprep.subr.bf16.mxu1 %v9842_v10  ;;  %8148 = vmatprep.subr.bf16.mxu0 %v9842_v10 }
 0x1a2   : > { %1153 = vmatmul.mubr.bf16.gmra.mxu1 %v9211_v24  ;;  %1633 = vmatmul.mubr.bf16.gmra.mxu0 %v9214_v25  ;;  %v9275_v24 = vld [vmem:[%s11945_s2 + $0x174] ss:$8 sps:$4 sm:$0xff]   ;;  %v9277_v25 = vld [vmem:[%s11945_s2 + $0x170] ss:$8 sps:$4 sm:$0xff]  }
 0x1a3   : > { %7949 = vmatpush3.bf16.msra.mxu1 %v9800_v22  ;;  %8149 = vmatpush3.bf16.msra.mxu0 %v9800_v22 }
 0x1a4   : > { %7950 = vmatprep.subr.bf16.mxu1 %v9848_v14  ;;  %8150 = vmatprep.subr.bf16.mxu0 %v9848_v14 }
 0x1a5   : > { %1160 = vmatprep.mubr.bf16.mxu1 %v9215_v26  ;;  %1640 = vmatprep.mubr.bf16.mxu0 %v9218_v27  ;;  %v9283_v26 = vld [vmem:[%s11945_s2 + $0x1c4] ss:$8 sps:$4 sm:$0xff]   ;;  %v9281_v27 = vld [vmem:[%s11945_s2 + $0x1c0] ss:$8 sps:$4 sm:$0xff]  }
 0x1a7   : > { %7951 = vmatpush3.bf16.msra.mxu1 %v9795_v12  ;;  %8151 = vmatpush3.bf16.msra.mxu0 %v9795_v12 }
 0x1a8   : > { %7952 = vmatprep.subr.bf16.mxu1 %v9817_v16  ;;  %8152 = vmatprep.subr.bf16.mxu0 %v9817_v16 }
 0x1aa   : > { %1161 = vmatmul.mubr.bf16.gmra.mxu1 %v9217_v28  ;;  %1641 = vmatmul.mubr.bf16.gmra.mxu0 %v9220_v29  ;;  %v9287_v28 = vld [vmem:[%s11945_s2 + $0x1d4] ss:$8 sps:$4 sm:$0xff]   ;;  %v9289_v29 = vld [vmem:[%s11945_s2 + $0x1d0] ss:$8 sps:$4 sm:$0xff]  }
 0x1ab   : > { %7953 = vmatpush3.bf16.msra.mxu1 %v9793_v3  ;;  %8153 = vmatpush3.bf16.msra.mxu0 %v9793_v3 }
 0x1ac   : > { %7954 = vmatprep.subr.bf16.mxu1 %v9813_v6  ;;  %8154 = vmatprep.subr.bf16.mxu0 %v9813_v6 }
 0x1ad   : > { %1250 = vmatprep.mubr.bf16.mxu1 %v9223_v30  ;;  %1860 = vmatprep.mubr.bf16.mxu0 %v9226_v31  ;;  %v9293_v30 = vld [vmem:[%s11945_s2 + $0x1e4] ss:$8 sps:$4 sm:$0xff]  }
 0x1af   : > { %7955 = vmatpush3.bf16.msra.mxu1 %v9791_v58  ;;  %8155 = vmatpush3.bf16.msra.mxu0 %v9791_v58 }
 0x1b0   : > { %7980 = vmatprep.subr.bf16.mxu1 %v9819_v53  ;;  %8220 = vmatprep.subr.bf16.mxu0 %v9819_v53 }
 0x1b2   : > { %1251 = vmatmul.mubr.bf16.vlgmr.msra.gmra.mxu1 %v9221_v33  ;;  %1861 = vmatmul.mubr.bf16.vlgmr.msra.gmra.mxu0 %v9224_v34 }
 0x1b3   : > { %7981 = vmatpush3.bf16.msra.mxu1 %v9811_v60  ;;  %8221 = vmatpush3.bf16.msra.mxu0 %v9811_v60 }
 0x1b4   : > { %7982 = vmatprep.subr.bf16.mxu1 %v9821_v56  ;;  %8222 = vmatprep.subr.bf16.mxu0 %v9821_v56 }
 0x1b5   : > { %1258 = vmatprep.mubr.bf16.mxu1 %v9227_v35  ;;  %1868 = vmatprep.mubr.bf16.mxu0 %v9266_v36 }
 0x1b7   : > { %7983 = vmatpush3.bf16.msra.mxu1 %v9809_v50  ;;  %8223 = vmatpush3.bf16.msra.mxu0 %v9809_v50 }
 0x1b8   : > { %7984 = vmatprep.subr.bf16.mxu1 %v9829_v63  ;;  %8224 = vmatprep.subr.bf16.mxu0 %v9829_v63 }
 0x1ba   : > { %1259 = vmatmul.mubr.bf16.gmra.mxu1 %v9229_v37  ;;  %1869 = vmatmul.mubr.bf16.gmra.mxu0 %v9268_v38 }
 0x1bb   : > { %7985 = vmatpush3.bf16.msra.mxu1 %v9807_v41  ;;  %8225 = vmatpush3.bf16.msra.mxu0 %v9807_v41 }
 0x1bc   : > { %7986 = vmatprep.subr.bf16.mxu1 %v9835_v5  ;;  %8226 = vmatprep.subr.bf16.mxu0 %v9835_v5 }
 0x1bd   : > { %1266 = vmatprep.mubr.bf16.mxu1 %v9230_v39  ;;  %1876 = vmatprep.mubr.bf16.mxu0 %v9272_v40 }
 0x1bf   : > { %7987 = vmatpush3.bf16.msra.mxu1 %v9805_v32  ;;  %8227 = vmatpush3.bf16.msra.mxu0 %v9805_v32 }
 0x1c0   : > { %7988 = vmatprep.subr.bf16.mxu1 %v9842_v10  ;;  %8228 = vmatprep.subr.bf16.mxu0 %v9842_v10 }
 0x1c2   : > { %1267 = vmatmul.mubr.bf16.gmra.mxu1 %v9232_v42  ;;  %1877 = vmatmul.mubr.bf16.gmra.mxu0 %v9274_v43 }
 0x1c3   : > { %7989 = vmatpush3.bf16.msra.mxu1 %v9800_v22  ;;  %8229 = vmatpush3.bf16.msra.mxu0 %v9800_v22 }
 0x1c4   : > { %7990 = vmatprep.subr.bf16.mxu1 %v9848_v14  ;;  %8230 = vmatprep.subr.bf16.mxu0 %v9848_v14 }
 0x1c5   : > { %1274 = vmatprep.mubr.bf16.mxu1 %v9233_v44  ;;  %1884 = vmatprep.mubr.bf16.mxu0 %v9278_v45 }
 0x1c7   : > { %7991 = vmatpush3.bf16.msra.mxu1 %v9795_v12  ;;  %8231 = vmatpush3.bf16.msra.mxu0 %v9795_v12 }
 0x1c8   : > { %7992 = vmatprep.subr.bf16.mxu1 %v9817_v16  ;;  %8232 = vmatprep.subr.bf16.mxu0 %v9817_v16 }
 0x1ca   : > { %1275 = vmatmul.mubr.bf16.gmra.mxu1 %v9235_v46  ;;  %1885 = vmatmul.mubr.bf16.gmra.mxu0 %v9280_v47 }
 0x1cb   : > { %7993 = vmatpush3.bf16.msra.mxu1 %v9793_v3  ;;  %8233 = vmatpush3.bf16.msra.mxu0 %v9793_v3 }
 0x1cc   : > { %7994 = vmatprep.subr.bf16.mxu1 %v9813_v6  ;;  %8234 = vmatprep.subr.bf16.mxu0 %v9813_v6 }
 0x1cd   : > { %1372 = vmatprep.mubr.bf16.mxu1 %v9238_v48  ;;  %2104 = vmatprep.mubr.bf16.mxu0 %v9286_v49 }
 0x1cf   : > { %7995 = vmatpush3.bf16.msra.mxu1 %v9791_v58  ;;  %8235 = vmatpush3.bf16.msra.mxu0 %v9791_v58 }
 0x1d0   : > { %8020 = vmatprep.subr.bf16.mxu1 %v9819_v53 }
 0x1d2   : > { %1373 = vmatmul.mubr.bf16.vlgmr.msra.gmra.mxu1 %v9236_v51  ;;  %2105 = vmatmul.mubr.bf16.vlgmr.msra.gmra.mxu0 %v9284_v52 }
 0x1d3   : > { %8021 = vmatpush3.bf16.msra.mxu1 %v9811_v60  ;;  %1380 = vmatprep.mubr.bf16.mxu1 %v9239_v54 }
 0x1d4   : > { %8022 = vmatprep.subr.bf16.mxu1 %v9821_v56  ;;  %2112 = vmatprep.mubr.bf16.mxu0 %v9290_v55 }
 0x1d7   : > { %8023 = vmatpush3.bf16.msra.mxu1 %v9809_v50 }
 0x1d8   : > { %8024 = vmatprep.subr.bf16.mxu1 %v9829_v63 }
 0x1da   : > { %1381 = vmatmul.mubr.bf16.gmra.mxu1 %v9241_v57  ;;  %2113 = vmatmul.mubr.bf16.gmra.mxu0 %v9292_v59 }
 0x1db   : > { %8025 = vmatpush3.bf16.msra.mxu1 %v9807_v41  ;;  %1388 = vmatprep.mubr.bf16.mxu1 %v9242_v61 }
 0x1dc   : > { %8026 = vmatprep.subr.bf16.mxu1 %v9835_v5 }
 0x1df   : > { %8027 = vmatpush3.bf16.msra.mxu1 %v9805_v32 }
 0x1e0   : > { %8028 = vmatprep.subr.bf16.mxu1 %v9842_v10 }
 0x1e2   : > { %1389 = vmatmul.mubr.bf16.gmra.mxu1 %v9244_v62 }
 0x1e3   : > { %8029 = vmatpush3.bf16.msra.mxu1 %v9800_v22  ;;  %1396 = vmatprep.mubr.bf16.mxu1 %v9245_v0 }
 0x1e4   : > { %8030 = vmatprep.subr.bf16.mxu1 %v9848_v14 }
 0x1e7   : > { %8031 = vmatpush3.bf16.msra.mxu1 %v9795_v12 }
 0x1e8   : > { %8032 = vmatprep.subr.bf16.mxu1 %v9817_v16 }
 0x1ea   : > { %1397 = vmatmul.mubr.bf16.gmra.mxu1 %v9247_v1 }
 0x1eb   : > { %8033 = vmatpush3.bf16.msra.mxu1 %v9793_v3  ;;  %1494 = vmatprep.mubr.bf16.mxu1 %v9250_v2 }
 0x1ec   : > { %8034 = vmatprep.subr.bf16.mxu1 %v9813_v6 }
 0x1ef   : > { %8035 = vmatpush3.bf16.msra.mxu1 %v9791_v58 }
 0x1f0   : > { %8100 = vmatprep.subr.bf16.mxu1 %v9819_v53 }
 0x1f2   : > { %1495 = vmatmul.mubr.bf16.vlgmr.msra.gmra.mxu1 %v9248_v4 }
 0x1f3   : > { %8101 = vmatpush3.bf16.msra.mxu1 %v9811_v60  ;;  %1502 = vmatprep.mubr.bf16.mxu1 %v9251_v7 }
 0x1f4   : > { %8102 = vmatprep.subr.bf16.mxu1 %v9821_v56 }
 0x1f7   : > { %8103 = vmatpush3.bf16.msra.mxu1 %v9809_v50 }
 0x1f8   : > { %8104 = vmatprep.subr.bf16.mxu1 %v9829_v63 }
 0x1fa   : > { %1503 = vmatmul.mubr.bf16.gmra.mxu1 %v9253_v8 }
 0x1fb   : > { %8105 = vmatpush3.bf16.msra.mxu1 %v9807_v41  ;;  %1510 = vmatprep.mubr.bf16.mxu1 %v9254_v9 }
 0x1fc   : > { %8106 = vmatprep.subr.bf16.mxu1 %v9835_v5 }
 0x1ff   : > { %8107 = vmatpush3.bf16.msra.mxu1 %v9805_v32 }
 0x200   : > { %8108 = vmatprep.subr.bf16.mxu1 %v9842_v10 }
 0x202   : > { %1511 = vmatmul.mubr.bf16.gmra.mxu1 %v9256_v13  ;;  %v9305_v13 = vld [vmem:[%s11947_s4 + $0x18] sm:$0xff]  }
 0x203   : > { %8109 = vmatpush3.bf16.msra.mxu1 %v9800_v22  ;;  %1518 = vmatprep.mubr.bf16.mxu1 %v9257_v11 }
 0x204   : > { %8110 = vmatprep.subr.bf16.mxu1 %v9848_v14 }
 0x207   : > { %8111 = vmatpush3.bf16.msra.mxu1 %v9795_v12 }
 0x208   : > { %8112 = vmatprep.subr.bf16.mxu1 %v9817_v16 }
 0x20a   : > { %1519 = vmatmul.mubr.bf16.gmra.mxu1 %v9259_v15 }
 0x20b   : > { %8113 = vmatpush3.bf16.msra.mxu1 %v9793_v3  ;;  %1738 = vmatprep.mubr.bf16.mxu1 %v9262_v17 }
 0x20c   : > { %8114 = vmatprep.subr.bf16.mxu1 %v9813_v6 }
 0x20f   : > { %8115 = vmatpush3.bf16.msra.mxu1 %v9791_v58 }
 0x210   : > { %8180 = vmatprep.subr.bf16.mxu1 %v9819_v53 }
 0x212   : > { %1739 = vmatmul.mubr.bf16.vlgmr.msra.gmra.mxu1 %v9260_v18 }
 0x213   : > { %8181 = vmatpush3.bf16.msra.mxu1 %v9811_v60  ;;  %1746 = vmatprep.mubr.bf16.mxu1 %v9263_v19 }
 0x214   : > { %8182 = vmatprep.subr.bf16.mxu1 %v9821_v56 }
 0x217   : > { %8183 = vmatpush3.bf16.msra.mxu1 %v9809_v50 }
 0x218   : > { %8184 = vmatprep.subr.bf16.mxu1 %v9829_v63 }
 0x21a   : > { %1747 = vmatmul.mubr.bf16.gmra.mxu1 %v9265_v20  ;;  %v9306_v20 = vld [vmem:[%s11947_s4 + $0x10] sm:$0xff]  }
 0x21b   : > { %8185 = vmatpush3.bf16.msra.mxu1 %v9807_v41  ;;  %1754 = vmatprep.mubr.bf16.mxu1 %v9269_v21 }
 0x21c   : > { %8186 = vmatprep.subr.bf16.mxu1 %v9835_v5 }
 0x21f   : > { %8187 = vmatpush3.bf16.msra.mxu1 %v9805_v32 }
 0x220   : > { %8188 = vmatprep.subr.bf16.mxu1 %v9842_v10 }
 0x222   : > { %1755 = vmatmul.mubr.bf16.gmra.mxu1 %v9271_v23 }
 0x223   : > { %8189 = vmatpush3.bf16.msra.mxu1 %v9800_v22  ;;  %1762 = vmatprep.mubr.bf16.mxu1 %v9275_v24 }
 0x224   : > { %8190 = vmatprep.subr.bf16.mxu1 %v9848_v14 }
 0x227   : > { %8191 = vmatpush3.bf16.msra.mxu1 %v9795_v12 }
 0x228   : > { %8192 = vmatprep.subr.bf16.mxu1 %v9817_v16 }
 0x22a   : > { %1763 = vmatmul.mubr.bf16.gmra.mxu1 %v9277_v25 }
 0x22b   : > { %8193 = vmatpush3.bf16.msra.mxu1 %v9793_v3  ;;  %1982 = vmatprep.mubr.bf16.mxu1 %v9283_v26  ;;  %v9307_v26 = vld [vmem:[%s11947_s4 + $0x8] sm:$0xff]  }
 0x22c   : > { %8194 = vmatprep.subr.bf16.mxu1 %v9813_v6 }
 0x22f   : > { %8195 = vmatpush3.bf16.msra.mxu1 %v9791_v58 }
 0x230   : > { %9106 = vmatprep.subr.bf16.mxu1 %v9819_v53 }
 0x232   : > { %1983 = vmatmul.mubr.bf16.vlgmr.msra.gmra.mxu1 %v9281_v27 }
 0x233   : > { %9114 = vmatpush3.bf16.msra.mxu1 %v9811_v60  ;;  %1990 = vmatprep.mubr.bf16.mxu1 %v9287_v28  ;;  %v9295_v60 = vld [vmem:[%s11945_s2 + $0x1e0] ss:$8 sps:$4 sm:$0xff]  }
 0x234   : > { %9107 = vmatprep.subr.bf16.mxu1 %v9821_v56 }
 0x237   : > { %9115 = vmatpush3.bf16.msra.mxu1 %v9809_v50  ;;  %v9296_v50 = vld [vmem:[%s11945_s2 + $0x1f4] ss:$8 sps:$4 sm:$0xff]  }
 0x238   : > { %9108 = vmatprep.subr.bf16.mxu1 %v9829_v63 }
 0x23a   : > { %1991 = vmatmul.mubr.bf16.gmra.mxu1 %v9289_v29 }
 0x23b   : > { %9116 = vmatpush3.bf16.msra.mxu1 %v9807_v41  ;;  %1998 = vmatprep.mubr.bf16.mxu1 %v9293_v30  ;;  %v9298_v41 = vld [vmem:[%s11945_s2 + $0x1f0] ss:$8 sps:$4 sm:$0xff]  }
 0x23c   : > { %9109 = vmatprep.subr.bf16.mxu1 %v9835_v5  ;;  %v9304_v5 = vld [vmem:[%s11945_s2 + $0x230] ss:$8 sps:$4 sm:$0xff]  }
 0x23f   : > { %9117 = vmatpush3.bf16.msra.mxu1 %v9805_v32  ;;  %v9301_v32 = vld [vmem:[%s11945_s2 + $0x224] ss:$8 sps:$4 sm:$0xff]  }
 0x240   : > { %9110 = vmatprep.subr.bf16.mxu1 %v9842_v10 }
 0x242   : > { %1999 = vmatmul.mubr.bf16.gmra.mxu1 %v9295_v60 }
 0x243   : > { %9118 = vmatpush3.bf16.msra.mxu1 %v9800_v22  ;;  %2006 = vmatprep.mubr.bf16.mxu1 %v9296_v50  ;;  %v9299_v22 = vld [vmem:[%s11945_s2 + $0x220] ss:$8 sps:$4 sm:$0xff]  }
 0x244   : > { %9111 = vmatprep.subr.bf16.mxu1 %v9848_v14  ;;  %v9308_v50 = vld [vmem:[%s11947_s4] sm:$0xff]  }
 0x247   : > { %9119 = vmatpush3.bf16.msra.mxu1 %v9795_v12  ;;  %v9302_v12 = vld [vmem:[%s11945_s2 + $0x234] ss:$8 sps:$4 sm:$0xff]  }
 0x248   : > { %9112 = vmatprep.subr.bf16.mxu1 %v9817_v16 }
 0x24a   : > { %2007 = vmatmul.mubr.bf16.gmra.mxu1 %v9298_v41 }
 0x24b   : > { %9120 = vmatpush3.bf16.msra.mxu1 %v9793_v3  ;;  %2120 = vmatprep.mubr.bf16.mxu1 %v9301_v32 }
 0x24c   : > { %9113 = vmatprep.subr.bf16.mxu1 %v9813_v6 }
 0x24f   : > { %9121 = vmatpush3.bf16.msra.mxu1 %v9791_v58 }
 0x250   : > { %8610 = vmatprep.subr.bf16.mxu1 %v9305_v13 }
 0x252   : > { %v7916_v53 = vpop.f32.mrf.mxu1  ;;  %2121 = vmatmul.mubr.bf16.vlgmr.msra.gmra.mxu1 %v9299_v22  ;;  %v10199_v56 = vpop.f32.mrf.mxu0 }
 0x253   : > { %2128 = vmatprep.mubr.bf16.mxu1 %v9302_v12  ;;  %8611 = vmatpush3.bf16.msra.mxu1 %v9305_v13 }
 0x254   : > { %v7917_v16 = vpop.f32.mrf.mxu1  ;;  %v10201_v3 = vpop.f32.mrf.mxu0  ;;  %8612 = vmatprep.subr.bf16.mxu1 %v9306_v20 }
 0x255   : > { %v10203_v63 = vadd.f32 %v7917_v16, %v7916_v53 }
 0x256   : > { %v7919_v6 = vpop.f32.mrf.mxu1  ;;  %v10208_v58 = vpop.f32.mrf.mxu0 }
 0x257   : > { %8613 = vmatpush3.bf16.msra.mxu1 %v9306_v20 }
 0x258   : > { %v7920_v10 = vpop.f32.mrf.mxu1  ;;  %v10210_v14 = vpop.f32.mrf.mxu0  ;;  %8614 = vmatprep.subr.bf16.mxu1 %v9307_v26 }
 0x259   : > { %v7921_v15 = vadd.f32 %v7920_v10, %v7919_v6 }
 0x25a   : > { %v7922_v31 = vpop.f32.mrf.mxu1  ;;  %2129 = vmatmul.mubr.bf16.gmra.mxu1 %v9304_v5  ;;  %v10212_v33 = vpop.f32.mrf.mxu0 }
 0x25b   : > { %8615 = vmatpush3.bf16.msra.mxu1 %v9307_v26  ;;  %v9314_v26 = vld [vmem:[%s11948_s5 + $0x84] ss:$20 sps:$4 sm:$0xff]  }
 0x25c   : > { %v7923_v34 = vpop.f32.mrf.mxu1  ;;  %v10214_v35 = vpop.f32.mrf.mxu0  ;;  %8616 = vmatprep.subr.bf16.mxu1 %v9308_v50  ;;  %2492 = vmatprep.subr.bf16.mxu0 %v9314_v26 }
 0x25d   : > { %v10216_v36 = vadd.f32 %v7923_v34, %v7922_v31 }
 0x25e   : > { %v7925_v37 = vpop.f32.mrf.mxu1  ;;  %v10218_v38 = vpop.f32.mrf.mxu0 }
 0x25f   : > { %8617 = vmatpush3.bf16.msra.mxu1 %v9308_v50  ;;  %v9318_v50 = vld [vmem:[%s11948_s5 + $0x58] ss:$20 sps:$4 sm:$0xff]  }
 0x260   : > { %v7926_v39 = vpop.f32.mrf.mxu1  ;;  %v10220_v40 = vpop.f32.mrf.mxu0 }
 0x261   : > { %v7927_v28 = vadd.f32 %v7926_v39, %v7925_v37 }
 0x262   : > { %v7928_v42 = vpop.f32.mrf.mxu1  ;;  %v8088_v43 = vpop.f32.mrf.mxu0 }
 0x264   : > { %v7929_v44 = vpop.f32.mrf.mxu1  ;;  %v8089_v45 = vpop.f32.mrf.mxu0 }
 0x265   : > { %v10222_v46 = vadd.f32 %v7929_v44, %v7928_v42  ;;  %v10224_v47 = vadd.f32 %v8089_v45, %v8088_v43 }
 0x266   : > { %v7931_v48 = vpop.f32.mrf.mxu1  ;;  %v10226_v49 = vpop.f32.mrf.mxu0 }
 0x268   : > { %v7932_v51 = vpop.f32.mrf.mxu1  ;;  %v10228_v52 = vpop.f32.mrf.mxu0 }
 0x269   : > { %v7933_v16 = vadd.f32 %v7932_v51, %v7931_v48 }
 0x26a   : > { %v7934_v54 = vpop.f32.mrf.mxu1  ;;  %v8094_v55 = vpop.f32.mrf.mxu0 }
 0x26c   : > { %v7935_v57 = vpop.f32.mrf.mxu1  ;;  %v8095_v59 = vpop.f32.mrf.mxu0 }
 0x26d   : > { %v10230_v61 = vadd.f32 %v7935_v57, %v7934_v54  ;;  %v10232_v62 = vadd.f32 %v8095_v59, %v8094_v55 }
 0x26e   : > { %v7937_v0 = vpop.f32.mrf.mxu1  ;;  %v10252_v59 = vpop.f32.mrf.mxu0 }
 0x270   : > { %v7938_v1 = vpop.f32.mrf.mxu1 }
 0x271   : > { %v7939_v39 = vadd.f32 %v7938_v1, %v7937_v0 }
 0x272   : > { %v7956_v2 = vpop.f32.mrf.mxu1 }
 0x274   : > { %v7957_v4 = vpop.f32.mrf.mxu1 }
 0x275   : > { %v7958_v7 = vadd.f32 %v7957_v4, %v7956_v2 }
 0x276   : > { %v7959_v8 = vpop.f32.mrf.mxu1 }
 0x277   : > { %v1283_v9 = vmax.f32 %v10203_v63, %v7958_v7 }
 0x278   : > { %v7960_v11 = vpop.f32.mrf.mxu1 }
 0x279   : > { %v7961_v17 = vadd.f32 %v7960_v11, %v7959_v8  ;;  %v10256_v8 = vpop.f32.mrf.mxu0 }
 0x27a   : > { %v7962_v18 = vpop.f32.mrf.mxu1 }
 0x27b   : > { %v1284_v19 = vmax.f32 %v7921_v15, %v7961_v17  ;;  %v10260_v15 = vpop.f32.mrf.mxu0 }
 0x27c   : > { %v7963_v21 = vpop.f32.mrf.mxu1 }
 0x27d   : > { %v7964_v23 = vadd.f32 %v7963_v21, %v7962_v18  ;;  %v10264_v21 = vpop.f32.mrf.mxu0 }
 0x27e   : > { %v7965_v24 = vpop.f32.mrf.mxu1 }
 0x27f   : > { %v1285_v25 = vmax.f32 %v10216_v36, %v7964_v23  ;;  %v9311_v23 = vld [vmem:[%s11948_s5 + $0x7c] ss:$20 sps:$4 sm:$0xff]  }
 0x280   : > { %v7966_v27 = vpop.f32.mrf.mxu1  ;;  %2419 = vmatprep.subr.bf16.mxu1 %v9311_v23 }
 0x281   : > { %v7967_v29 = vadd.f32 %v7966_v27, %v7965_v24  ;;  %v9312_v24 = vld [vmem:[%s11948_s5 + $0x80] ss:$20 sps:$4 sm:$0xff]  }
 0x282   : > { %v7968_v30 = vpop.f32.mrf.mxu1  ;;  %2493 = vmatpush1.bf16.msra.mxu0 %v9312_v24 }
 0x283   : > { %v1286_v60 = vmax.f32 %v7927_v28, %v7967_v29  ;;  %v9320_v28 = vld [vmem:[%s11948_s5 + $0x5c] ss:$20 sps:$4 sm:$0xff]  }
 0x284   : > { %v7969_v41 = vpop.f32.mrf.mxu1  ;;  %2494 = vmatprep.subr.bf16.mxu0 %v9320_v28 }
 0x285   : > { %v7970_v32 = vadd.f32 %v7969_v41, %v7968_v30  ;;  %v10278_v30 = vpop.f32.mrf.mxu0 }
 0x286   : > { %v7971_v22 = vpop.f32.mrf.mxu1  ;;  %2495 = vmatpush1.bf16.msra.mxu0 %v9318_v50 }
 0x287   : > { %v1287_v12 = vmax.f32 %v10222_v46, %v7970_v32 }
 0x288   : > { %v7972_v53 = vpop.f32.mrf.mxu1 }
 0x289   : > { %v7973_v63 = vadd.f32 %v7972_v53, %v7971_v22 }
 0x28a   : > { %v7974_v6 = vpop.f32.mrf.mxu1 }
 0x28b   : > { %v1288_v5 = vmax.f32 %v7933_v16, %v7973_v63 }
 0x28c   : > { %v7975_v10 = vpop.f32.mrf.mxu1 }
 0x28d   : > { %v7976_v31 = vadd.f32 %v7975_v10, %v7974_v6 }
 0x28e   : > { %v7977_v34 = vpop.f32.mrf.mxu1 }
 0x28f   : > { %v1289_v36 = vmax.f32 %v10230_v61, %v7976_v31 }
 0x290   : > { %v7978_v37 = vpop.f32.mrf.mxu1 }
 0x291   : > { %v7979_v42 = vadd.f32 %v7978_v37, %v7977_v34 }
 0x292   : > { %v7996_v43 = vpop.f32.mrf.mxu1 }
 0x293   : > { %v1290_v44 = vmax.f32 %v7939_v39, %v7979_v42 }
 0x294   : > { %v7997_v45 = vpop.f32.mrf.mxu1 }
 0x295   : > { %v7998_v54 = vadd.f32 %v7997_v45, %v7996_v43 }
 0x296   : > { %v7999_v55 = vpop.f32.mrf.mxu1 }
 0x297   : > { %v10250_v57 = vmax.f32 %v1283_v9, %v7998_v54 }
 0x298   : > { %v8000_v46 = vpop.f32.mrf.mxu1 }
 0x299   : > { %v8001_v48 = vadd.f32 %v8000_v46, %v7999_v55 }
 0x29a   : > { %v8002_v51 = vpop.f32.mrf.mxu1 }
 0x29b   : > { %v10254_v2 = vmax.f32 %v1284_v19, %v8001_v48 }
 0x29c   : > { %v8003_v4 = vpop.f32.mrf.mxu1 }
 0x29d   : > { %v8004_v7 = vadd.f32 %v8003_v4, %v8002_v51 }
 0x29e   : > { %v8005_v61 = vpop.f32.mrf.mxu1 }
 0x29f   : > { %v10258_v0 = vmax.f32 %v1285_v25, %v8004_v7 }
 0x2a0   : > { %v8006_v1 = vpop.f32.mrf.mxu1 }
 0x2a1   : > { %v8007_v13 = vadd.f32 %v8006_v1, %v8005_v61 }
 0x2a2   : > { %v8008_v11 = vpop.f32.mrf.mxu1 }
 0x2a3   : > { %v10262_v9 = vmax.f32 %v1286_v60, %v8007_v13 }
 0x2a4   : > { %v8009_v17 = vpop.f32.mrf.mxu1 }
 0x2a5   : > { %v8010_v18 = vadd.f32 %v8009_v17, %v8008_v11  ;;  %v8093_v17 = vadd.f32 %v10228_v52, %v10226_v49  ;;  %v8099_v49 = vadd.f32 %v10256_v8, %v10252_v59 }
 0x2a6   : > { %v8011_v20 = vpop.f32.mrf.mxu1 }
 0x2a7   : > { %v1409_v19 = vmax.f32 %v1287_v12, %v8010_v18  ;;  %v10283_v12 = vpop.f32.mrf.mxu0 }
 0x2a8   : > { %v8012_v25 = vpop.f32.mrf.mxu1 }
 0x2a9   : > { %v8013_v27 = vadd.f32 %v8012_v25, %v8011_v20  ;;  %v10285_v10 = vpop.f32.mrf.mxu0 }
 0x2aa   : > { %v8014_v29 = vpop.f32.mrf.mxu1 }
 0x2ab   : > { %v1410_v60 = vmax.f32 %v1288_v5, %v8013_v27  ;;  %v10287_v37 = vpop.f32.mrf.mxu0 }
 0x2ac   : > { %v8015_v41 = vpop.f32.mrf.mxu1 }
 0x2ad   : > { %v8016_v32 = vadd.f32 %v8015_v41, %v8014_v29  ;;  %v10289_v43 = vpop.f32.mrf.mxu0 }
 0x2ae   : > { %v8017_v22 = vpop.f32.mrf.mxu1 }
 0x2af   : > { %v1411_v53 = vmax.f32 %v1289_v36, %v8016_v32  ;;  %v10293_v55 = vpop.f32.mrf.mxu0 }
 0x2b0   : > { %v8018_v16 = vpop.f32.mrf.mxu1 }
 0x2b1   : > { %v8019_v63 = vadd.f32 %v8018_v16, %v8017_v22  ;;  %v10297_v48 = vpop.f32.mrf.mxu0 }
 0x2b2   : > { %v8036_v6 = vpop.f32.mrf.mxu1 }
 0x2b3   : > { %v1412_v31 = vmax.f32 %v1290_v44, %v8019_v63  ;;  %v10299_v7 = vpop.f32.mrf.mxu0 }
 0x2b4   : > { %v8037_v5 = vpop.f32.mrf.mxu1 }
 0x2b5   : > { %v10306_v20 = vpop.f32.mrf.mxu0 }
 0x2b6   : > { %v8039_v34 = vpop.f32.mrf.mxu1 }
 0x2b7   : > { %v10310_v28 = vpop.f32.mrf.mxu0 }
 0x2b8   : > { %v8040_v39 = vpop.f32.mrf.mxu1 }
 0x2b9   : > { %v10317_v41 = vpop.f32.mrf.mxu0 }
 0x2ba   : > { %v8042_v42 = vpop.f32.mrf.mxu1 }
 0x2bb   : > { %v10321_v63 = vpop.f32.mrf.mxu0 }
 0x2bc   : > { %v8043_v45 = vpop.f32.mrf.mxu1 }
 0x2be   : > { %v10291_v54 = vpop.f32.mrf.mxu1 }
 0x2c0   : > { %v10295_v36 = vpop.f32.mrf.mxu1 }
 0x2c2   : > { %v8048_v46 = vpop.f32.mrf.mxu1 }
 0x2c4   : > { %v8049_v51 = vpop.f32.mrf.mxu1 }
 0x2c5   : > { %v8050_v44 = vadd.f32 %v8049_v51, %v8048_v46  ;;  %v10323_v51 = vpop.f32.mrf.mxu0 }
 0x2c6   : > { %v8051_v4 = vpop.f32.mrf.mxu1  ;;  %12032 = vst [vmem:[#allocation4_spill] sm:$0xff] %v10323_v51 }
 0x2c7   : > { %v1531_v61 = vmax.f32 %v1409_v19, %v8050_v44 }
 0x2c8   : > { %v8052_v1 = vpop.f32.mrf.mxu1 }
 0x2c9   : > { %v10302_v13 = vmax.f32 %v1531_v61, %v10224_v47  ;;  %v8053_v11 = vadd.f32 %v8052_v1, %v8051_v4  ;;  %v10325_v4 = vpop.f32.mrf.mxu0 }
 0x2ca   : > { %v8054_v18 = vpop.f32.mrf.mxu1  ;;  %12033 = vst [vmem:[#allocation5_spill] sm:$0xff] %v10325_v4 }
 0x2cb   : > { %v1532_v23 = vmax.f32 %v1410_v60, %v8053_v11  ;;  %v8236_v8 = vpop.f32.mrf.mxu0 }
 0x2cc   : > { %v8055_v24 = vpop.f32.mrf.mxu1 }
 0x2cd   : > { %v10308_v25 = vmax.f32 %v1532_v23, %v8093_v17  ;;  %v8056_v26 = vadd.f32 %v8055_v24, %v8054_v18  ;;  %v8237_v11 = vpop.f32.mrf.mxu0  ;;  %v8038_v18 = vadd.f32 %v8037_v5, %v8036_v6  ;;  %v8044_v5 = vadd.f32 %v8043_v45, %v8042_v42 }
 0x2ce   : > { %v8057_v27 = vpop.f32.mrf.mxu1  ;;  %v8161_v45 = vadd.f32 %v10283_v12, %v10278_v30 }
 0x2cf   : > { %v1533_v19 = vmax.f32 %v1411_v53, %v8056_v26  ;;  %v8239_v24 = vpop.f32.mrf.mxu0  ;;  %v8041_v26 = vadd.f32 %v8040_v39, %v8039_v34 }
 0x2d0   : > { %v8058_v29 = vpop.f32.mrf.mxu1 }
 0x2d1   : > { %v10313_v47 = vmax.f32 %v1533_v19, %v10232_v62  ;;  %v8059_v50 = vadd.f32 %v8058_v29, %v8057_v27  ;;  %v1527_v19 = vmax.f32 %v10250_v57, %v8038_v18  ;;  %v8078_v29 = vadd.f32 %v10201_v3, %v10199_v56 }
 0x2d2   : > { %v8116_v52 = vpop.f32.mrf.mxu1  ;;  %v8047_v56 = vadd.f32 %v10295_v36, %v10291_v54  ;;  %v8158_v18 = vadd.f32 %v10264_v21, %v10260_v15  ;;  %v8087_v54 = vadd.f32 %v10220_v40, %v10218_v38  ;;  %v8167_v38 = vadd.f32 %v10293_v55, %v10289_v43 }
 0x2d3   : > { %12030 = vst [vmem:[#allocation2_spill] sm:$0xff] %v10313_v47  ;;  %v1534_v60 = vmax.f32 %v1412_v31, %v8059_v50  ;;  %v1649_v34 = vmax.f32 %v1527_v19, %v8078_v29 }
 0x2d4   : > { %v8117_v32 = vpop.f32.mrf.mxu1 }
 0x2d5   : > { %v10319_v22 = vmax.f32 %v1534_v60, %v8099_v49  ;;  %v8240_v49 = vpop.f32.mrf.mxu0  ;;  %v1528_v60 = vmax.f32 %v10254_v2, %v8041_v26  ;;  %v8118_v6 = vadd.f32 %v8117_v32, %v8116_v52  ;;  %v1529_v2 = vmax.f32 %v10258_v0, %v8044_v5 }
 0x2d6   : > { %v8119_v16 = vpop.f32.mrf.mxu1  ;;  %v8238_v0 = vadd.f32 %v8237_v11, %v8236_v8  ;;  %v8241_v26 = vadd.f32 %v8240_v49, %v8239_v24 }
 0x2d7   : > { %12031 = vst [vmem:[#allocation3_spill] sm:$0xff] %v10319_v22  ;;  %v8081_v22 = vadd.f32 %v10210_v14, %v10208_v58  ;;  %v8242_v51 = vpop.f32.mrf.mxu0  ;;  %v1771_v3 = vmax.f32 %v1649_v34, %v8118_v6  ;;  %v8084_v58 = vadd.f32 %v10214_v35, %v10212_v33 }
 0x2d8   : > { %v8120_v46 = vpop.f32.mrf.mxu1 }
 0x2d9   : > { %v8121_v39 = vadd.f32 %v8120_v46, %v8119_v16  ;;  %v1650_v57 = vmax.f32 %v1528_v60, %v8081_v22  ;;  %v8243_v22 = vpop.f32.mrf.mxu0  ;;  %v1530_v16 = vmax.f32 %v10262_v9, %v8047_v56  ;;  %v1893_v36 = vmax.f32 %v1771_v3, %v8158_v18 }
 0x2da   : > { %v8122_v53 = vpop.f32.mrf.mxu1  ;;  %v1651_v21 = vmax.f32 %v1529_v2, %v8084_v58  ;;  %v8164_v9 = vadd.f32 %v10287_v37, %v10285_v10  ;;  %v8244_v5 = vadd.f32 %v8243_v22, %v8242_v51  ;;  %v9309_v58 = vld [vmem:[%s11948_s5 + $0x78] ss:$20 sps:$4 sm:$0xff]   ;;  %v9317_v51 = vld [vmem:[%s11948_s5 + $0x54] ss:$20 sps:$4 sm:$0xff]  }
 0x2db   : > { %v1772_v42 = vmax.f32 %v1650_v57, %v8121_v39  ;;  %v8245_v30 = vpop.f32.mrf.mxu0  ;;  %v1652_v12 = vmax.f32 %v1530_v16, %v8087_v54 }
 0x2dc   : > { %v8123_v62 = vpop.f32.mrf.mxu1 }
 0x2dd   : > { %v8124_v15 = vadd.f32 %v8123_v62, %v8122_v53  ;;  %v1894_v33 = vmax.f32 %v1772_v42, %v8161_v45 }
 0x2de   : > { %v8125_v44 = vpop.f32.mrf.mxu1 }
 0x2e0   : > { %v8126_v61 = vpop.f32.mrf.mxu1 }
 0x2e1   : > { %v8127_v35 = vadd.f32 %v8126_v61, %v8125_v44  ;;  %v8246_v44 = vpop.f32.mrf.mxu0 }
 0x2e2   : > { %v10327_v59 = vpop.f32.mrf.mxu1  ;;  %v8247_v37 = vadd.f32 %v8246_v44, %v8245_v30  ;;  %v12035_v30 = vld [vmem:[#allocation5_spill] sm:$0xff] }
 0x2e3   : > { %v1774_v53 = vmax.f32 %v1652_v12, %v8127_v35 }
 0x2e4   : > { %v10329_v1 = vpop.f32.mrf.mxu1 }
 0x2e5   : > { %v1896_v39 = vmax.f32 %v1774_v53, %v8167_v38  ;;  %v8130_v22 = vadd.f32 %v10329_v1, %v10327_v59  ;;  %v12037_v38 = vld [vmem:[#allocation3_spill] sm:$0xff] }
 0x2e6   : > { %v10331_v31 = vpop.f32.mrf.mxu1 }
 0x2e8   : > { %v10333_v17 = vpop.f32.mrf.mxu1 }
 0x2e9   : > { %v8133_v54 = vadd.f32 %v10333_v17, %v10331_v31 }
 0x2ea   : > { %v10335_v23 = vpop.f32.mrf.mxu1 }
 0x2ec   : > { %v10337_v27 = vpop.f32.mrf.mxu1 }
 0x2ed   : > { %v8136_v31 = vadd.f32 %v10337_v27, %v10335_v23 }
 0x2ee   : > { %v10342_v50 = vpop.f32.mrf.mxu1 }
 0x2f0   : > { %v10347_v47 = vpop.f32.mrf.mxu1 }
 0x2f2   : > { %v8196_v4 = vpop.f32.mrf.mxu1 }
 0x2f4   : > { %v8197_v14 = vpop.f32.mrf.mxu1 }
 0x2f5   : > { %v8198_v52 = vadd.f32 %v8197_v14, %v8196_v4  ;;  %v1773_v4 = vmax.f32 %v1651_v21, %v8124_v15  ;;  %v1775_v15 = vmax.f32 %v10302_v13, %v8130_v22  ;;  %v8170_v21 = vadd.f32 %v10299_v7, %v10297_v48 }
 0x2f6   : > { %v8199_v32 = vpop.f32.mrf.mxu1  ;;  %v8139_v13 = vadd.f32 %v10347_v47, %v10342_v50 }
 0x2f7   : > { %v2015_v19 = vmax.f32 %v1893_v36, %v8198_v52  ;;  %v1895_v61 = vmax.f32 %v1773_v4, %v8164_v9  ;;  %v9315_v52 = vld [vmem:[%s11948_s5 + $0x50] ss:$20 sps:$4 sm:$0xff]   ;;  %v1897_v1 = vmax.f32 %v1775_v15, %v8170_v21  ;;  %v9335_v21 = vld [vmem:[%s11948_s5 + $0x38] ss:$20 sps:$4 sm:$0xff]  }
 0x2f8   : > { %v8200_v46 = vpop.f32.mrf.mxu1  ;;  %v12036_v9 = vld [vmem:[#allocation2_spill] sm:$0xff] }
 0x2f9   : > { %v8201_v29 = vadd.f32 %v8200_v46, %v8199_v32  ;;  %v2137_v62 = vmax.f32 %v2015_v19, %v8238_v0  ;;  %v1776_v46 = vmax.f32 %v10308_v25, %v8133_v54 }
 0x2fa   : > { %v8202_v60 = vpop.f32.mrf.mxu1 }
 0x2fb   : > { %v2016_v6 = vmax.f32 %v1894_v33, %v8201_v29 }
 0x2fc   : > { %v8203_v40 = vpop.f32.mrf.mxu1 }
 0x2fd   : > { %v2138_v8 = vmax.f32 %v2016_v6, %v8241_v26  ;;  %v8204_v11 = vadd.f32 %v8203_v40, %v8202_v60  ;;  %v8173_v26 = vadd.f32 %v10310_v28, %v10306_v20  ;;  %v8176_v20 = vadd.f32 %v10321_v63, %v10317_v41  ;;  %v12034_v28 = vld [vmem:[#allocation4_spill] sm:$0xff] }
 0x2fe   : > { %v8205_v24 = vpop.f32.mrf.mxu1  ;;  %v8179_v12 = vadd.f32 %v12035_v30, %v12034_v28  ;;  %v1777_v6 = vmax.f32 %v12036_v9, %v8136_v31  ;;  %v1778_v40 = vmax.f32 %v12037_v38, %v8139_v13 }
 0x2ff   : > { %v10365_v49 = vpack.c.bf16 %v2138_v8, %v2137_v62  ;;  %v2017_v57 = vmax.f32 %v1895_v61, %v8204_v11  ;;  %v1898_v29 = vmax.f32 %v1776_v46, %v8173_v26  ;;  %v9336_v26 = vld [vmem:[%s11948_s5 + $0x10] ss:$20 sps:$4 sm:$0xff]  }
 0x300   : > { %v8206_v34 = vpop.f32.mrf.mxu1  ;;  %v1899_v11 = vmax.f32 %v1777_v6, %v8176_v20 }
 0x301   : > { %v8207_v10 = vadd.f32 %v8206_v34, %v8205_v24  ;;  %8618 = vmatprep.mubr.msk.bf16.mxu1 %vm2181_vm0, %v10365_v49  ;;  %v2139_v3 = vmax.f32 %v2017_v57, %v8244_v5  ;;  %v1900_v24 = vmax.f32 %v1778_v40, %v8179_v12 }
 0x302   : > { %v8208_v43 = vpop.f32.mrf.mxu1 }
 0x303   : > { %v2018_v55 = vmax.f32 %v1896_v39, %v8207_v10  ;;  %v9323_v10 = vld [vmem:[%s11948_s5 + $0x2c] ss:$20 sps:$4 sm:$0xff]  }
 0x304   : > { %v8209_v56 = vpop.f32.mrf.mxu1 }
 0x305   : > { %v2140_v18 = vmax.f32 %v2018_v55, %v8247_v37  ;;  %v8210_v35 = vadd.f32 %v8209_v56, %v8208_v43  ;;  %v9326_v37 = vld [vmem:[%s11948_s5 + $0x34] ss:$20 sps:$4 sm:$0xff]   ;;  %v9324_v55 = vld [vmem:[%s11948_s5 + $0x30] ss:$20 sps:$4 sm:$0xff]  }
 0x306   : > { %v8211_v2 = vpop.f32.mrf.mxu1  ;;  %v9321_v43 = vld [vmem:[%s11948_s5 + $0x28] ss:$20 sps:$4 sm:$0xff]   ;;  %2496 = vmatprep.subr.bf16.mxu0 %v9326_v37  ;;  %v9329_v56 = vld [vmem:[%s11948_s5 + $0x4] ss:$20 sps:$4 sm:$0xff]  }
 0x307   : > { %v10372_v14 = vpack.c.bf16 %v2140_v18, %v2139_v3  ;;  %v2019_v7 = vmax.f32 %v1897_v1, %v8210_v35  ;;  %2497 = vmatpush1.bf16.msra.mxu0 %v9324_v55  ;;  %v9332_v3 = vld [vmem:[%s11948_s5 + $0xc] ss:$20 sps:$4 sm:$0xff]  }
 0x308   : > { %v8212_v42 = vpop.f32.mrf.mxu1  ;;  %v9327_v18 = vld [vmem:[%s11948_s5] ss:$20 sps:$4 sm:$0xff]   ;;  %2498 = vmatprep.subr.bf16.mxu0 %v9332_v3 }
 0x309   : > { %8619 = vmatmul.mubr.msk.bf16.vlgmr.msra.gmra.mxu1 %vm2181_vm0, %v10372_v14  ;;  %v8213_v59 = vadd.f32 %v8212_v42, %v8211_v2  ;;  %v9330_v2 = vld [vmem:[%s11948_s5 + $0x8] ss:$20 sps:$4 sm:$0xff]  }
 0x30a   : > { %v8214_v45 = vpop.f32.mrf.mxu1  ;;  %2420 = vmatpush1.bf16.msra.mxu1 %v9309_v58  ;;  %v11960_v58 = vmov 0  }
 0x30b   : > { %2421 = vmatprep.subr.bf16.mxu1 %v9317_v51  ;;  %v2020_v60 = vmax.f32 %v1898_v29, %v8213_v59  ;;  %2499 = vmatpush1.bf16.msra.mxu0 %v9330_v2  ;;  %v9333_v51 = vld [vmem:[%s11948_s5 + $0x88] ss:$20 sps:$4 sm:$0xff]  }
 0x30c   : > { %v8215_v32 = vpop.f32.mrf.mxu1  ;;  %2516 = vmatprep.mubr.bf16.mxu0 %v11960_v58 }
 0x30d   : > { %v8216_v47 = vadd.f32 %v8215_v32, %v8214_v45 }
 0x30e   : > { %v8217_v16 = vpop.f32.mrf.mxu1  ;;  %2422 = vmatpush1.bf16.msra.mxu1 %v9315_v52 }
 0x30f   : > { %v2021_v63 = vmax.f32 %v1899_v11, %v8216_v47  ;;  %2423 = vmatprep.subr.bf16.mxu1 %v9323_v10 }
 0x310   : > { %v8218_v36 = vpop.f32.mrf.mxu1 }
 0x311   : > { %v8219_v50 = vadd.f32 %v8218_v36, %v8217_v16  ;;  %v9334_v36 = vld [vmem:[%s11948_s5 + $0x60] ss:$20 sps:$4 sm:$0xff]  }
 0x312   : > { %v8248_v0 = vpop.f32.mrf.mxu1  ;;  %2424 = vmatpush1.bf16.msra.mxu1 %v9321_v43 }
 0x313   : > { %v2022_v61 = vmax.f32 %v1900_v24, %v8219_v50  ;;  %2425 = vmatprep.subr.bf16.mxu1 %v9329_v56 }
 0x314   : > { %v8249_v33 = vpop.f32.mrf.mxu1 }
 0x315   : > { %v8250_v17 = vadd.f32 %v8249_v33, %v8248_v0 }
 0x316   : > { %v8251_v19 = vpop.f32.mrf.mxu1  ;;  %2426 = vmatpush1.bf16.msra.mxu1 %v9327_v18 }
 0x317   : > { %v2141_v23 = vmax.f32 %v2019_v7, %v8250_v17  ;;  %8626 = vmatprep.subr.bf16.mxu1 %v9333_v51 }
 0x318   : > { %v8252_v48 = vpop.f32.mrf.mxu1 }
 0x319   : > { %v8253_v25 = vadd.f32 %v8252_v48, %v8251_v19 }
 0x31a   : > { %v8254_v4 = vpop.f32.mrf.mxu1 }
 0x31b   : > { %v2142_v27 = vmax.f32 %v2020_v60, %v8253_v25 }
 0x31c   : > { %v8255_v53 = vpop.f32.mrf.mxu1 }
 0x31d   : > { %v10402_v62 = vpack.c.bf16 %v2142_v27, %v2141_v23  ;;  %v8256_v44 = vadd.f32 %v8255_v53, %v8254_v4 }
 0x31e   : > { %v8257_v8 = vpop.f32.mrf.mxu1 }
 0x31f   : > { %8622 = vmatprep.mubr.msk.bf16.mxu1 %vm2181_vm0, %v10402_v62  ;;  %v2143_v34 = vmax.f32 %v2021_v63, %v8256_v44 }
 0x320   : > { %v8258_v41 = vpop.f32.mrf.mxu1 }
 0x321   : > { %v8259_v5 = vadd.f32 %v8258_v41, %v8257_v8 }
 0x323   : > { %v2144_v39 = vmax.f32 %v2022_v61, %v8259_v5 }
 0x325   : > { %v10406_v57 = vpack.c.bf16 %v2144_v39, %v2143_v34  ;;  %v9337_v34 = vld [vmem:[%s11946_s3] sm:$0xff]  }
 0x327   : > { %8623 = vmatmul.mubr.msk.bf16.gmra.mxu1 %vm2181_vm0, %v10406_v57 }
 0x328   : > { %2443 = vmatprep.mubr.bf16.mxu1 %v11960_v58 }
 0x3c9   : > { %v8620_v42 = vpop.f32.mrf.mxu1 }
 0x3ca   : > { %v2261_v0 = vmax.f32 %v8620_v42, 0.0 }
 0x3cb   : > { %v2228_v45 = vpop.f32.mrf.mxu1 }
 0x3cc   : > { %v2259_v22 = vmax.f32 %v2228_v45, 0.0 }
 0x3cd   : > { %v8621_v52 = vpop.f32.mrf.mxu1 }
 0x3ce   : > { %v2262_v15 = vmax.f32 %v8621_v52, 0.0 }
 0x3cf   : > { %v2231_v32 = vpop.f32.mrf.mxu1 }
 0x3d0   : > { %v2260_v16 = vmax.f32 %v2231_v32, 0.0  ;;  %v2268_v46 = vpack.c.bf16 %v2262_v15, %v2261_v0  ;;  %v9340_v0 = vld [vmem:[%s11946_s3 + $0x10] sm:$0xff]  }
 0x3d2   : > { %v2267_v54 = vpack.c.bf16 %v2260_v16, %v2259_v22 }
 0x3d4   : > { %7403 = vmatmul.mubr.msk.bf16.vlgmr.msra.gmra.mxu1 %vm2181_vm0, %v2267_v54  ;;  %7407 = vmatmul.mubr.msk.bf16.vlgmr.msra.gmra.mxu0 %vm2181_vm0, %v2267_v54 }
 0x3d5   : > { %2453 = vmatprep.mubr.bf16.mxu1 %v11960_v58  ;;  %2526 = vmatprep.mubr.bf16.mxu0 %v11960_v58 }
 0x3d6   : > { %8627 = vmatpush3.bf16.msra.mxu1 %v9333_v51  ;;  %v9339_v51 = vld [vmem:[%s11946_s3 + $0x20] sm:$0xff]  }
 0x3d7   : > { %8628 = vmatprep.subr.bf16.mxu1 %v9334_v36 }
 0x3da   : > { %8629 = vmatpush3.bf16.msra.mxu1 %v9334_v36 }
 0x3db   : > { %8630 = vmatprep.subr.bf16.mxu1 %v9335_v21 }
 0x3dc   : > { %7404 = vmatmul.mubr.msk.bf16.gmra.mxu1 %vm2181_vm0, %v2268_v46  ;;  %7408 = vmatmul.mubr.msk.bf16.gmra.mxu0 %vm2181_vm0, %v2268_v46 }
 0x3dd   : > { %2463 = vmatprep.mubr.bf16.mxu1 %v11960_v58  ;;  %2536 = vmatprep.mubr.bf16.mxu0 %v11960_v58 }
 0x3de   : > { %8631 = vmatpush3.bf16.msra.mxu1 %v9335_v21  ;;  %v9338_v21 = vld [vmem:[%s11946_s3 + $0x8] sm:$0xff]  }
 0x3df   : > { %8632 = vmatprep.subr.bf16.mxu1 %v9336_v26 }
 0x3e2   : > { %8633 = vmatpush3.bf16.msra.mxu1 %v9336_v26 }
 0x3e7   : > { %v8624_v33 = vpop.f32.mrf.mxu1 }
 0x3e8   : > { %v2265_v17 = vmax.f32 %v8624_v33, 0.0 }
 0x3e9   : > { %v2244_v35 = vpop.f32.mrf.mxu1 }
 0x3ea   : > { %v2263_v19 = vmax.f32 %v2244_v35, 0.0  ;;  %v9342_v35 = vld [vmem:[%s11946_s3 + $0x18] sm:$0xff]  }
 0x3eb   : > { %v8625_v59 = vpop.f32.mrf.mxu1 }
 0x3ec   : > { %v2266_v13 = vmax.f32 %v8625_v59, 0.0  ;;  %v9344_v59 = vld [vmem:[%s11946_s3 + $0x60] sm:$0xff]  }
 0x3ed   : > { %v2247_v1 = vpop.f32.mrf.mxu1 }
 0x3ee   : > { %v2264_v29 = vmax.f32 %v2247_v1, 0.0  ;;  %v2270_v48 = vpack.c.bf16 %v2266_v13, %v2265_v17 }
 0x3f0   : > { %v2269_v31 = vpack.c.bf16 %v2264_v29, %v2263_v19 }
 0x3f2   : > { %7405 = vmatmul.mubr.msk.bf16.gmra.mxu1 %vm2181_vm0, %v2269_v31  ;;  %7409 = vmatmul.mubr.msk.bf16.gmra.mxu0 %vm2181_vm0, %v2269_v31 }
 0x3f3   : > { %2473 = vmatprep.mubr.bf16.mxu1 %v11960_v58  ;;  %2546 = vmatprep.mubr.bf16.mxu0 %v11960_v58 }
 0x3fa   : > { %7406 = vmatmul.mubr.msk.bf16.gmra.mxu1 %vm2181_vm0, %v2270_v48  ;;  %7410 = vmatmul.mubr.msk.bf16.gmra.mxu0 %vm2181_vm0, %v2270_v48 }
 0x3fb   : > { %8634 = vmatprep.mubr.msk.bf16.mxu1 %vm2181_vm0, %v2267_v54  ;;  %8650 = vmatprep.mubr.msk.bf16.mxu0 %vm2181_vm0, %v9339_v51  ;;  %v9361_v51 = vld [vmem:[%s11946_s3 + $0x98] sm:$0xff]  }
 0x402   : > { %8635 = vmatmul.mubr.msk.bf16.vlgmr.msra.gmra.mxu1 %vm2181_vm0, %v2268_v46 }
 0x403   : > { %8638 = vmatprep.mubr.msk.bf16.mxu1 %vm2181_vm0, %v2269_v31 }
 0x40a   : > { %8639 = vmatmul.mubr.msk.bf16.gmra.mxu1 %vm2181_vm0, %v2270_v48 }
 0x40b   : > { %8666 = vmatprep.mubr.msk.bf16.mxu1 %vm2181_vm0, %v9337_v34 }
 0x494   : > { %v2445_v7 = vpop.f32.mrf.mxu1  ;;  %v2518_v60 = vpop.f32.mrf.mxu0 }
 0x496   : > { %v2447_v25 = vpop.f32.mrf.mxu1  ;;  %v2520_v28 = vpop.f32.mrf.mxu0 }
 0x498   : > { %v2449_v20 = vpop.f32.mrf.mxu1  ;;  %v2522_v4 = vpop.f32.mrf.mxu0 }
 0x499   : > { %v2622_v23 = vpack.c.bf16 %v2449_v20, %v2445_v7  ;;  %v10493_v52 = vpack.c.bf16 %v2522_v4, %v2518_v60  ;;  %v9341_v60 = vld [vmem:[%s11946_s3 + $0x28] sm:$0xff]   ;;  %v9343_v20 = vld [vmem:[%s11946_s3 + $0x30] sm:$0xff]  }
 0x49a   : > { %v2451_v30 = vpop.f32.mrf.mxu1  ;;  %v2524_v40 = vpop.f32.mrf.mxu0 }
 0x49b   : > { %v10480_v43 = vpack.c.bf16 %v2451_v30, %v2447_v25  ;;  %v10505_v15 = vpack.c.bf16 %v2524_v40, %v2520_v28  ;;  %v9345_v30 = vld [vmem:[%s11946_s3 + $0x38] sm:$0xff]   ;;  %v9349_v40 = vld [vmem:[%s11946_s3 + $0x48] sm:$0xff]  }
 0x49c   : > { %v2455_v12 = vpop.f32.mrf.mxu1  ;;  %v2528_v27 = vpop.f32.mrf.mxu0 }
 0x49e   : > { %v2457_v9 = vpop.f32.mrf.mxu1  ;;  %v10468_v53 = vpop.f32.mrf.mxu0 }
 0x4a0   : > { %v2459_v6 = vpop.f32.mrf.mxu1  ;;  %v2532_v47 = vpop.f32.mrf.mxu0 }
 0x4a1   : > { %v2627_v38 = vpack.c.bf16 %v2459_v6, %v2455_v12  ;;  %v10523_v26 = vpack.c.bf16 %v2532_v47, %v2528_v27  ;;  %v9346_v12 = vld [vmem:[%s11946_s3 + $0x68] sm:$0xff]   ;;  %v9348_v6 = vld [vmem:[%s11946_s3 + $0x70] sm:$0xff]   ;;  %v9352_v47 = vld [vmem:[%s11946_s3 + $0xa0] sm:$0xff]  }
 0x4a2   : > { %v2461_v50 = vpop.f32.mrf.mxu1  ;;  %v10470_v8 = vpop.f32.mrf.mxu0 }
 0x4a3   : > { %2685 = vrot.lane.b32.xlu1 %v2627_v38, %s9608_s18  ;;  %v10501_v54 = vpack.c.bf16 %v2461_v50, %v2457_v9  ;;  %v10541_v19 = vpack.c.bf16 %v10470_v8, %v10468_v53  ;;  %v9347_v9 = vld [vmem:[%s11946_s3 + $0x40] sm:$0xff]   ;;  %v9351_v53 = vld [vmem:[%s11946_s3 + $0x50] sm:$0xff]  }
 0x4a7   : > { %2683 = vrot.lane.b32.xlu1 %v2622_v23, %s9608_s18 }
 0x4b2   : > { %v2465_v11 = vpop.f32.mrf.mxu1  ;;  %v2538_v24 = vpop.f32.mrf.mxu0 }
 0x4b4   : > { %v2467_v44 = vpop.f32.mrf.mxu1  ;;  %v2540_v63 = vpop.f32.mrf.mxu0 }
 0x4b6   : > { %v2469_v41 = vpop.f32.mrf.mxu1  ;;  %v2542_v10 = vpop.f32.mrf.mxu0 }
 0x4b7   : > { %v2632_v18 = vpack.c.bf16 %v2469_v41, %v2465_v11  ;;  %v10484_v2 = vpack.c.bf16 %v2542_v10, %v2538_v24  ;;  %v9353_v11 = vld [vmem:[%s11946_s3 + $0x58] sm:$0xff]   ;;  %v9354_v24 = vld [vmem:[%s11946_s3 + $0xa8] sm:$0xff]  }
 0x4b8   : > { %v2471_v61 = vpop.f32.mrf.mxu1  ;;  %v2544_v3 = vpop.f32.mrf.mxu0  ;;  %v9358_v10 = vld [vmem:[%s11946_s3 + $0xb8] sm:$0xff]  }
 0x4b9   : > { %v10472_v5 = vpack.c.bf16 %v2471_v61, %v2467_v44  ;;  %v10498_v16 = vpack.c.bf16 %v2544_v3, %v2540_v63  ;;  %v9355_v63 = vld [vmem:[%s11946_s3 + $0x80] sm:$0xff]   ;;  %v9356_v61 = vld [vmem:[%s11946_s3 + $0xb0] sm:$0xff]  }
 0x4ba   : > { %v2475_v39 = vpop.f32.mrf.mxu1  ;;  %v2548_v42 = vpop.f32.mrf.mxu0 }
 0x4bb   : > { %3020 = vrot.lane.b32.xlu1 %v10472_v5, %s9608_s18 }
 0x4bc   : > { %v2477_v37 = vpop.f32.mrf.mxu1  ;;  %v2550_v22 = vpop.f32.mrf.mxu0 }
 0x4be   : > { %v2479_v55 = vpop.f32.mrf.mxu1  ;;  %v2552_v36 = vpop.f32.mrf.mxu0 }
 0x4bf   : > { %v2637_v56 = vpack.c.bf16 %v2479_v55, %v2475_v39  ;;  %3016 = vrot.lane.b32.xlu1 %v10480_v43, %s9608_s18  ;;  %v10515_v46 = vpack.c.bf16 %v2552_v36, %v2548_v42  ;;  %v9357_v39 = vld [vmem:[%s11946_s3 + $0x88] sm:$0xff]   ;;  %v9359_v55 = vld [vmem:[%s11946_s3 + $0x90] sm:$0xff]  }
 0x4c0   : > { %v2481_v45 = vpop.f32.mrf.mxu1  ;;  %v2554_v33 = vpop.f32.mrf.mxu0  ;;  %v9362_v42 = vld [vmem:[%s11946_s3 + $0xe8] sm:$0xff]  }
 0x4c1   : > { %2689 = vrot.lane.b32.xlu0 %v2637_v56, %s9608_s18  ;;  %8658 = vmatprep.subr.bf16.mxu1 %v2637_v56  ;;  %v2638_v32 = vpack.c.bf16 %v2481_v45, %v2477_v37  ;;  %v10533_v1 = vpack.c.bf16 %v2554_v33, %v2550_v22  ;;  %v9369_v22 = vld [vmem:[%s11946_s3 + $0xc0] sm:$0xff]  }
 0x4c2   : > { %8659 = vmatpush3.bf16.msra.mxu1 %v2637_v56  ;;  %v10590_v50 = vpop.f32.mrf.mxu1  ;;  %v9360_v56 = vld [vmem:[%s11946_s3 + $0xe0] sm:$0xff]  }
 0x4c3   : > { %3264 = vrot.lane.b32.xlu1 %v10484_v2, %s9608_s18  ;;  %8660 = vmatprep.subr.bf16.mxu1 %v2632_v18  ;;  %v9366_v36 = vld [vmem:[%s11950_s7 + $0x20] ss:$8 sps:$4 sm:$0xff]  }
 0x4c4   : > { %v10602_v44 = vpop.f32.mrf.mxu1 }
 0x4c5   : > { %2687 = vrot.lane.b32.xlu0 %v2632_v18, %s9608_s18 }
 0x4c6   : > { %8661 = vmatpush3.bf16.msra.mxu1 %v2632_v18 }
 0x4c7   : > { %3260 = vrot.lane.b32.xlu1 %v10493_v52, %s9608_s18  ;;  %8662 = vmatprep.subr.bf16.mxu1 %v2627_v38 }
 0x4c9   : > { %3022 = vrot.lane.b32.xlu0 %v2638_v32, %s9608_s18 }
 0x4ca   : > { %8663 = vmatpush3.bf16.msra.mxu1 %v2627_v38 }
 0x4cb   : > { %3508 = vrot.lane.b32.xlu1 %v10498_v16, %s9608_s18  ;;  %8664 = vmatprep.subr.bf16.mxu1 %v2622_v23 }
 0x4cd   : > { %3018 = vrot.lane.b32.xlu0 %v10501_v54, %s9608_s18 }
 0x4ce   : > { %8665 = vmatpush3.bf16.msra.mxu1 %v2622_v23  ;;  %v9350_v23 = vld [vmem:[%s11946_s3 + $0x78] sm:$0xff]  }
 0x4cf   : > { %3504 = vrot.lane.b32.xlu1 %v10505_v15, %s9608_s18 }
 0x4d1   : > { %3266 = vrot.lane.b32.xlu0 %v10515_v46, %s9608_s18  ;;  %8667 = vmatmul.mubr.msk.bf16.vlgmr.msra.gmra.mxu1 %vm2181_vm0, %v9338_v21  ;;  %v9375_v21 = vld [vmem:[%s11950_s7 + $0x14] ss:$8 sps:$4 sm:$0xff]  }
 0x4d2   : > { %8670 = vmatprep.mubr.msk.bf16.mxu1 %vm2181_vm0, %v9340_v0 }
 0x4d5   : > { %3262 = vrot.lane.b32.xlu0 %v10523_v26, %s9608_s18 }
 0x4d9   : > { %3510 = vrot.lane.b32.xlu0 %v10533_v1, %s9608_s18  ;;  %8671 = vmatmul.mubr.msk.bf16.gmra.mxu1 %vm2181_vm0, %v9342_v35  ;;  %v9373_v35 = vld [vmem:[%s11950_s7 + $0x10] ss:$8 sps:$4 sm:$0xff]  }
 0x4da   : > { %8698 = vmatprep.mubr.msk.bf16.mxu1 %vm2181_vm0, %v9344_v59  ;;  %v9378_v59 = vld [vmem:[%s11950_s7 + $0x4] ss:$8 sps:$4 sm:$0xff]  }
 0x4dd   : > { %3506 = vrot.lane.b32.xlu0 %v10541_v19, %s9608_s18 }
 0x515   : > { %v2686_v29 = vpop.permute.xlu1 %2685 }
 0x519   : > { %v2684_v17 = vpop.permute.xlu1 %2683 }
 0x52d   : > { %v3021_v7 = vpop.permute.xlu1 %3020 }
 0x531   : > { %v3017_v28 = vpop.permute.xlu1 %3016 }
 0x533   : > { %v2690_v31 = vpop.permute.xlu0 %2689 }
 0x534   : > { %8642 = vmatprep.subr.bf16.mxu0 %v2690_v31 }
 0x535   : > { %8643 = vmatpush3.bf16.msra.mxu0 %v2690_v31  ;;  %v3265_v38 = vpop.permute.xlu1 %3264  ;;  %v9380_v31 = vld [vmem:[%s11946_s3 + $0xd8] sm:$0xff]  }
 0x537   : > { %v2688_v13 = vpop.permute.xlu0 %2687 }
 0x538   : > { %8644 = vmatprep.subr.bf16.mxu0 %v2688_v13 }
 0x539   : > { %8645 = vmatpush3.bf16.msra.mxu0 %v2688_v13  ;;  %v3261_v8 = vpop.permute.xlu1 %3260  ;;  %v9381_v13 = vld [vmem:[%s11946_s3 + $0x100] sm:$0xff]  }
 0x53a   : > { %8646 = vmatprep.subr.bf16.mxu0 %v2686_v29 }
 0x53b   : > { %v3023_v48 = vpop.permute.xlu0 %3022 }
 0x53c   : > { %8690 = vmatprep.subr.bf16.mxu1 %v3023_v48 }
 0x53d   : > { %8647 = vmatpush3.bf16.msra.mxu0 %v2686_v29  ;;  %8691 = vmatpush3.bf16.msra.mxu1 %v3023_v48  ;;  %v3509_v34 = vpop.permute.xlu1 %3508  ;;  %v9382_v48 = vld [vmem:[%s11946_s3 + $0x108] sm:$0xff]  }
 0x53e   : > { %8648 = vmatprep.subr.bf16.mxu0 %v2684_v17  ;;  %8692 = vmatprep.subr.bf16.mxu1 %v3021_v7 }
 0x53f   : > { %v3019_v25 = vpop.permute.xlu0 %3018 }
 0x541   : > { %8649 = vmatpush3.bf16.msra.mxu0 %v2684_v17  ;;  %8693 = vmatpush3.bf16.msra.mxu1 %v3021_v7  ;;  %v3505_v18 = vpop.permute.xlu1 %3504  ;;  %v9383_v7 = vld [vmem:[%s11946_s3 + $0x110] sm:$0xff]  }
 0x542   : > { %8674 = vmatprep.subr.bf16.mxu0 %v2638_v32  ;;  %8694 = vmatprep.subr.bf16.mxu1 %v3019_v25 }
 0x543   : > { %v3267_v4 = vpop.permute.xlu0 %3266 }
 0x544   : > { %8651 = vmatmul.mubr.msk.bf16.vlgmr.msra.gmra.mxu0 %vm2181_vm0, %v9341_v60  ;;  %v9385_v60 = vld [vmem:[%s11949_s6 + $0x30] ss:$8 sps:$4 sm:$0xff]  }
 0x545   : > { %8675 = vmatpush3.bf16.msra.mxu0 %v2638_v32  ;;  %8695 = vmatpush3.bf16.msra.mxu1 %v3019_v25  ;;  %v9368_v32 = vld [vmem:[%s11950_s7 + $0x24] ss:$8 sps:$4 sm:$0xff]   ;;  %v9388_v25 = vld [vmem:[%s11949_s6 + $0x20] ss:$8 sps:$4 sm:$0xff]  }
 0x546   : > { %8676 = vmatprep.subr.bf16.mxu0 %v10472_v5  ;;  %8696 = vmatprep.subr.bf16.mxu1 %v3017_v28 }
 0x547   : > { %8654 = vmatprep.mubr.msk.bf16.mxu0 %vm2181_vm0, %v9343_v20  ;;  %v3263_v27 = vpop.permute.xlu0 %3262  ;;  %v9391_v20 = vld [vmem:[%s11949_s6 + $0x10] ss:$8 sps:$4 sm:$0xff]  }
 0x549   : > { %8677 = vmatpush3.bf16.msra.mxu0 %v10472_v5  ;;  %8697 = vmatpush3.bf16.msra.mxu1 %v3017_v28  ;;  %v10614_v5 = vpop.f32.mrf.mxu1  ;;  %v9396_v28 = vld [vmem:[%s11949_s6 + $0x4] ss:$8 sps:$4 sm:$0xff]  }
 0x54a   : > { %8678 = vmatprep.subr.bf16.mxu0 %v10501_v54  ;;  %8722 = vmatprep.subr.bf16.mxu1 %v3267_v4  ;;  %v2631_v29 = vpack.c.bf16 %v10614_v5, %v10590_v50  ;;  %v9404_v50 = vld [vmem:[%s11951_s8 + $0x20] sm:$0xff]  }
 0x54b   : > { %v3511_v41 = vpop.permute.xlu0 %3510  ;;  %v10626_v37 = vpop.f32.mrf.mxu1 }
 0x54c   : > { %8655 = vmatmul.mubr.msk.bf16.gmra.mxu0 %vm2181_vm0, %v9345_v30  ;;  %8699 = vmatmul.mubr.msk.bf16.vlgmr.msra.gmra.mxu1 %vm2181_vm0, %v9346_v12  ;;  %v2626_v17 = vpack.c.bf16 %v10626_v37, %v10602_v44  ;;  %v9394_v30 = vld [vmem:[%s11949_s6] ss:$8 sps:$4 sm:$0xff]   ;;  %v9397_v12 = vld [vmem:[%s11951_s8 + $0x78] sm:$0xff]  }
 0x54d   : > { %8679 = vmatpush3.bf16.msra.mxu0 %v10501_v54  ;;  %8723 = vmatpush3.bf16.msra.mxu1 %v3267_v4  ;;  %v8640_v3 = vpop.f32.mrf.mxu1  ;;  %v9398_v4 = vld [vmem:[%s11951_s8 + $0x38] sm:$0xff]  }
 0x54e   : > { %8680 = vmatprep.subr.bf16.mxu0 %v10480_v43  ;;  %8724 = vmatprep.subr.bf16.mxu1 %v3265_v38 }
 0x54f   : > { %8682 = vmatprep.mubr.msk.bf16.mxu0 %vm2181_vm0, %v9347_v9  ;;  %8702 = vmatprep.mubr.msk.bf16.mxu1 %vm2181_vm0, %v9348_v6  ;;  %v2607_v45 = vpop.f32.mrf.mxu1  ;;  %v9399_v9 = vld [vmem:[%s11951_s8 + $0x70] sm:$0xff]  }
 0x551   : > { %8681 = vmatpush3.bf16.msra.mxu0 %v10480_v43  ;;  %8725 = vmatpush3.bf16.msra.mxu1 %v3265_v38  ;;  %v3507_v43 = vpop.permute.xlu0 %3506  ;;  %v8641_v54 = vpop.f32.mrf.mxu1  ;;  %v9400_v38 = vld [vmem:[%s11951_s8 + $0x30] sm:$0xff]  }
 0x552   : > { %8706 = vmatprep.subr.bf16.mxu0 %v10515_v46  ;;  %8726 = vmatprep.subr.bf16.mxu1 %v3263_v27  ;;  %v2641_v0 = vpack.c.bf16 %v8641_v54, %v8640_v3 }
 0x553   : > { %v2610_v33 = vpop.f32.mrf.mxu1 }
 0x554   : > { %8683 = vmatmul.mubr.msk.bf16.vlgmr.msra.gmra.mxu0 %vm2181_vm0, %v9349_v40  ;;  %8703 = vmatmul.mubr.msk.bf16.gmra.mxu1 %vm2181_vm0, %v9350_v23  ;;  %v9401_v40 = vld [vmem:[%s11951_s8 + $0x68] sm:$0xff]  }
 0x555   : > { %8707 = vmatpush3.bf16.msra.mxu0 %v10515_v46  ;;  %8727 = vmatpush3.bf16.msra.mxu1 %v3263_v27  ;;  %v9371_v46 = vld [vmem:[%s11946_s3 + $0xc8] sm:$0xff]  }
 0x556   : > { %8708 = vmatprep.subr.bf16.mxu0 %v10484_v2  ;;  %8728 = vmatprep.subr.bf16.mxu1 %v3261_v8  ;;  %v9402_v27 = vld [vmem:[%s11951_s8 + $0x28] sm:$0xff]  }
 0x557   : > { %8686 = vmatprep.mubr.msk.bf16.mxu0 %vm2181_vm0, %v9351_v53  ;;  %8730 = vmatprep.mubr.msk.bf16.mxu1 %vm2181_vm0, %v9352_v47  ;;  %v9403_v53 = vld [vmem:[%s11951_s8 + $0x60] sm:$0xff]  }
 0x559   : > { %8709 = vmatpush3.bf16.msra.mxu0 %v10484_v2  ;;  %8729 = vmatpush3.bf16.msra.mxu1 %v3261_v8  ;;  %v9365_v2 = vld [vmem:[%s11950_s7 + $0x34] ss:$8 sps:$4 sm:$0xff]  }
 0x55a   : > { %8710 = vmatprep.subr.bf16.mxu0 %v10523_v26  ;;  %8754 = vmatprep.subr.bf16.mxu1 %v3511_v41  ;;  %v9405_v8 = vld [vmem:[%s11951_s8 + $0x58] sm:$0xff]  }
 0x55c   : > { %8687 = vmatmul.mubr.msk.bf16.gmra.mxu0 %vm2181_vm0, %v9353_v11  ;;  %8731 = vmatmul.mubr.msk.bf16.vlgmr.msra.gmra.mxu1 %vm2181_vm0, %v9354_v24  ;;  %v9406_v24 = vld [vmem:[%s11951_s8 + $0x18] sm:$0xff]  }
 0x55d   : > { %8711 = vmatpush3.bf16.msra.mxu0 %v10523_v26  ;;  %8755 = vmatpush3.bf16.msra.mxu1 %v3511_v41  ;;  %v9372_v26 = vld [vmem:[%s11946_s3 + $0xf8] sm:$0xff]  }
 0x55e   : > { %8712 = vmatprep.subr.bf16.mxu0 %v10493_v52  ;;  %8756 = vmatprep.subr.bf16.mxu1 %v3509_v34 }
 0x55f   : > { %8714 = vmatprep.mubr.msk.bf16.mxu0 %vm2181_vm0, %v9355_v63  ;;  %8734 = vmatprep.mubr.msk.bf16.mxu1 %vm2181_vm0, %v9356_v61 }
 0x561   : > { %8713 = vmatpush3.bf16.msra.mxu0 %v10493_v52  ;;  %8757 = vmatpush3.bf16.msra.mxu1 %v3509_v34  ;;  %v9363_v52 = vld [vmem:[%s11950_s7 + $0x30] ss:$8 sps:$4 sm:$0xff]  }
 0x562   : > { %8738 = vmatprep.subr.bf16.mxu0 %v10533_v1  ;;  %8758 = vmatprep.subr.bf16.mxu1 %v3507_v43 }
 0x564   : > { %8715 = vmatmul.mubr.msk.bf16.vlgmr.msra.gmra.mxu0 %vm2181_vm0, %v9357_v39  ;;  %8735 = vmatmul.mubr.msk.bf16.gmra.mxu1 %vm2181_vm0, %v9358_v10 }
 0x565   : > { %8739 = vmatpush3.bf16.msra.mxu0 %v10533_v1  ;;  %8759 = vmatpush3.bf16.msra.mxu1 %v3507_v43  ;;  %v9379_v1 = vld [vmem:[%s11946_s3 + $0xd0] sm:$0xff]  }
 0x566   : > { %8740 = vmatprep.subr.bf16.mxu0 %v10498_v16  ;;  %8760 = vmatprep.subr.bf16.mxu1 %v3505_v18 }
 0x567   : > { %8718 = vmatprep.mubr.msk.bf16.mxu0 %vm2181_vm0, %v9359_v55  ;;  %8762 = vmatprep.mubr.msk.bf16.mxu1 %vm2181_vm0, %v9360_v56 }
 0x569   : > { %8741 = vmatpush3.bf16.msra.mxu0 %v10498_v16  ;;  %8761 = vmatpush3.bf16.msra.mxu1 %v3505_v18  ;;  %v9370_v16 = vld [vmem:[%s11946_s3 + $0xf0] sm:$0xff]  }
 0x56a   : > { %8742 = vmatprep.subr.bf16.mxu0 %v10541_v19  ;;  %3791 = vmatprep.subr.bf16.mxu1 %v9365_v2 }
 0x56c   : > { %8719 = vmatmul.mubr.msk.bf16.gmra.mxu0 %vm2181_vm0, %v9361_v51  ;;  %8763 = vmatmul.mubr.msk.bf16.vlgmr.msra.gmra.mxu1 %vm2181_vm0, %v9362_v42 }
 0x56d   : > { %8743 = vmatpush3.bf16.msra.mxu0 %v10541_v19  ;;  %3792 = vmatpush1.bf16.msra.mxu1 %v9363_v52  ;;  %v2636_v19 = vpack.c.bf16 %v2610_v33, %v2607_v45 }
 0x56e   : > { %8744 = vmatprep.subr.bf16.mxu0 %v10505_v15  ;;  %3793 = vmatprep.subr.bf16.mxu1 %v9368_v32 }
 0x56f   : > { %8746 = vmatprep.mubr.msk.bf16.mxu0 %vm2181_vm0, %v9369_v22  ;;  %8766 = vmatprep.mubr.msk.bf16.mxu1 %vm2181_vm0, %v9370_v16 }
 0x571   : > { %8745 = vmatpush3.bf16.msra.mxu0 %v10505_v15  ;;  %3794 = vmatpush1.bf16.msra.mxu1 %v9366_v36  ;;  %v9376_v15 = vld [vmem:[%s11950_s7] ss:$8 sps:$4 sm:$0xff]  }
 0x572   : > { %8770 = vmatprep.subr.bf16.mxu0 %v2641_v0  ;;  %3795 = vmatprep.subr.bf16.mxu1 %v9375_v21 }
 0x574   : > { %8747 = vmatmul.mubr.msk.bf16.vlgmr.msra.gmra.mxu0 %vm2181_vm0, %v9371_v46  ;;  %8767 = vmatmul.mubr.msk.bf16.gmra.mxu1 %vm2181_vm0, %v9372_v26 }
 0x575   : > { %8771 = vmatpush3.bf16.msra.mxu0 %v2641_v0  ;;  %3796 = vmatpush1.bf16.msra.mxu1 %v9373_v35 }
 0x576   : > { %8772 = vmatprep.subr.bf16.mxu0 %v2636_v19  ;;  %3797 = vmatprep.subr.bf16.mxu1 %v9378_v59 }
 0x577   : > { %8750 = vmatprep.mubr.msk.bf16.mxu0 %vm2181_vm0, %v9379_v1  ;;  %3815 = vmatprep.mubr.bf16.mxu1 %v11960_v58 }
 0x579   : > { %8773 = vmatpush3.bf16.msra.mxu0 %v2636_v19  ;;  %3798 = vmatpush1.bf16.msra.mxu1 %v9376_v15 }
 0x57a   : > { %8774 = vmatprep.subr.bf16.mxu0 %v2631_v29  ;;  %8348 = vmatprep.subr.bf16.mxu1 %v9397_v12 }
 0x57c   : > { %8751 = vmatmul.mubr.msk.bf16.gmra.mxu0 %vm2181_vm0, %v9380_v31  ;;  %7559 = vmatmul.mubr.msk.bf16.vlgmr.msra.gmra.mxu1 %vm2181_vm0, %v10365_v49  ;;  %v9384_v49 = vld [vmem:[%s11946_s3 + $0x118] sm:$0xff]  }
 0x57d   : > { %8775 = vmatpush3.bf16.msra.mxu0 %v2631_v29  ;;  %8778 = vmatprep.mubr.msk.bf16.mxu0 %vm2181_vm0, %v9381_v13 }
 0x57e   : > { %8776 = vmatprep.subr.bf16.mxu0 %v2626_v17  ;;  %3825 = vmatprep.mubr.bf16.mxu1 %v11960_v58 }
 0x57f   : > { %8349 = vmatpush3.bf16.msra.mxu1 %v9398_v4 }
 0x580   : > { %8350 = vmatprep.subr.bf16.mxu1 %v9399_v9 }
 0x581   : > { %8777 = vmatpush3.bf16.msra.mxu0 %v2626_v17 }
 0x583   : > { %8351 = vmatpush3.bf16.msra.mxu1 %v9400_v38 }
 0x584   : > { %8779 = vmatmul.mubr.msk.bf16.vlgmr.msra.gmra.mxu0 %vm2181_vm0, %v9382_v48  ;;  %7560 = vmatmul.mubr.msk.bf16.gmra.mxu1 %vm2181_vm0, %v10372_v14  ;;  %v9387_v14 = vld [vmem:[%s11949_s6 + $0x34] ss:$8 sps:$4 sm:$0xff]  }
 0x585   : > { %8782 = vmatprep.mubr.msk.bf16.mxu0 %vm2181_vm0, %v9383_v7  ;;  %3835 = vmatprep.mubr.bf16.mxu1 %v11960_v58 }
 0x586   : > { %3916 = vmatprep.subr.bf16.mxu0 %v9387_v14  ;;  %8352 = vmatprep.subr.bf16.mxu1 %v9401_v40 }
 0x587   : > { %3917 = vmatpush1.bf16.msra.mxu0 %v9385_v60  ;;  %8353 = vmatpush3.bf16.msra.mxu1 %v9402_v27 }
 0x588   : > { %8354 = vmatprep.subr.bf16.mxu1 %v9403_v53 }
 0x58b   : > { %8355 = vmatpush3.bf16.msra.mxu1 %v9404_v50 }
 0x58c   : > { %8783 = vmatmul.mubr.msk.bf16.gmra.mxu0 %vm2181_vm0, %v9384_v49  ;;  %7561 = vmatmul.mubr.msk.bf16.gmra.mxu1 %vm2181_vm0, %v10402_v62  ;;  %v9390_v62 = vld [vmem:[%s11949_s6 + $0x24] ss:$8 sps:$4 sm:$0xff]  }
 0x58d   : > { %3845 = vmatprep.mubr.bf16.mxu1 %v11960_v58  ;;  %3940 = vmatprep.mubr.bf16.mxu0 %v11960_v58 }
 0x58e   : > { %3918 = vmatprep.subr.bf16.mxu0 %v9390_v62  ;;  %8356 = vmatprep.subr.bf16.mxu1 %v9405_v8 }
 0x58f   : > { %3919 = vmatpush1.bf16.msra.mxu0 %v9388_v25  ;;  %8357 = vmatpush3.bf16.msra.mxu1 %v9406_v24 }
 0x591   : > { %v10769_v6 = vpop.f32.mrf.mxu1 }
 0x593   : > { %v2838_v23 = vpop.f32.mrf.mxu1 }
 0x594   : > { %7562 = vmatmul.mubr.msk.bf16.gmra.mxu1 %vm2181_vm0, %v10406_v57  ;;  %v9393_v57 = vld [vmem:[%s11949_s6 + $0x14] ss:$8 sps:$4 sm:$0xff]  }
 0x595   : > { %3920 = vmatprep.subr.bf16.mxu0 %v9393_v57  ;;  %v10783_v47 = vpop.f32.mrf.mxu1 }
 0x596   : > { %3921 = vmatpush1.bf16.msra.mxu0 %v9391_v20 }
 0x597   : > { %3922 = vmatprep.subr.bf16.mxu0 %v9396_v28  ;;  %v2841_v11 = vpop.f32.mrf.mxu1 }
 0x599   : > { %v8672_v44 = vpop.f32.mrf.mxu1 }
 0x59a   : > { %3923 = vmatpush1.bf16.msra.mxu0 %v9394_v30 }
 0x59b   : > { %v10794_v41 = vpop.f32.mrf.mxu1 }
 0x59d   : > { %v8673_v61 = vpop.f32.mrf.mxu1 }
 0x59f   : > { %v10796_v39 = vpop.f32.mrf.mxu1 }
 0x604   : > { %v8652_v63 = vpop.f32.mrf.mxu0 }
 0x605   : > { %v2847_v8 = vadd.f32 %v10769_v6, %v8652_v63 }
 0x606   : > { %v2741_v5 = vpop.f32.mrf.mxu0 }
 0x607   : > { %v2839_v57 = vadd.f32 %v2838_v23, %v2741_v5 }
 0x608   : > { %v8653_v34 = vpop.f32.mrf.mxu0 }
 0x609   : > { %v2850_v27 = vadd.f32 %v10783_v47, %v8653_v34 }
 0x60a   : > { %v2744_v10 = vpop.f32.mrf.mxu0 }
 0x60b   : > { %v2842_v30 = vadd.f32 %v2841_v11, %v2744_v10 }
 0x60c   : > { %v8656_v37 = vpop.f32.mrf.mxu0  ;;  %v10798_v43 = vpop.f32.mrf.mxu1 }
 0x60d   : > { %v2863_v53 = vadd.f32 %v8672_v44, %v8656_v37 }
 0x60e   : > { %v10800_v55 = vpop.f32.mrf.mxu0  ;;  %v3074_v56 = vpop.f32.mrf.mxu1 }
 0x610   : > { %v8657_v3 = vpop.f32.mrf.mxu0  ;;  %v8701_v18 = vpop.f32.mrf.mxu1 }
 0x611   : > { %v2866_v24 = vadd.f32 %v8673_v61, %v8657_v3 }
 0x612   : > { %v2760_v2 = vpop.f32.mrf.mxu0  ;;  %v3077_v51 = vpop.f32.mrf.mxu1 }
 0x613   : > { %v2858_v44 = vadd.f32 %v10796_v39, %v2760_v2 }
 0x614   : > { %v8684_v42 = vpop.f32.mrf.mxu0  ;;  %v8704_v45 = vpop.f32.mrf.mxu1 }
 0x616   : > { %v2944_v52 = vpop.f32.mrf.mxu0  ;;  %v10802_v32 = vpop.f32.mrf.mxu1 }
 0x617   : > { %v2975_v12 = vadd.f32 %v2944_v52, %v2839_v57 }
 0x618   : > { %v8685_v22 = vpop.f32.mrf.mxu0  ;;  %v8705_v16 = vpop.f32.mrf.mxu1 }
 0x619   : > { %v3105_v50 = vadd.f32 %v3074_v56, %v2975_v12 }
 0x61a   : > { %v2947_v54 = vpop.f32.mrf.mxu0  ;;  %v10804_v36 = vpop.f32.mrf.mxu1 }
 0x61b   : > { %v2976_v9 = vadd.f32 %v2947_v54, %v2842_v30 }
 0x61c   : > { %v8688_v21 = vpop.f32.mrf.mxu0  ;;  %v10806_v0 = vpop.f32.mrf.mxu1 }
 0x61d   : > { %v3106_v5 = vadd.f32 %v3077_v51, %v2976_v9 }
 0x61e   : > { %v2960_v46 = vpop.f32.mrf.mxu0  ;;  %v3318_v26 = vpop.f32.mrf.mxu1 }
 0x620   : > { %v8689_v33 = vpop.f32.mrf.mxu0  ;;  %v8733_v35 = vpop.f32.mrf.mxu1 }
 0x622   : > { %v2963_v59 = vpop.f32.mrf.mxu0  ;;  %v3321_v1 = vpop.f32.mrf.mxu1 }
 0x624   : > { %v8716_v19 = vpop.f32.mrf.mxu0  ;;  %v8736_v15 = vpop.f32.mrf.mxu1 }
 0x626   : > { %v3188_v29 = vpop.f32.mrf.mxu0  ;;  %v10808_v13 = vpop.f32.mrf.mxu1 }
 0x627   : > { %12038 = vst [vmem:[#allocation4_spill] sm:$0xff] %v10808_v13  ;;  %v2978_v13 = vadd.f32 %v8685_v22, %v2850_v27  ;;  %v3219_v23 = vadd.f32 %v3188_v29, %v3105_v50  ;;  %v2980_v22 = vadd.f32 %v2963_v59, %v2858_v44 }
 0x628   : > { %v8717_v31 = vpop.f32.mrf.mxu0  ;;  %v8737_v7 = vpop.f32.mrf.mxu1 }
 0x629   : > { %v3108_v57 = vadd.f32 %v8701_v18, %v2978_v13  ;;  %v3349_v47 = vadd.f32 %v3318_v26, %v3219_v23  ;;  %v3110_v13 = vadd.f32 %v10804_v36, %v2980_v22 }
 0x62a   : > { %v3191_v17 = vpop.f32.mrf.mxu0  ;;  %v10812_v60 = vpop.f32.mrf.mxu1 }
 0x62b   : > { %12040 = vst [vmem:[#allocation2_spill] sm:$0xff] %v10812_v60  ;;  %v2981_v60 = vadd.f32 %v8688_v21, %v2863_v53  ;;  %v3220_v52 = vadd.f32 %v3191_v17, %v3106_v5  ;;  %v3222_v37 = vadd.f32 %v8717_v31, %v3108_v57 }
 0x62c   : > { %v8720_v48 = vpop.f32.mrf.mxu0  ;;  %v10814_v20 = vpop.f32.mrf.mxu1 }
 0x62d   : > { %12041 = vst [vmem:[#allocation3_spill] sm:$0xff] %v10814_v20  ;;  %v2977_v20 = vadd.f32 %v8684_v42, %v2847_v8  ;;  %v3111_v30 = vadd.f32 %v8704_v45, %v2981_v60  ;;  %v3350_v51 = vadd.f32 %v3321_v1, %v3220_v52  ;;  %v2855_v42 = vadd.f32 %v10794_v41, %v10800_v55 }
 0x62e   : > { %v10810_v49 = vpop.f32.mrf.mxu0  ;;  %v3562_v38 = vpop.f32.mrf.mxu1  ;;  %v3352_v2 = vadd.f32 %v8733_v35, %v3222_v37 }
 0x62f   : > { %12039 = vst [vmem:[#allocation5_spill] sm:$0xff] %v10810_v49  ;;  %v2982_v49 = vadd.f32 %v8689_v33, %v2866_v24  ;;  %v3107_v6 = vadd.f32 %v10798_v43, %v2977_v20  ;;  %v3225_v56 = vadd.f32 %v8720_v48, %v3111_v30  ;;  %v2979_v26 = vadd.f32 %v2960_v46, %v2855_v42  ;;  %v12045_v24 = vld [vmem:[#allocation4_spill] sm:$0xff] }
 0x630   : > { %v8721_v14 = vpop.f32.mrf.mxu0  ;;  %v8765_v11 = vpop.f32.mrf.mxu1 }
 0x631   : > { %v3112_v63 = vadd.f32 %v8705_v16, %v2982_v49  ;;  %v3221_v21 = vadd.f32 %v8716_v19, %v3107_v6  ;;  %v3355_v43 = vadd.f32 %v8736_v15, %v3225_v56  ;;  %v3109_v59 = vadd.f32 %v10802_v32, %v2979_v26  ;;  %v9410_v26 = vld [vmem:[%s11951_s8 + $0x8] sm:$0xff]  }
 0x632   : > { %v3207_v62 = vpop.f32.mrf.mxu0  ;;  %v3565_v61 = vpop.f32.mrf.mxu1 }
 0x633   : > { %v3226_v33 = vadd.f32 %v8721_v14, %v3112_v63  ;;  %v3351_v31 = vadd.f32 %v10806_v0, %v3221_v21  ;;  %v3224_v19 = vadd.f32 %v3207_v62, %v3110_v13 }
 0x634   : > { %v8748_v25 = vpop.f32.mrf.mxu0  ;;  %v8768_v29 = vpop.f32.mrf.mxu1 }
 0x635   : > { %v3356_v17 = vadd.f32 %v8737_v7, %v3226_v33  ;;  %v3465_v14 = vadd.f32 %v8748_v25, %v3351_v31 }
 0x636   : > { %v3432_v28 = vpop.f32.mrf.mxu0  ;;  %v3578_v46 = vpop.f32.mrf.mxu1  ;;  %v12042_v15 = vld [vmem:[#allocation5_spill] sm:$0xff] }
 0x637   : > { %v3463_v3 = vadd.f32 %v3432_v28, %v3349_v47  ;;  %v3223_v28 = vadd.f32 %v12042_v15, %v3109_v59 }
 0x638   : > { %v8749_v4 = vpop.f32.mrf.mxu0 }
 0x639   : > { %v3593_v16 = vadd.f32 %v3562_v38, %v3463_v3  ;;  %v3466_v48 = vadd.f32 %v8749_v4, %v3352_v2  ;;  %v8769_v38 = vpop.f32.mrf.mxu1  ;;  %v12043_v4 = vld [vmem:[#allocation2_spill] sm:$0xff]  ;;  %v3353_v23 = vadd.f32 %v12045_v24, %v3223_v28  ;;  %v9413_v2 = vld [vmem:[%s11952_s9 + $0x78] ss:$20 sps:$4 sm:$0xff]  }
 0x63a   : > { %v3435_v40 = vpop.f32.mrf.mxu0 }
 0x63b   : > { %v3464_v45 = vadd.f32 %v3435_v40, %v3350_v51  ;;  %v3596_v9 = vadd.f32 %v8765_v11, %v3466_v48  ;;  %v12044_v40 = vld [vmem:[#allocation3_spill] sm:$0xff]  ;;  %v12046_v11 = vmov 0   ;;  %v3581_v6 = vpop.f32.mrf.mxu1 }
 0x63c   : > { %v8752_v58 = vpop.f32.mrf.mxu0  ;;  %v3595_v27 = vadd.f32 %v12044_v40, %v3465_v14 }
 0x63d   : > { %v3469_v49 = vadd.f32 %v8752_v58, %v3355_v43  ;;  %v3594_v55 = vadd.f32 %v3565_v61, %v3464_v45  ;;  %v3354_v58 = vadd.f32 %v12043_v4, %v3224_v19  ;;  %v9409_v45 = vld [vmem:[%s11951_s8 + $0x48] sm:$0xff]   ;;  %v9415_v43 = vld [vmem:[%s11952_s9 + $0x7c] ss:$20 sps:$4 sm:$0xff]   ;;  %v3817_v13 = vpop.f32.mrf.mxu1 }
 0x63e   : > { %v10818_v10 = vpop.f32.mrf.mxu0  ;;  %4358 = vmatprep.subr.bf16.mxu0 %v9415_v43 }
 0x63f   : > { %v3599_v7 = vadd.f32 %v8768_v29, %v3469_v49  ;;  %v3467_v57 = vadd.f32 %v10818_v10, %v3353_v23  ;;  %v9407_v10 = vld [vmem:[%s11951_s8 + $0x50] sm:$0xff]   ;;  %v9411_v29 = vld [vmem:[%s11951_s8 + $0x40] sm:$0xff]   ;;  %v3819_v31 = vpop.f32.mrf.mxu1 }
 0x640   : > { %v8753_v54 = vpop.f32.mrf.mxu0  ;;  %8358 = vmatprep.subr.bf16.mxu1 %v9407_v10 }
 0x641   : > { %v3470_v20 = vadd.f32 %v8753_v54, %v3356_v17  ;;  %v3597_v51 = vadd.f32 %v3578_v46, %v3467_v57  ;;  %v3821_v17 = vpop.f32.mrf.mxu1 }
 0x642   : > { %v3451_v34 = vpop.f32.mrf.mxu0 }
 0x643   : > { %v3600_v50 = vadd.f32 %v8769_v38, %v3470_v20  ;;  %v3468_v5 = vadd.f32 %v3451_v34, %v3354_v58 }
 0x644   : > { %v8780_v18 = vpop.f32.mrf.mxu0 }
 0x645   : > { %v3709_v52 = vadd.f32 %v8780_v18, %v3595_v27  ;;  %v3598_v56 = vadd.f32 %v3581_v6, %v3468_v5  ;;  %v9408_v18 = vld [vmem:[%s11951_s8 + $0x10] sm:$0xff]  }
 0x646   : > { %v3676_v39 = vpop.f32.mrf.mxu0  ;;  %8359 = vmatpush3.bf16.msra.mxu1 %v9408_v18  ;;  %v9416_v27 = vld [vmem:[%s11952_s9 + $0x80] ss:$20 sps:$4 sm:$0xff]  }
 0x647   : > { %v3707_v41 = vadd.f32 %v3676_v39, %v3593_v16  ;;  %v3717_v61 = vmax.f32 %v3709_v52, 0.0  ;;  %8360 = vmatprep.subr.bf16.mxu1 %v9409_v45  ;;  %v9412_v39 = vld [vmem:[%s11951_s8] sm:$0xff]  }
 0x648   : > { %v8781_v1 = vpop.f32.mrf.mxu0  ;;  %v9418_v16 = vld [vmem:[%s11952_s9 + $0x84] ss:$20 sps:$4 sm:$0xff]  }
 0x649   : > { %v3715_v36 = vmax.f32 %v3707_v41, 0.0  ;;  %v3710_v32 = vadd.f32 %v8781_v1, %v3596_v9  ;;  %v3823_v1 = vpop.f32.mrf.mxu1 }
 0x64a   : > { %v3679_v60 = vpop.f32.mrf.mxu0  ;;  %8361 = vmatpush3.bf16.msra.mxu1 %v9410_v26 }
 0x64b   : > { %v3708_v35 = vadd.f32 %v3679_v60, %v3594_v55  ;;  %v3718_v30 = vmax.f32 %v3710_v32, 0.0  ;;  %8362 = vmatprep.subr.bf16.mxu1 %v9411_v29  ;;  %v3827_v48 = vpop.f32.mrf.mxu1 }
 0x64c   : > { %v8784_v12 = vpop.f32.mrf.mxu0 }
 0x64d   : > { %v3716_v0 = vmax.f32 %v3708_v35, 0.0  ;;  %v3713_v25 = vadd.f32 %v8784_v12, %v3599_v7  ;;  %v3724_v3 = vpack.c.bf16 %v3718_v30, %v3717_v61  ;;  %v3829_v49 = vpop.f32.mrf.mxu1 }
 0x64e   : > { %v3692_v53 = vpop.f32.mrf.mxu0  ;;  %8363 = vmatpush3.bf16.msra.mxu1 %v9412_v39 }
 0x64f   : > { %v3723_v62 = vpack.c.bf16 %v3716_v0, %v3715_v36  ;;  %v3721_v47 = vmax.f32 %v3713_v25, 0.0  ;;  %v3711_v34 = vadd.f32 %v3692_v53, %v3597_v51  ;;  %4431 = vmatprep.subr.bf16.mxu1 %v9418_v16  ;;  %v3831_v41 = vpop.f32.mrf.mxu1 }
 0x650   : > { %v8785_v8 = vpop.f32.mrf.mxu0 }
 0x651   : > { %v3714_v54 = vadd.f32 %v8785_v8, %v3600_v50  ;;  %7571 = vmatmul.mubr.msk.bf16.vlgmr.msra.gmra.mxu0 %vm2181_vm0, %v3723_v62  ;;  %v3719_v21 = vmax.f32 %v3711_v34, 0.0  ;;  %v3833_v55 = vpop.f32.mrf.mxu1 }
 0x652   : > { %3950 = vmatprep.mubr.bf16.mxu0 %v12046_v11  ;;  %v3695_v63 = vpop.f32.mrf.mxu0  ;;  %4359 = vmatpush1.bf16.msra.mxu0 %v9413_v2 }
 0x653   : > { %v3722_v44 = vmax.f32 %v3714_v54, 0.0  ;;  %v3712_v42 = vadd.f32 %v3695_v63, %v3598_v56  ;;  %v3837_v19 = vpop.f32.mrf.mxu1 }
 0x655   : > { %v3726_v37 = vpack.c.bf16 %v3722_v44, %v3721_v47  ;;  %v3720_v22 = vmax.f32 %v3712_v42, 0.0  ;;  %v3839_v35 = vpop.f32.mrf.mxu1 }
 0x657   : > { %v3725_v33 = vpack.c.bf16 %v3720_v22, %v3719_v21  ;;  %v3841_v38 = vpop.f32.mrf.mxu1 }
 0x659   : > { %7572 = vmatmul.mubr.msk.bf16.gmra.mxu0 %vm2181_vm0, %v3724_v3  ;;  %v3843_v50 = vpop.f32.mrf.mxu1 }
 0x65a   : > { %3960 = vmatprep.mubr.bf16.mxu0 %v12046_v11 }
 0x65b   : > { %v3847_v30 = vpop.f32.mrf.mxu1 }
 0x65d   : > { %v3849_v3 = vpop.f32.mrf.mxu1 }
 0x65f   : > { %v3851_v18 = vpop.f32.mrf.mxu1 }
 0x661   : > { %7573 = vmatmul.mubr.msk.bf16.gmra.mxu0 %vm2181_vm0, %v3725_v33 }
 0x662   : > { %3970 = vmatprep.mubr.bf16.mxu0 %v12046_v11 }
 0x669   : > { %7574 = vmatmul.mubr.msk.bf16.gmra.mxu0 %vm2181_vm0, %v3726_v37 }
 0x66a   : > { %4382 = vmatprep.mubr.bf16.mxu0 %v12046_v11 }
 0x711   : > { %v3942_v59 = vpop.f32.mrf.mxu0 }
 0x712   : > { %v10871_v15 = vadd.f32 %v3942_v59, %v3817_v13  ;;  %v3853_v13 = vpop.f32.mrf.mxu1 }
 0x713   : > { %v3944_v14 = vpop.f32.mrf.mxu0 }
 0x714   : > { %v10867_v60 = vadd.f32 %v3944_v14, %v3819_v31  ;;  %12049 = vst [vmem:[#allocation3_spill] sm:$0xff] %v10871_v15  ;;  %v11975_v4 = vmax.f32 %v10871_v15, 0.0  ;;  %v9421_v14 = vld [vmem:[%s11952_s9 + $0x54] ss:$20 sps:$4 sm:$0xff]  }
 0x715   : > { %v3946_v46 = vpop.f32.mrf.mxu0  ;;  %4360 = vmatprep.subr.bf16.mxu0 %v9421_v14 }
 0x716   : > { %12047 = vst [vmem:[#allocation5_spill] sm:$0xff] %v10867_v60  ;;  %v10869_v20 = vadd.f32 %v3946_v46, %v3821_v17  ;;  %v11977_v0 = vmax.f32 %v10867_v60, 0.0  ;;  %v9424_v46 = vld [vmem:[%s11952_s9 + $0x5c] ss:$20 sps:$4 sm:$0xff]  }
 0x717   : > { %v3948_v28 = vpop.f32.mrf.mxu0 }
 0x718   : > { %12048 = vst [vmem:[#allocation2_spill] sm:$0xff] %v10869_v20  ;;  %v10873_v12 = vadd.f32 %v3948_v28, %v3823_v1  ;;  %v11976_v36 = vmax.f32 %v10869_v20, 0.0  ;;  %v9422_v28 = vld [vmem:[%s11952_s9 + $0x58] ss:$20 sps:$4 sm:$0xff]  }
 0x719   : > { %v3952_v9 = vpop.f32.mrf.mxu0 }
 0x71a   : > { %12050 = vst [vmem:[#allocation4_spill] sm:$0xff] %v10873_v12  ;;  %v11974_v7 = vmax.f32 %v10873_v12, 0.0  ;;  %v3997_v53 = vpack.c.bf16 %v11976_v36, %v11975_v4  ;;  %v10894_v8 = vadd.f32 %v3952_v9, %v3827_v48  ;;  %v9427_v9 = vld [vmem:[%s11952_s9 + $0x2c] ss:$20 sps:$4 sm:$0xff]  }
 0x71b   : > { %v3954_v58 = vpop.f32.mrf.mxu0 }
 0x71c   : > { %v3998_v40 = vpack.c.bf16 %v11974_v7, %v11977_v0  ;;  %v10890_v62 = vadd.f32 %v3954_v58, %v3829_v49  ;;  %12053 = vst [vmem:[#allocation8_spill] sm:$0xff] %v10894_v8  ;;  %v11971_v47 = vmax.f32 %v10894_v8, 0.0  ;;  %v9425_v58 = vld [vmem:[%s11952_s9 + $0x28] ss:$20 sps:$4 sm:$0xff]  }
 0x71d   : > { %v3956_v32 = vpop.f32.mrf.mxu0 }
 0x71e   : > { %12051 = vst [vmem:[#allocation6_spill] sm:$0xff] %v10890_v62  ;;  %v10892_v25 = vadd.f32 %v3956_v32, %v3831_v41  ;;  %4165 = vmatprep.mubr.bf16.mxu1 %v3998_v40  ;;  %v11973_v54 = vmax.f32 %v10890_v62, 0.0  ;;  %v9428_v40 = vld [vmem:[%s11952_s9 + $0x30] ss:$20 sps:$4 sm:$0xff]   ;;  %v9431_v32 = vld [vmem:[%s11952_s9] ss:$20 sps:$4 sm:$0xff]  }
 0x71f   : > { %v3958_v24 = vpop.f32.mrf.mxu0  ;;  %4166 = vmatmul.mubr.bf16.vlgmr.msra.gmra.mxu1 %v3997_v53  ;;  %v9436_v53 = vld [vmem:[%s11952_s9 + $0xc] ss:$20 sps:$4 sm:$0xff]  }
 0x720   : > { %12052 = vst [vmem:[#allocation7_spill] sm:$0xff] %v10892_v25  ;;  %v10896_v23 = vadd.f32 %v3958_v24, %v3833_v55  ;;  %4432 = vmatpush1.bf16.msra.mxu1 %v9416_v27  ;;  %v11972_v5 = vmax.f32 %v10892_v25, 0.0  ;;  %v9433_v27 = vld [vmem:[%s11952_s9 + $0x4] ss:$20 sps:$4 sm:$0xff]   ;;  %v9437_v24 = vld [vmem:[%s11952_s9 + $0x88] ss:$20 sps:$4 sm:$0xff]  }
 0x721   : > { %v3962_v52 = vpop.f32.mrf.mxu0  ;;  %4433 = vmatprep.subr.bf16.mxu1 %v9424_v46 }
 0x722   : > { %12054 = vst [vmem:[#allocation9_spill] sm:$0xff] %v10896_v23  ;;  %v11970_v57 = vmax.f32 %v10896_v23, 0.0  ;;  %v3999_v63 = vpack.c.bf16 %v11972_v5, %v11971_v47  ;;  %v10914_v51 = vadd.f32 %v3962_v52, %v3837_v19 }
 0x723   : > { %v3964_v44 = vpop.f32.mrf.mxu0 }
 0x724   : > { %v4000_v6 = vpack.c.bf16 %v11970_v57, %v11973_v54  ;;  %v10910_v37 = vadd.f32 %v3964_v44, %v3839_v35  ;;  %12057 = vst [vmem:[#allocation12_spill] sm:$0xff] %v10914_v51  ;;  %v11967_v45 = vmax.f32 %v10914_v51, 0.0  ;;  %v9419_v35 = vld [vmem:[%s11952_s9 + $0x50] ss:$20 sps:$4 sm:$0xff]   ;;  %4434 = vmatpush1.bf16.msra.mxu1 %v9422_v28 }
 0x725   : > { %v3966_v61 = vpop.f32.mrf.mxu0  ;;  %4361 = vmatpush1.bf16.msra.mxu0 %v9419_v35 }
 0x726   : > { %12055 = vst [vmem:[#allocation10_spill] sm:$0xff] %v10910_v37  ;;  %v10912_v56 = vadd.f32 %v3966_v61, %v3841_v38  ;;  %4173 = vmatprep.mubr.bf16.mxu1 %v4000_v6  ;;  %v11969_v33 = vmax.f32 %v10910_v37, 0.0  ;;  %v9430_v38 = vld [vmem:[%s11952_s9 + $0x34] ss:$20 sps:$4 sm:$0xff]   ;;  %4362 = vmatprep.subr.bf16.mxu0 %v9427_v9 }
 0x727   : > { %v3968_v42 = vpop.f32.mrf.mxu0  ;;  %4174 = vmatmul.mubr.bf16.gmra.mxu1 %v3999_v63  ;;  %4435 = vmatprep.subr.bf16.mxu1 %v9430_v38  ;;  %v9440_v38 = vld [vmem:[%s11952_s9 + $0x10] ss:$20 sps:$4 sm:$0xff]  }
 0x728   : > { %12056 = vst [vmem:[#allocation11_spill] sm:$0xff] %v10912_v56  ;;  %v10916_v34 = vadd.f32 %v3968_v42, %v3843_v50  ;;  %v11968_v22 = vmax.f32 %v10912_v56, 0.0  ;;  %4436 = vmatpush1.bf16.msra.mxu1 %v9428_v40  ;;  %v9434_v50 = vld [vmem:[%s11952_s9 + $0x8] ss:$20 sps:$4 sm:$0xff]  }
 0x729   : > { %v3972_v21 = vpop.f32.mrf.mxu0  ;;  %4363 = vmatpush1.bf16.msra.mxu0 %v9425_v58  ;;  %4437 = vmatprep.subr.bf16.mxu1 %v9436_v53 }
 0x72a   : > { %12058 = vst [vmem:[#allocation13_spill] sm:$0xff] %v10916_v34  ;;  %v11966_v10 = vmax.f32 %v10916_v34, 0.0  ;;  %v4001_v39 = vpack.c.bf16 %v11968_v22, %v11967_v45  ;;  %v10934_v31 = vadd.f32 %v3972_v21, %v3847_v30  ;;  %4364 = vmatprep.subr.bf16.mxu0 %v9433_v27 }
 0x72b   : > { %v3974_v26 = vpop.f32.mrf.mxu0 }
 0x72c   : > { %v4002_v29 = vpack.c.bf16 %v11966_v10, %v11969_v33  ;;  %v10930_v43 = vadd.f32 %v3974_v26, %v3849_v3  ;;  %12061 = vst [vmem:[#allocation16_spill] sm:$0xff] %v10934_v31  ;;  %v11963_v55 = vmax.f32 %v10934_v31, 0.0  ;;  %4438 = vmatpush1.bf16.msra.mxu1 %v9434_v50 }
 0x72d   : > { %v3976_v2 = vpop.f32.mrf.mxu0  ;;  %4365 = vmatpush1.bf16.msra.mxu0 %v9431_v32 }
 0x72e   : > { %12059 = vst [vmem:[#allocation14_spill] sm:$0xff] %v10930_v43  ;;  %v10932_v16 = vadd.f32 %v3976_v2, %v3851_v18  ;;  %4181 = vmatprep.mubr.bf16.mxu1 %v4002_v29  ;;  %v11965_v49 = vmax.f32 %v10930_v43, 0.0  ;;  %8786 = vmatprep.subr.bf16.mxu0 %v9437_v24 }
 0x72f   : > { %v3978_v17 = vpop.f32.mrf.mxu0  ;;  %4182 = vmatmul.mubr.bf16.gmra.mxu1 %v4001_v39  ;;  %v9438_v39 = vld [vmem:[%s11952_s9 + $0x60] ss:$20 sps:$4 sm:$0xff]  }
 0x730   : > { %12060 = vst [vmem:[#allocation15_spill] sm:$0xff] %v10932_v16  ;;  %v10936_v1 = vadd.f32 %v3978_v17, %v3853_v13  ;;  %v11964_v48 = vmax.f32 %v10932_v16, 0.0 }
 0x732   : > { %12062 = vst [vmem:[#allocation17_spill] sm:$0xff] %v10936_v1  ;;  %v11962_v41 = vmax.f32 %v10936_v1, 0.0  ;;  %v4003_v19 = vpack.c.bf16 %v11964_v48, %v11963_v55 }
 0x734   : > { %v4004_v59 = vpack.c.bf16 %v11962_v41, %v11965_v49 }
 0x736   : > { %4189 = vmatprep.mubr.bf16.mxu1 %v4004_v59 }
 0x737   : > { %4190 = vmatmul.mubr.bf16.gmra.mxu1 %v4003_v19  ;;  %v9439_v19 = vld [vmem:[%s11952_s9 + $0x38] ss:$20 sps:$4 sm:$0xff]  }
 0x738   : > { %4455 = vmatprep.mubr.bf16.mxu1 %v12046_v11 }
 0x7df   : > { %v8364_v52 = vpop.f32.mrf.mxu1 }
 0x7e1   : > { %v8365_v30 = vpop.f32.mrf.mxu1 }
 0x7e2   : > { %v8366_v6 = vadd.f32 %v8365_v30, %v8364_v52 }
 0x7e3   : > { %v8367_v44 = vpop.f32.mrf.mxu1 }
 0x7e4   : > { %v4198_v42 = vmax.f32 %v8366_v6, 0.0 }
 0x7e5   : > { %v8368_v63 = vpop.f32.mrf.mxu1 }
 0x7e6   : > { %v8369_v61 = vadd.f32 %v8368_v63, %v8367_v44 }
 0x7e7   : > { %v8370_v3 = vpop.f32.mrf.mxu1 }
 0x7e8   : > { %v4199_v21 = vmax.f32 %v8369_v61, 0.0 }
 0x7e9   : > { %v8371_v18 = vpop.f32.mrf.mxu1 }
 0x7ea   : > { %v4206_v26 = vpack.c.bf16 %v4199_v21, %v4198_v42  ;;  %v8372_v2 = vadd.f32 %v8371_v18, %v8370_v3  ;;  %v9527_v21 = vld [vmem:[%s11946_s3] sm:$0xff]  }
 0x7eb   : > { %v8373_v29 = vpop.f32.mrf.mxu1  ;;  %v9528_v18 = vld [vmem:[%s11946_s3 + $0x20] sm:$0xff]  }
 0x7ec   : > { %7611 = vmatmul.mubr.msk.bf16.vlgmr.msra.gmra.mxu0 %vm2181_vm0, %v4206_v26  ;;  %7615 = vmatmul.mubr.msk.bf16.vlgmr.msra.gmra.mxu1 %vm2181_vm0, %v4206_v26  ;;  %v4200_v14 = vmax.f32 %v8372_v2, 0.0 }
 0x7ed   : > { %v8374_v13 = vpop.f32.mrf.mxu1  ;;  %4392 = vmatprep.mubr.bf16.mxu0 %v12046_v11  ;;  %4465 = vmatprep.mubr.bf16.mxu1 %v12046_v11 }
 0x7ee   : > { %v8375_v17 = vadd.f32 %v8374_v13, %v8373_v29  ;;  %8787 = vmatpush3.bf16.msra.mxu0 %v9437_v24 }
 0x7ef   : > { %v8376_v59 = vpop.f32.mrf.mxu1  ;;  %8788 = vmatprep.subr.bf16.mxu0 %v9438_v39 }
 0x7f0   : > { %v4201_v46 = vmax.f32 %v8375_v17, 0.0 }
 0x7f1   : > { %v8377_v35 = vpop.f32.mrf.mxu1 }
 0x7f2   : > { %v4207_v28 = vpack.c.bf16 %v4201_v46, %v4200_v14  ;;  %8789 = vmatpush3.bf16.msra.mxu0 %v9438_v39  ;;  %v8378_v58 = vadd.f32 %v8377_v35, %v8376_v59 }
 0x7f3   : > { %v8379_v9 = vpop.f32.mrf.mxu1  ;;  %8790 = vmatprep.subr.bf16.mxu0 %v9439_v19 }
 0x7f4   : > { %7612 = vmatmul.mubr.msk.bf16.gmra.mxu0 %vm2181_vm0, %v4207_v28  ;;  %7616 = vmatmul.mubr.msk.bf16.gmra.mxu1 %vm2181_vm0, %v4207_v28  ;;  %v4202_v32 = vmax.f32 %v8378_v58, 0.0 }
 0x7f5   : > { %v8380_v40 = vpop.f32.mrf.mxu1  ;;  %4402 = vmatprep.mubr.bf16.mxu0 %v12046_v11  ;;  %4475 = vmatprep.mubr.bf16.mxu1 %v12046_v11 }
 0x7f6   : > { %v8381_v27 = vadd.f32 %v8380_v40, %v8379_v9  ;;  %8791 = vmatpush3.bf16.msra.mxu0 %v9439_v19 }
 0x7f7   : > { %v8382_v53 = vpop.f32.mrf.mxu1  ;;  %8792 = vmatprep.subr.bf16.mxu0 %v9440_v38 }
 0x7f8   : > { %v4203_v50 = vmax.f32 %v8381_v27, 0.0 }
 0x7f9   : > { %v8383_v24 = vpop.f32.mrf.mxu1 }
 0x7fa   : > { %v4208_v52 = vpack.c.bf16 %v4203_v50, %v4202_v32  ;;  %8793 = vmatpush3.bf16.msra.mxu0 %v9440_v38  ;;  %v8384_v44 = vadd.f32 %v8383_v24, %v8382_v53 }
 0x7fb   : > { %v8385_v30 = vpop.f32.mrf.mxu1 }
 0x7fc   : > { %7613 = vmatmul.mubr.msk.bf16.gmra.mxu0 %vm2181_vm0, %v4208_v52  ;;  %7617 = vmatmul.mubr.msk.bf16.gmra.mxu1 %vm2181_vm0, %v4208_v52  ;;  %v4204_v61 = vmax.f32 %v8384_v44, 0.0 }
 0x7fd   : > { %v8386_v6 = vpop.f32.mrf.mxu1  ;;  %4412 = vmatprep.mubr.bf16.mxu0 %v12046_v11  ;;  %4485 = vmatprep.mubr.bf16.mxu1 %v12046_v11 }
 0x7fe   : > { %v8387_v63 = vadd.f32 %v8386_v6, %v8385_v30 }
 0x800   : > { %v4205_v3 = vmax.f32 %v8387_v63, 0.0 }
 0x802   : > { %v4209_v42 = vpack.c.bf16 %v4205_v3, %v4204_v61 }
 0x804   : > { %7614 = vmatmul.mubr.msk.bf16.gmra.mxu0 %vm2181_vm0, %v4209_v42  ;;  %7618 = vmatmul.mubr.msk.bf16.gmra.mxu1 %vm2181_vm0, %v4209_v42 }
 0x805   : > { %8794 = vmatprep.mubr.msk.bf16.mxu0 %vm2181_vm0, %v4206_v26  ;;  %8826 = vmatprep.mubr.msk.bf16.mxu1 %vm2181_vm0, %v9527_v21 }
 0x80c   : > { %8795 = vmatmul.mubr.msk.bf16.vlgmr.msra.gmra.mxu0 %vm2181_vm0, %v4207_v28 }
 0x80d   : > { %8798 = vmatprep.mubr.msk.bf16.mxu0 %vm2181_vm0, %v4208_v52 }
 0x814   : > { %8799 = vmatmul.mubr.msk.bf16.gmra.mxu0 %vm2181_vm0, %v4209_v42 }
 0x815   : > { %8810 = vmatprep.mubr.msk.bf16.mxu0 %vm2181_vm0, %v9528_v18 }
 0x8ac   : > { %v4384_v29 = vpop.f32.mrf.mxu0  ;;  %v4457_v26 = vpop.f32.mrf.mxu1 }
 0x8ae   : > { %v4386_v39 = vpop.f32.mrf.mxu0  ;;  %v4459_v2 = vpop.f32.mrf.mxu1 }
 0x8b0   : > { %v4388_v13 = vpop.f32.mrf.mxu0  ;;  %v4461_v17 = vpop.f32.mrf.mxu1 }
 0x8b1   : > { %v4561_v6 = vpack.c.bf16 %v4388_v13, %v4384_v29 }
 0x8b2   : > { %v4390_v59 = vpop.f32.mrf.mxu0  ;;  %v4463_v19 = vpop.f32.mrf.mxu1 }
 0x8b4   : > { %v4394_v14 = vpop.f32.mrf.mxu0  ;;  %v4467_v46 = vpop.f32.mrf.mxu1 }
 0x8b6   : > { %v4396_v35 = vpop.f32.mrf.mxu0  ;;  %v11025_v28 = vpop.f32.mrf.mxu1 }
 0x8b8   : > { %v4398_v9 = vpop.f32.mrf.mxu0  ;;  %v4471_v38 = vpop.f32.mrf.mxu1 }
 0x8ba   : > { %v4400_v58 = vpop.f32.mrf.mxu0  ;;  %v4473_v40 = vpop.f32.mrf.mxu1 }
 0x8bc   : > { %v4404_v27 = vpop.f32.mrf.mxu0  ;;  %v4477_v53 = vpop.f32.mrf.mxu1 }
 0x8be   : > { %v4406_v32 = vpop.f32.mrf.mxu0  ;;  %v4479_v52 = vpop.f32.mrf.mxu1 }
 0x8c0   : > { %v4408_v50 = vpop.f32.mrf.mxu0  ;;  %v4481_v63 = vpop.f32.mrf.mxu1 }
 0x8c1   : > { %v4571_v24 = vpack.c.bf16 %v4408_v50, %v4404_v27  ;;  %v11034_v27 = vpack.c.bf16 %v4390_v59, %v4386_v39  ;;  %v4566_v50 = vpack.c.bf16 %v4398_v9, %v4394_v14  ;;  %v11044_v39 = vpack.c.bf16 %v4461_v17, %v4457_v26  ;;  %v9529_v26 = vld [vmem:[%s11946_s3 + $0x8] sm:$0xff]  }
 0x8c2   : > { %v4410_v30 = vpop.f32.mrf.mxu0  ;;  %v4483_v18 = vpop.f32.mrf.mxu1  ;;  %v11046_v59 = vpack.c.bf16 %v4400_v58, %v4396_v35  ;;  %v11064_v17 = vpack.c.bf16 %v4463_v19, %v4459_v2  ;;  %v11066_v35 = vpack.c.bf16 %v4471_v38, %v4467_v46  ;;  %v9530_v58 = vld [vmem:[%s11946_s3 + $0x10] sm:$0xff]   ;;  %v9531_v2 = vld [vmem:[%s11946_s3 + $0x18] sm:$0xff]   ;;  %v11085_v19 = vpack.c.bf16 %v4473_v40, %v11025_v28  ;;  %v9532_v46 = vld [vmem:[%s11946_s3 + $0x60] sm:$0xff]  }
 0x8c3   : > { %4589 = vrot.lane.b32.xlu1 %v4571_v24, %s9608_s18  ;;  %v11029_v42 = vpack.c.bf16 %v4410_v30, %v4406_v32  ;;  %v11039_v32 = vpack.c.bf16 %v4481_v63, %v4477_v53  ;;  %v11052_v9 = vpack.c.bf16 %v4483_v18, %v4479_v52 }
 0x8c4   : > { %v4414_v44 = vpop.f32.mrf.mxu0  ;;  %v4487_v29 = vpop.f32.mrf.mxu1 }
 0x8c6   : > { %v4416_v61 = vpop.f32.mrf.mxu0 }
 0x8c7   : > { %4585 = vrot.lane.b32.xlu1 %v4561_v6, %s9608_s18 }
 0x8c8   : > { %v4418_v3 = vpop.f32.mrf.mxu0 }
 0x8c9   : > { %v4576_v21 = vpack.c.bf16 %v4418_v3, %v4414_v44  ;;  %v4489_v44 = vpop.f32.mrf.mxu1 }
 0x8ca   : > { %v4420_v13 = vpop.f32.mrf.mxu0 }
 0x8cb   : > { %4808 = vrot.lane.b32.xlu1 %v11029_v42, %s9608_s18  ;;  %4591 = vrot.lane.b32.xlu0 %v4576_v21, %s9608_s18  ;;  %v4577_v30 = vpack.c.bf16 %v4420_v13, %v4416_v61  ;;  %v4491_v14 = vpop.f32.mrf.mxu1  ;;  %v9535_v13 = vld [vmem:[%s11946_s3 + $0x38] sm:$0xff]  }
 0x8cc   : > { %8818 = vmatprep.subr.bf16.mxu1 %v4576_v21  ;;  %v11054_v53 = vpack.c.bf16 %v4491_v14, %v4487_v29  ;;  %v9538_v14 = vld [vmem:[%s11946_s3 + $0x70] sm:$0xff]  }
 0x8cd   : > { %8819 = vmatpush3.bf16.msra.mxu1 %v4576_v21  ;;  %v9533_v21 = vld [vmem:[%s11946_s3 + $0x28] sm:$0xff]  }
 0x8ce   : > { %8820 = vmatprep.subr.bf16.mxu1 %v4571_v24 }
 0x8cf   : > { %4804 = vrot.lane.b32.xlu1 %v11034_v27, %s9608_s18  ;;  %4587 = vrot.lane.b32.xlu0 %v4566_v50, %s9608_s18 }
 0x8d1   : > { %8821 = vmatpush3.bf16.msra.mxu1 %v4571_v24  ;;  %v4493_v24 = vpop.f32.mrf.mxu1 }
 0x8d2   : > { %8822 = vmatprep.subr.bf16.mxu1 %v4566_v50  ;;  %v11076_v52 = vpack.c.bf16 %v4493_v24, %v4489_v44  ;;  %v11132_v24 = vpop.f32.mrf.mxu0 }
 0x8d3   : > { %4970 = vrot.lane.b32.xlu1 %v11039_v32, %s9608_s18  ;;  %4810 = vrot.lane.b32.xlu0 %v4577_v30, %s9608_s18 }
 0x8d5   : > { %8823 = vmatpush3.bf16.msra.mxu1 %v4566_v50  ;;  %v9534_v50 = vld [vmem:[%s11946_s3 + $0x30] sm:$0xff]  }
 0x8d6   : > { %8824 = vmatprep.subr.bf16.mxu1 %v4561_v6 }
 0x8d7   : > { %4966 = vrot.lane.b32.xlu1 %v11044_v39, %s9608_s18  ;;  %4806 = vrot.lane.b32.xlu0 %v11046_v59, %s9608_s18 }
 0x8d9   : > { %8825 = vmatpush3.bf16.msra.mxu1 %v4561_v6 }
 0x8db   : > { %5132 = vrot.lane.b32.xlu1 %v11052_v9, %s9608_s18  ;;  %4972 = vrot.lane.b32.xlu0 %v11054_v53, %s9608_s18 }
 0x8dc   : > { %8827 = vmatmul.mubr.msk.bf16.vlgmr.msra.gmra.mxu1 %vm2181_vm0, %v9529_v26 }
 0x8dd   : > { %8830 = vmatprep.mubr.msk.bf16.mxu1 %vm2181_vm0, %v9530_v58  ;;  %v9540_v58 = vld [vmem:[%s11946_s3 + $0x78] sm:$0xff]  }
 0x8df   : > { %5128 = vrot.lane.b32.xlu1 %v11064_v17, %s9608_s18  ;;  %4968 = vrot.lane.b32.xlu0 %v11066_v35, %s9608_s18 }
 0x8e3   : > { %5134 = vrot.lane.b32.xlu0 %v11076_v52, %s9608_s18 }
 0x8e4   : > { %8831 = vmatmul.mubr.msk.bf16.gmra.mxu1 %vm2181_vm0, %v9531_v2 }
 0x8e5   : > { %8858 = vmatprep.mubr.msk.bf16.mxu1 %vm2181_vm0, %v9532_v46  ;;  %v9542_v46 = vld [vmem:[%s11946_s3 + $0xa0] sm:$0xff]  }
 0x8e7   : > { %5130 = vrot.lane.b32.xlu0 %v11085_v19, %s9608_s18 }
 0x935   : > { %v4590_v38 = vpop.permute.xlu1 %4589 }
 0x939   : > { %v4586_v63 = vpop.permute.xlu1 %4585 }
 0x93d   : > { %v4592_v6 = vpop.permute.xlu0 %4591  ;;  %v4809_v40 = vpop.permute.xlu1 %4808 }
 0x93e   : > { %8802 = vmatprep.subr.bf16.mxu0 %v4592_v6 }
 0x93f   : > { %8803 = vmatpush3.bf16.msra.mxu0 %v4592_v6 }
 0x940   : > { %8804 = vmatprep.subr.bf16.mxu0 %v4590_v38 }
 0x941   : > { %v4588_v61 = vpop.permute.xlu0 %4587  ;;  %v4805_v18 = vpop.permute.xlu1 %4804 }
 0x943   : > { %8805 = vmatpush3.bf16.msra.mxu0 %v4590_v38  ;;  %v11144_v38 = vpop.f32.mrf.mxu0 }
 0x944   : > { %8806 = vmatprep.subr.bf16.mxu0 %v4588_v61 }
 0x945   : > { %v4811_v28 = vpop.permute.xlu0 %4810  ;;  %v4971_v44 = vpop.permute.xlu1 %4970 }
 0x946   : > { %8850 = vmatprep.subr.bf16.mxu1 %v4811_v28 }
 0x947   : > { %8807 = vmatpush3.bf16.msra.mxu0 %v4588_v61  ;;  %8851 = vmatpush3.bf16.msra.mxu1 %v4811_v28  ;;  %v8797_v61 = vpop.f32.mrf.mxu0 }
 0x948   : > { %8808 = vmatprep.subr.bf16.mxu0 %v4586_v63  ;;  %8852 = vmatprep.subr.bf16.mxu1 %v4809_v40 }
 0x949   : > { %v4807_v3 = vpop.permute.xlu0 %4806  ;;  %v4967_v2 = vpop.permute.xlu1 %4966 }
 0x94b   : > { %8809 = vmatpush3.bf16.msra.mxu0 %v4586_v63  ;;  %8853 = vmatpush3.bf16.msra.mxu1 %v4809_v40  ;;  %v9544_v63 = vld [vmem:[%s11946_s3 + $0xa8] sm:$0xff]   ;;  %v9546_v40 = vld [vmem:[%s11946_s3 + $0xb0] sm:$0xff]  }
 0x94c   : > { %8834 = vmatprep.subr.bf16.mxu0 %v4577_v30  ;;  %8854 = vmatprep.subr.bf16.mxu1 %v4807_v3 }
 0x94d   : > { %v4973_v29 = vpop.permute.xlu0 %4972  ;;  %v5133_v28 = vpop.permute.xlu1 %5132 }
 0x94e   : > { %8811 = vmatmul.mubr.msk.bf16.vlgmr.msra.gmra.mxu0 %vm2181_vm0, %v9533_v21 }
 0x94f   : > { %8835 = vmatpush3.bf16.msra.mxu0 %v4577_v30  ;;  %8855 = vmatpush3.bf16.msra.mxu1 %v4807_v3  ;;  %v9536_v30 = vld [vmem:[%s11946_s3 + $0x68] sm:$0xff]   ;;  %v4533_v3 = vpop.f32.mrf.mxu0 }
 0x950   : > { %8836 = vmatprep.subr.bf16.mxu0 %v11029_v42  ;;  %8856 = vmatprep.subr.bf16.mxu1 %v4805_v18 }
 0x951   : > { %8814 = vmatprep.mubr.msk.bf16.mxu0 %vm2181_vm0, %v9534_v50  ;;  %v4969_v26 = vpop.permute.xlu0 %4968  ;;  %v8800_v50 = vpop.f32.mrf.mxu0 }
 0x953   : > { %8837 = vmatpush3.bf16.msra.mxu0 %v11029_v42  ;;  %8857 = vmatpush3.bf16.msra.mxu1 %v4805_v18  ;;  %v9537_v42 = vld [vmem:[%s11946_s3 + $0x40] sm:$0xff]   ;;  %v9548_v18 = vld [vmem:[%s11946_s3 + $0xb8] sm:$0xff]  }
 0x954   : > { %8838 = vmatprep.subr.bf16.mxu0 %v11046_v59  ;;  %8882 = vmatprep.subr.bf16.mxu1 %v4973_v29 }
 0x955   : > { %v5135_v6 = vpop.permute.xlu0 %5134 }
 0x956   : > { %8815 = vmatmul.mubr.msk.bf16.gmra.mxu0 %vm2181_vm0, %v9535_v13  ;;  %8859 = vmatmul.mubr.msk.bf16.vlgmr.msra.gmra.mxu1 %vm2181_vm0, %v9536_v30  ;;  %v9550_v13 = vld [vmem:[%s11946_s3 + $0xe0] sm:$0xff]   ;;  %v4546_v30 = vpop.f32.mrf.mxu0 }
 0x957   : > { %8839 = vmatpush3.bf16.msra.mxu0 %v11046_v59  ;;  %8883 = vmatpush3.bf16.msra.mxu1 %v4973_v29  ;;  %v9539_v59 = vld [vmem:[%s11946_s3 + $0x48] sm:$0xff]   ;;  %v5129_v29 = vpop.permute.xlu1 %5128 }
 0x958   : > { %8840 = vmatprep.subr.bf16.mxu0 %v11034_v27  ;;  %8884 = vmatprep.subr.bf16.mxu1 %v4971_v44 }
 0x959   : > { %8842 = vmatprep.mubr.msk.bf16.mxu0 %vm2181_vm0, %v9537_v42  ;;  %8862 = vmatprep.mubr.msk.bf16.mxu1 %vm2181_vm0, %v9538_v14  ;;  %v5131_v21 = vpop.permute.xlu0 %5130  ;;  %v8801_v42 = vpop.f32.mrf.mxu0  ;;  %v9554_v14 = vld [vmem:[%s11946_s3 + $0xf0] sm:$0xff]  }
 0x95b   : > { %8841 = vmatpush3.bf16.msra.mxu0 %v11034_v27  ;;  %8885 = vmatpush3.bf16.msra.mxu1 %v4971_v44  ;;  %v9541_v27 = vld [vmem:[%s11946_s3 + $0x50] sm:$0xff]   ;;  %v9552_v44 = vld [vmem:[%s11946_s3 + $0xe8] sm:$0xff]  }
 0x95c   : > { %8866 = vmatprep.subr.bf16.mxu0 %v11054_v53  ;;  %8886 = vmatprep.subr.bf16.mxu1 %v4969_v26 }
 0x95e   : > { %8843 = vmatmul.mubr.msk.bf16.vlgmr.msra.gmra.mxu0 %vm2181_vm0, %v9539_v59  ;;  %8863 = vmatmul.mubr.msk.bf16.gmra.mxu1 %vm2181_vm0, %v9540_v58  ;;  %v4549_v59 = vpop.f32.mrf.mxu0  ;;  %v9555_v58 = vld [vmem:[%s11946_s3 + $0xc8] sm:$0xff]  }
 0x95f   : > { %8867 = vmatpush3.bf16.msra.mxu0 %v11054_v53  ;;  %8887 = vmatpush3.bf16.msra.mxu1 %v4969_v26  ;;  %v9543_v53 = vld [vmem:[%s11946_s3 + $0x58] sm:$0xff]   ;;  %v4580_v26 = vpack.c.bf16 %v8801_v42, %v8800_v50  ;;  %v9459_v42 = vld [vmem:[%s11954_s11 + $0x60] sm:$0xff]  }
 0x960   : > { %8868 = vmatprep.subr.bf16.mxu0 %v11039_v32  ;;  %8888 = vmatprep.subr.bf16.mxu1 %v4967_v2  ;;  %v9453_v50 = vld [vmem:[%s11954_s11 + $0x78] sm:$0xff]  }
 0x961   : > { %8846 = vmatprep.mubr.msk.bf16.mxu0 %vm2181_vm0, %v9541_v27  ;;  %8890 = vmatprep.mubr.msk.bf16.mxu1 %vm2181_vm0, %v9542_v46  ;;  %v9557_v27 = vld [vmem:[%s11946_s3 + $0xd0] sm:$0xff]   ;;  %v4565_v46 = vpack.c.bf16 %v4533_v3, %v11144_v38 }
 0x962   : > { %v9561_v38 = vld [vmem:[%s11946_s3 + $0x110] sm:$0xff]  }
 0x963   : > { %8869 = vmatpush3.bf16.msra.mxu0 %v11039_v32  ;;  %8889 = vmatpush3.bf16.msra.mxu1 %v4967_v2  ;;  %v9545_v32 = vld [vmem:[%s11946_s3 + $0x80] sm:$0xff]   ;;  %v9556_v2 = vld [vmem:[%s11946_s3 + $0xf8] sm:$0xff]  }
 0x964   : > { %8870 = vmatprep.subr.bf16.mxu0 %v11066_v35  ;;  %8914 = vmatprep.subr.bf16.mxu1 %v5135_v6  ;;  %v9449_v3 = vld [vmem:[%s11953_s10 + $0x14] ss:$8 sps:$4 sm:$0xff]  }
 0x966   : > { %8847 = vmatmul.mubr.msk.bf16.gmra.mxu0 %vm2181_vm0, %v9543_v53  ;;  %8891 = vmatmul.mubr.msk.bf16.vlgmr.msra.gmra.mxu1 %vm2181_vm0, %v9544_v63  ;;  %v9559_v53 = vld [vmem:[%s11946_s3 + $0x100] sm:$0xff]   ;;  %v9562_v63 = vld [vmem:[%s11946_s3 + $0x118] sm:$0xff]  }
 0x967   : > { %8871 = vmatpush3.bf16.msra.mxu0 %v11066_v35  ;;  %8915 = vmatpush3.bf16.msra.mxu1 %v5135_v6  ;;  %v9547_v35 = vld [vmem:[%s11946_s3 + $0x88] sm:$0xff]   ;;  %v9558_v6 = vld [vmem:[%s11946_s3 + $0xd8] sm:$0xff]  }
 0x968   : > { %8872 = vmatprep.subr.bf16.mxu0 %v11044_v39  ;;  %8916 = vmatprep.subr.bf16.mxu1 %v5133_v28 }
 0x969   : > { %8874 = vmatprep.mubr.msk.bf16.mxu0 %vm2181_vm0, %v9545_v32  ;;  %8894 = vmatprep.mubr.msk.bf16.mxu1 %vm2181_vm0, %v9546_v40  ;;  %v9446_v32 = vld [vmem:[%s11953_s10 + $0x24] ss:$8 sps:$4 sm:$0xff]   ;;  %v9444_v40 = vld [vmem:[%s11953_s10 + $0x20] ss:$8 sps:$4 sm:$0xff]  }
 0x96b   : > { %8873 = vmatpush3.bf16.msra.mxu0 %v11044_v39  ;;  %8917 = vmatpush3.bf16.msra.mxu1 %v5133_v28  ;;  %v9549_v39 = vld [vmem:[%s11946_s3 + $0x90] sm:$0xff]  }
 0x96c   : > { %8898 = vmatprep.subr.bf16.mxu0 %v11076_v52  ;;  %8918 = vmatprep.subr.bf16.mxu1 %v5131_v21  ;;  %v9441_v28 = vld [vmem:[%s11953_s10 + $0x30] ss:$8 sps:$4 sm:$0xff]  }
 0x96e   : > { %8875 = vmatmul.mubr.msk.bf16.vlgmr.msra.gmra.mxu0 %vm2181_vm0, %v9547_v35  ;;  %8895 = vmatmul.mubr.msk.bf16.gmra.mxu1 %vm2181_vm0, %v9548_v18  ;;  %v9452_v35 = vld [vmem:[%s11953_s10 + $0x4] ss:$8 sps:$4 sm:$0xff]   ;;  %v9450_v18 = vld [vmem:[%s11953_s10] ss:$8 sps:$4 sm:$0xff]  }
 0x96f   : > { %8899 = vmatpush3.bf16.msra.mxu0 %v11076_v52  ;;  %8919 = vmatpush3.bf16.msra.mxu1 %v5131_v21  ;;  %v9551_v52 = vld [vmem:[%s11946_s3 + $0x98] sm:$0xff]  }
 0x970   : > { %8900 = vmatprep.subr.bf16.mxu0 %v11052_v9  ;;  %8920 = vmatprep.subr.bf16.mxu1 %v5129_v29  ;;  %v9447_v21 = vld [vmem:[%s11953_s10 + $0x10] ss:$8 sps:$4 sm:$0xff]  }
 0x971   : > { %8878 = vmatprep.mubr.msk.bf16.mxu0 %vm2181_vm0, %v9549_v39  ;;  %8922 = vmatprep.mubr.msk.bf16.mxu1 %vm2181_vm0, %v9550_v13  ;;  %v9455_v39 = vld [vmem:[%s11954_s11 + $0x70] sm:$0xff]  }
 0x972   : > { %v9456_v13 = vld [vmem:[%s11954_s11 + $0x30] sm:$0xff]  }
 0x973   : > { %8901 = vmatpush3.bf16.msra.mxu0 %v11052_v9  ;;  %8921 = vmatpush3.bf16.msra.mxu1 %v5129_v29  ;;  %v9553_v9 = vld [vmem:[%s11946_s3 + $0xc0] sm:$0xff]   ;;  %v9454_v29 = vld [vmem:[%s11954_s11 + $0x38] sm:$0xff]  }
 0x974   : > { %8902 = vmatprep.subr.bf16.mxu0 %v11085_v19 }
 0x976   : > { %8879 = vmatmul.mubr.msk.bf16.gmra.mxu0 %vm2181_vm0, %v9551_v52  ;;  %8923 = vmatmul.mubr.msk.bf16.vlgmr.msra.gmra.mxu1 %vm2181_vm0, %v9552_v44  ;;  %v9458_v44 = vld [vmem:[%s11954_s11 + $0x28] sm:$0xff]  }
 0x977   : > { %8903 = vmatpush3.bf16.msra.mxu0 %v11085_v19  ;;  %8906 = vmatprep.mubr.msk.bf16.mxu0 %vm2181_vm0, %v9553_v9  ;;  %v4575_v19 = vpack.c.bf16 %v4549_v59, %v4546_v30  ;;  %v9457_v30 = vld [vmem:[%s11954_s11 + $0x68] sm:$0xff]  }
 0x978   : > { %8904 = vmatprep.subr.bf16.mxu0 %v11064_v17  ;;  %8926 = vmatprep.mubr.msk.bf16.mxu1 %vm2181_vm0, %v9554_v14  ;;  %v9460_v14 = vld [vmem:[%s11954_s11 + $0x20] sm:$0xff]  }
 0x97b   : > { %8905 = vmatpush3.bf16.msra.mxu0 %v11064_v17  ;;  %v4570_v17 = vpack.c.bf16 %v8797_v61, %v11132_v24  ;;  %v9560_v24 = vld [vmem:[%s11946_s3 + $0x108] sm:$0xff]   ;;  %v9443_v61 = vld [vmem:[%s11953_s10 + $0x34] ss:$8 sps:$4 sm:$0xff]  }
 0x97c   : > { %8930 = vmatprep.subr.bf16.mxu0 %v4580_v26  ;;  %5366 = vmatprep.subr.bf16.mxu1 %v9443_v61 }
 0x97d   : > { %5367 = vmatpush1.bf16.msra.mxu1 %v9441_v28 }
 0x97e   : > { %8907 = vmatmul.mubr.msk.bf16.vlgmr.msra.gmra.mxu0 %vm2181_vm0, %v9555_v58  ;;  %8927 = vmatmul.mubr.msk.bf16.gmra.mxu1 %vm2181_vm0, %v9556_v2 }
 0x97f   : > { %8931 = vmatpush3.bf16.msra.mxu0 %v4580_v26  ;;  %8910 = vmatprep.mubr.msk.bf16.mxu0 %vm2181_vm0, %v9557_v27  ;;  %v9461_v26 = vld [vmem:[%s11954_s11 + $0x58] sm:$0xff]  }
 0x980   : > { %8932 = vmatprep.subr.bf16.mxu0 %v4575_v19  ;;  %5390 = vmatprep.mubr.bf16.mxu1 %v12046_v11 }
 0x981   : > { %5368 = vmatprep.subr.bf16.mxu1 %v9446_v32 }
 0x982   : > { %5369 = vmatpush1.bf16.msra.mxu1 %v9444_v40 }
 0x983   : > { %8933 = vmatpush3.bf16.msra.mxu0 %v4575_v19  ;;  %5370 = vmatprep.subr.bf16.mxu1 %v9449_v3  ;;  %v9462_v19 = vld [vmem:[%s11954_s11 + $0x18] sm:$0xff]  }
 0x984   : > { %8934 = vmatprep.subr.bf16.mxu0 %v4570_v17 }
 0x986   : > { %8911 = vmatmul.mubr.msk.bf16.gmra.mxu0 %vm2181_vm0, %v9558_v6  ;;  %5371 = vmatpush1.bf16.msra.mxu1 %v9447_v21 }
 0x987   : > { %8935 = vmatpush3.bf16.msra.mxu0 %v4570_v17  ;;  %8938 = vmatprep.mubr.msk.bf16.mxu0 %vm2181_vm0, %v9559_v53 }
 0x988   : > { %8936 = vmatprep.subr.bf16.mxu0 %v4565_v46  ;;  %5372 = vmatprep.subr.bf16.mxu1 %v9452_v35 }
 0x98a   : > { %5373 = vmatpush1.bf16.msra.mxu1 %v9450_v18 }
 0x98b   : > { %8937 = vmatpush3.bf16.msra.mxu0 %v4565_v46 }
 0x98c   : > { %8468 = vmatprep.subr.bf16.mxu0 %v9453_v50 }
 0x98e   : > { %8939 = vmatmul.mubr.msk.bf16.vlgmr.msra.gmra.mxu0 %vm2181_vm0, %v9560_v24 }
 0x98f   : > { %8942 = vmatprep.mubr.msk.bf16.mxu0 %vm2181_vm0, %v9561_v38  ;;  %8469 = vmatpush3.bf16.msra.mxu0 %v9454_v29 }
 0x990   : > { %8470 = vmatprep.subr.bf16.mxu0 %v9455_v39 }
 0x993   : > { %8471 = vmatpush3.bf16.msra.mxu0 %v9456_v13 }
 0x994   : > { %8472 = vmatprep.subr.bf16.mxu0 %v9457_v30 }
 0x996   : > { %8943 = vmatmul.mubr.msk.bf16.gmra.mxu0 %vm2181_vm0, %v9562_v63 }
 0x997   : > { %8473 = vmatpush3.bf16.msra.mxu0 %v9458_v44 }
 0x998   : > { %8474 = vmatprep.subr.bf16.mxu0 %v9459_v42 }
 0x99b   : > { %8475 = vmatpush3.bf16.msra.mxu0 %v9460_v14 }
 0x99c   : > { %v11281_v52 = vpop.f32.mrf.mxu1  ;;  %8476 = vmatprep.subr.bf16.mxu0 %v9461_v26 }
 0x99e   : > { %v4696_v9 = vpop.f32.mrf.mxu1 }
 0x99f   : > { %8477 = vmatpush3.bf16.msra.mxu0 %v9462_v19 }
 0x9a0   : > { %v8829_v59 = vpop.f32.mrf.mxu1 }
 0x9a2   : > { %v4699_v58 = vpop.f32.mrf.mxu1 }
 0x9a4   : > { %v8832_v2 = vpop.f32.mrf.mxu1 }
 0x9a6   : > { %v11298_v27 = vpop.f32.mrf.mxu1 }
 0x9a8   : > { %v8833_v6 = vpop.f32.mrf.mxu1 }
 0x9aa   : > { %v11300_v38 = vpop.f32.mrf.mxu1 }
 0xa0e   : > { %v8812_v17 = vpop.f32.mrf.mxu0 }
 0xa0f   : > { %v4705_v20 = vadd.f32 %v11281_v52, %v8812_v17 }
 0xa10   : > { %v4631_v46 = vpop.f32.mrf.mxu0 }
 0xa11   : > { %v4697_v43 = vadd.f32 %v4696_v9, %v4631_v46 }
 0xa12   : > { %v8813_v53 = vpop.f32.mrf.mxu0 }
 0xa13   : > { %v4708_v62 = vadd.f32 %v8829_v59, %v8813_v53 }
 0xa14   : > { %v4634_v24 = vpop.f32.mrf.mxu0 }
 0xa15   : > { %v4700_v51 = vadd.f32 %v4699_v58, %v4634_v24 }
 0xa16   : > { %v8816_v63 = vpop.f32.mrf.mxu0  ;;  %v11302_v61 = vpop.f32.mrf.mxu1 }
 0xa17   : > { %v4721_v12 = vadd.f32 %v8832_v2, %v8816_v63 }
 0xa18   : > { %v11304_v28 = vpop.f32.mrf.mxu0  ;;  %v4850_v32 = vpop.f32.mrf.mxu1 }
 0xa1a   : > { %v8817_v40 = vpop.f32.mrf.mxu0  ;;  %v8861_v3 = vpop.f32.mrf.mxu1 }
 0xa1b   : > { %v4724_v60 = vadd.f32 %v8833_v6, %v8817_v40 }
 0xa1c   : > { %v4650_v21 = vpop.f32.mrf.mxu0  ;;  %v4853_v35 = vpop.f32.mrf.mxu1 }
 0xa1e   : > { %v8844_v18 = vpop.f32.mrf.mxu0  ;;  %v8864_v50 = vpop.f32.mrf.mxu1 }
 0xa1f   : > { %v4794_v9 = vadd.f32 %v8844_v18, %v4705_v20 }
 0xa20   : > { %v4761_v29 = vpop.f32.mrf.mxu0  ;;  %v11306_v39 = vpop.f32.mrf.mxu1 }
 0xa21   : > { %12063 = vst [vmem:[#allocation18_spill] sm:$0xff] %v11306_v39  ;;  %v4792_v56 = vadd.f32 %v4761_v29, %v4697_v43  ;;  %v4883_v52 = vadd.f32 %v11302_v61, %v4794_v9 }
 0xa22   : > { %v8845_v13 = vpop.f32.mrf.mxu0  ;;  %v8865_v30 = vpop.f32.mrf.mxu1 }
 0xa23   : > { %v4881_v15 = vadd.f32 %v4850_v32, %v4792_v56  ;;  %v4716_v56 = vadd.f32 %v11300_v38, %v4650_v21 }
 0xa24   : > { %v4764_v44 = vpop.f32.mrf.mxu0  ;;  %v11308_v42 = vpop.f32.mrf.mxu1 }
 0xa25   : > { %v4793_v8 = vadd.f32 %v4764_v44, %v4700_v51 }
 0xa26   : > { %v8848_v14 = vpop.f32.mrf.mxu0  ;;  %v11310_v26 = vpop.f32.mrf.mxu1 }
 0xa27   : > { %v4882_v39 = vadd.f32 %v4853_v35, %v4793_v8 }
 0xa28   : > { %v11312_v19 = vpop.f32.mrf.mxu0  ;;  %v5012_v41 = vpop.f32.mrf.mxu1 }
 0xa2a   : > { %v8849_v55 = vpop.f32.mrf.mxu0  ;;  %v8893_v48 = vpop.f32.mrf.mxu1 }
 0xa2b   : > { %v4799_v46 = vadd.f32 %v8849_v55, %v4724_v60  ;;  %v4713_v60 = vadd.f32 %v11298_v27, %v11304_v28  ;;  %v12068_v28 = vld [vmem:[#allocation18_spill] sm:$0xff] }
 0xa2c   : > { %v4780_v49 = vpop.f32.mrf.mxu0  ;;  %v5015_v10 = vpop.f32.mrf.mxu1 }
 0xa2d   : > { %v4888_v17 = vadd.f32 %v8865_v30, %v4799_v46  ;;  %v4797_v20 = vadd.f32 %v4780_v49, %v4716_v56 }
 0xa2e   : > { %v8876_v45 = vpop.f32.mrf.mxu0  ;;  %v8896_v22 = vpop.f32.mrf.mxu1 }
 0xa30   : > { %v4923_v33 = vpop.f32.mrf.mxu0  ;;  %v11314_v47 = vpop.f32.mrf.mxu1 }
 0xa31   : > { %12064 = vst [vmem:[#allocation19_spill] sm:$0xff] %v11314_v47 }
 0xa32   : > { %v8877_v57 = vpop.f32.mrf.mxu0  ;;  %v8897_v7 = vpop.f32.mrf.mxu1 }
 0xa34   : > { %v4926_v5 = vpop.f32.mrf.mxu0  ;;  %v11318_v0 = vpop.f32.mrf.mxu1 }
 0xa35   : > { %12066 = vst [vmem:[#allocation21_spill] sm:$0xff] %v11318_v0  ;;  %v4795_v0 = vadd.f32 %v8845_v13, %v4708_v62  ;;  %v4955_v43 = vadd.f32 %v4926_v5, %v4882_v39  ;;  %v4956_v5 = vadd.f32 %v8876_v45, %v4883_v52 }
 0xa36   : > { %v8880_v54 = vpop.f32.mrf.mxu0  ;;  %v11320_v16 = vpop.f32.mrf.mxu1 }
 0xa37   : > { %12067 = vst [vmem:[#allocation22_spill] sm:$0xff] %v11320_v16  ;;  %v4954_v16 = vadd.f32 %v4923_v33, %v4881_v15  ;;  %v4884_v29 = vadd.f32 %v8861_v3, %v4795_v0  ;;  %v5044_v8 = vadd.f32 %v5015_v10, %v4955_v43 }
 0xa38   : > { %v11316_v4 = vpop.f32.mrf.mxu0  ;;  %v5174_v23 = vpop.f32.mrf.mxu1  ;;  %v12072_v9 = vld [vmem:[#allocation19_spill] sm:$0xff] }
 0xa39   : > { %12065 = vst [vmem:[#allocation20_spill] sm:$0xff] %v11316_v4  ;;  %v4798_v4 = vadd.f32 %v8848_v14, %v4721_v12  ;;  %v5043_v2 = vadd.f32 %v5012_v41, %v4954_v16  ;;  %v4957_v62 = vadd.f32 %v8877_v57, %v4884_v29  ;;  %v4796_v16 = vadd.f32 %v11312_v19, %v4713_v60 }
 0xa3a   : > { %v8881_v36 = vpop.f32.mrf.mxu0  ;;  %v8925_v11 = vpop.f32.mrf.mxu1  ;;  %v4886_v57 = vadd.f32 %v11308_v42, %v4797_v20  ;;  %v12073_v29 = vmov 0  }
 0xa3b   : > { %v4887_v59 = vadd.f32 %v8864_v50, %v4798_v4  ;;  %v4961_v33 = vadd.f32 %v8881_v36, %v4888_v17  ;;  %v5046_v53 = vadd.f32 %v8893_v48, %v4957_v62  ;;  %v4885_v32 = vadd.f32 %v12068_v28, %v4796_v16  ;;  %v9466_v16 = vld [vmem:[%s11954_s11 + $0x8] sm:$0xff]  }
 0xa3c   : > { %v4942_v1 = vpop.f32.mrf.mxu0  ;;  %v5177_v24 = vpop.f32.mrf.mxu1  ;;  %v12070_v30 = vld [vmem:[#allocation21_spill] sm:$0xff] }
 0xa3d   : > { %v4960_v12 = vadd.f32 %v8880_v54, %v4887_v59  ;;  %v5045_v54 = vadd.f32 %v11310_v26, %v4956_v5 }
 0xa3e   : > { %v8908_v31 = vpop.f32.mrf.mxu0  ;;  %v8928_v55 = vpop.f32.mrf.mxu1 }
 0xa3f   : > { %v5049_v38 = vadd.f32 %v8896_v22, %v4960_v12  ;;  %v5118_v40 = vadd.f32 %v8908_v31, %v5045_v54 }
 0xa40   : > { %v5085_v34 = vpop.f32.mrf.mxu0  ;;  %v5190_v10 = vpop.f32.mrf.mxu1  ;;  %v12069_v22 = vld [vmem:[#allocation20_spill] sm:$0xff] }
 0xa41   : > { %v5116_v15 = vadd.f32 %v5085_v34, %v5043_v2  ;;  %v5050_v34 = vadd.f32 %v8897_v7, %v4961_v33 }
 0xa42   : > { %v8909_v37 = vpop.f32.mrf.mxu0  ;;  %v8929_v35 = vpop.f32.mrf.mxu1 }
 0xa43   : > { %v5205_v63 = vadd.f32 %v5174_v23, %v5116_v15  ;;  %v5119_v27 = vadd.f32 %v8909_v37, %v5046_v53  ;;  %v4958_v23 = vadd.f32 %v12069_v22, %v4885_v32  ;;  %v9468_v53 = vld [vmem:[%s11954_s11] sm:$0xff]   ;;  %v12080_v32 = vld [vmem:[#allocation3_spill] sm:$0xff] }
 0xa44   : > { %v5088_v25 = vpop.f32.mrf.mxu0 }
 0xa45   : > { %v5117_v4 = vadd.f32 %v5088_v25, %v5044_v8  ;;  %v4959_v25 = vadd.f32 %v4942_v1, %v4886_v57  ;;  %v5208_v50 = vadd.f32 %v8925_v11, %v5119_v27  ;;  %v5047_v46 = vadd.f32 %v12072_v9, %v4958_v23  ;;  %v5193_v11 = vpop.f32.mrf.mxu1  ;;  %v9474_v57 = vld [vmem:[%s11955_s12 + $0x84] ss:$20 sps:$4 sm:$0xff]  }
 0xa46   : > { %v8912_v47 = vpop.f32.mrf.mxu0 }
 0xa47   : > { %v5122_v49 = vadd.f32 %v8912_v47, %v5049_v38  ;;  %v5206_v45 = vadd.f32 %v5177_v24, %v5117_v4  ;;  %v5048_v37 = vadd.f32 %v12070_v30, %v4959_v25  ;;  %v12071_v47 = vld [vmem:[#allocation22_spill] sm:$0xff]  ;;  %v9465_v4 = vld [vmem:[%s11954_s11 + $0x48] sm:$0xff]   ;;  %v12081_v25 = vmax.f32 %v12080_v32, 0.0 }
 0xa48   : > { %v11323_v58 = vpop.f32.mrf.mxu0  ;;  %v5207_v44 = vadd.f32 %v12071_v47, %v5118_v40  ;;  %v9469_v38 = vld [vmem:[%s11955_s12 + $0x78] ss:$20 sps:$4 sm:$0xff]   ;;  %v9472_v30 = vld [vmem:[%s11955_s12 + $0x80] ss:$20 sps:$4 sm:$0xff]  }
 0xa49   : > { %v5211_v39 = vadd.f32 %v8928_v55, %v5122_v49  ;;  %v5120_v59 = vadd.f32 %v11323_v58, %v5047_v46  ;;  %v9463_v58 = vld [vmem:[%s11954_s11 + $0x50] sm:$0xff]   ;;  %v12110_v32 = vld [vmem:[#allocation14_spill] sm:$0xff] }
 0xa4a   : > { %v8913_v51 = vpop.f32.mrf.mxu0  ;;  %8478 = vmatprep.subr.bf16.mxu0 %v9463_v58  ;;  %v12104_v58 = vld [vmem:[#allocation12_spill] sm:$0xff] }
 0xa4b   : > { %v5123_v21 = vadd.f32 %v8913_v51, %v5050_v34  ;;  %v5209_v15 = vadd.f32 %v5190_v10, %v5120_v59 }
 0xa4c   : > { %v5104_v6 = vpop.f32.mrf.mxu0 }
 0xa4d   : > { %v5212_v14 = vadd.f32 %v8929_v35, %v5123_v21  ;;  %v5121_v43 = vadd.f32 %v5104_v6, %v5048_v37  ;;  %v12083_v21 = vld [vmem:[#allocation4_spill] sm:$0xff] }
 0xa4e   : > { %v8940_v0 = vpop.f32.mrf.mxu0 }
 0xa4f   : > { %v5280_v24 = vadd.f32 %v8940_v0, %v5207_v44  ;;  %v5210_v62 = vadd.f32 %v5193_v11, %v5121_v43  ;;  %v9464_v0 = vld [vmem:[%s11954_s11 + $0x10] sm:$0xff]   ;;  %v12086_v44 = vld [vmem:[#allocation6_spill] sm:$0xff] }
 0xa50   : > { %v5247_v41 = vpop.f32.mrf.mxu0  ;;  %8479 = vmatpush3.bf16.msra.mxu0 %v9464_v0  ;;  %v12105_v0 = vmax.f32 %v12104_v58, 0.0  ;;  %v9487_v58 = vld [vmem:[%s11955_s12] ss:$20 sps:$4 sm:$0xff]  }
 0xa51   : > { %v5278_v36 = vadd.f32 %v5247_v41, %v5205_v63  ;;  %v5288_v12 = vmax.f32 %v5280_v24, 0.0  ;;  %8480 = vmatprep.subr.bf16.mxu0 %v9465_v4  ;;  %v9467_v41 = vld [vmem:[%s11954_s11 + $0x40] sm:$0xff]   ;;  %v9471_v63 = vld [vmem:[%s11955_s12 + $0x7c] ss:$20 sps:$4 sm:$0xff]  }
 0xa52   : > { %v8941_v61 = vpop.f32.mrf.mxu0  ;;  %5808 = vmatprep.subr.bf16.mxu1 %v9471_v63  ;;  %v12095_v24 = vld [vmem:[#allocation9_spill] sm:$0xff] }
 0xa53   : > { %v5286_v7 = vmax.f32 %v5278_v36, 0.0  ;;  %v5281_v26 = vadd.f32 %v8941_v61, %v5208_v50  ;;  %v12074_v61 = vld [vmem:[#allocation5_spill] sm:$0xff] }
 0xa54   : > { %v5250_v3 = vpop.f32.mrf.mxu0  ;;  %8481 = vmatpush3.bf16.msra.mxu0 %v9466_v16  ;;  %v12075_v27 = vmax.f32 %v12074_v61, 0.0 }
 0xa55   : > { %v5279_v48 = vadd.f32 %v5250_v3, %v5206_v45  ;;  %v5289_v2 = vmax.f32 %v5281_v26, 0.0  ;;  %8482 = vmatprep.subr.bf16.mxu0 %v9467_v41  ;;  %v12077_v45 = vld [vmem:[#allocation2_spill] sm:$0xff]  ;;  %v12089_v26 = vld [vmem:[#allocation7_spill] sm:$0xff]  ;;  %v12107_v41 = vld [vmem:[#allocation13_spill] sm:$0xff] }
 0xa56   : > { %v8944_v18 = vpop.f32.mrf.mxu0  ;;  %v12078_v36 = vmax.f32 %v12077_v45, 0.0 }
 0xa57   : > { %v5287_v13 = vmax.f32 %v5279_v48, 0.0  ;;  %v5284_v31 = vadd.f32 %v8944_v18, %v5211_v39  ;;  %v5295_v60 = vpack.c.bf16 %v5289_v2, %v5288_v12  ;;  %v12084_v48 = vmax.f32 %v12083_v21, 0.0  ;;  %v12113_v21 = vld [vmem:[#allocation15_spill] sm:$0xff] }
 0xa58   : > { %v5263_v42 = vpop.f32.mrf.mxu0  ;;  %8483 = vmatpush3.bf16.msra.mxu0 %v9468_v53  ;;  %v12108_v53 = vmax.f32 %v12107_v41, 0.0 }
 0xa59   : > { %v5294_v1 = vpack.c.bf16 %v5287_v13, %v5286_v7  ;;  %v5292_v56 = vmax.f32 %v5284_v31, 0.0  ;;  %v5282_v6 = vadd.f32 %v5263_v42, %v5209_v15  ;;  %5881 = vmatprep.subr.bf16.mxu0 %v9474_v57  ;;  %v12087_v42 = vmax.f32 %v12086_v44, 0.0 }
 0xa5a   : > { %v8945_v19 = vpop.f32.mrf.mxu0 }
 0xa5b   : > { %v5285_v51 = vadd.f32 %v8945_v19, %v5212_v14  ;;  %7667 = vmatmul.mubr.msk.bf16.vlgmr.msra.gmra.mxu1 %vm2181_vm0, %v5294_v1  ;;  %v5290_v33 = vmax.f32 %v5282_v6, 0.0  ;;  %v12090_v1 = vmax.f32 %v12089_v26, 0.0  ;;  %v12092_v19 = vld [vmem:[#allocation8_spill] sm:$0xff] }
 0xa5c   : > { %5400 = vmatprep.mubr.bf16.mxu1 %v12073_v29  ;;  %v5266_v17 = vpop.f32.mrf.mxu0  ;;  %5809 = vmatpush1.bf16.msra.mxu1 %v9469_v38  ;;  %v12093_v9 = vmax.f32 %v12092_v19, 0.0 }
 0xa5d   : > { %v5293_v52 = vmax.f32 %v5285_v51, 0.0  ;;  %v5283_v20 = vadd.f32 %v5266_v17, %v5210_v62  ;;  %v12096_v51 = vmax.f32 %v12095_v24, 0.0 }
 0xa5f   : > { %v5297_v8 = vpack.c.bf16 %v5293_v52, %v5292_v56  ;;  %v5291_v5 = vmax.f32 %v5283_v20, 0.0 }
 0xa61   : > { %v5296_v55 = vpack.c.bf16 %v5291_v5, %v5290_v33  ;;  %v12101_v5 = vld [vmem:[#allocation11_spill] sm:$0xff] }
 0xa62   : > { %v12102_v33 = vmax.f32 %v12101_v5, 0.0  ;;  %v9489_v5 = vld [vmem:[%s11955_s12 + $0x4] ss:$20 sps:$4 sm:$0xff]  }
 0xa63   : > { %7668 = vmatmul.mubr.msk.bf16.gmra.mxu1 %vm2181_vm0, %v5295_v60  ;;  %v12098_v60 = vld [vmem:[#allocation10_spill] sm:$0xff] }
 0xa64   : > { %5410 = vmatprep.mubr.bf16.mxu1 %v12073_v29  ;;  %v12099_v20 = vmax.f32 %v12098_v60, 0.0  ;;  %v9481_v60 = vld [vmem:[%s11955_s12 + $0x28] ss:$20 sps:$4 sm:$0xff]  }
 0xa6b   : > { %7669 = vmatmul.mubr.msk.bf16.gmra.mxu1 %vm2181_vm0, %v5296_v55 }
 0xa6c   : > { %5420 = vmatprep.mubr.bf16.mxu1 %v12073_v29 }
 0xa73   : > { %7670 = vmatmul.mubr.msk.bf16.gmra.mxu1 %vm2181_vm0, %v5297_v8 }
 0xa74   : > { %5832 = vmatprep.mubr.bf16.mxu1 %v12073_v29 }
 0xb1b   : > { %v5392_v54 = vpop.f32.mrf.mxu1 }
 0xb1c   : > { %v11383_v40 = vadd.f32 %v5392_v54, %v12081_v25  ;;  %v12111_v25 = vmax.f32 %v12110_v32, 0.0 }
 0xb1d   : > { %v5394_v34 = vpop.f32.mrf.mxu1 }
 0xb1e   : > { %v11375_v49 = vadd.f32 %v5394_v34, %v12075_v27  ;;  %12082 = vst [vmem:[#allocation21_spill] sm:$0xff] %v11383_v40  ;;  %v11995_v39 = vmax.f32 %v11383_v40, 0.0 }
 0xb1f   : > { %v5396_v10 = vpop.f32.mrf.mxu1 }
 0xb20   : > { %12076 = vst [vmem:[#allocation18_spill] sm:$0xff] %v11375_v49  ;;  %v11379_v28 = vadd.f32 %v5396_v10, %v12078_v36  ;;  %v11997_v18 = vmax.f32 %v11375_v49, 0.0 }
 0xb21   : > { %v5398_v3 = vpop.f32.mrf.mxu1 }
 0xb22   : > { %12079 = vst [vmem:[#allocation20_spill] sm:$0xff] %v11379_v28  ;;  %v11387_v22 = vadd.f32 %v5398_v3, %v12084_v48  ;;  %v11996_v23 = vmax.f32 %v11379_v28, 0.0  ;;  %v12114_v48 = vmax.f32 %v12113_v21, 0.0 }
 0xb23   : > { %v5402_v35 = vpop.f32.mrf.mxu1 }
 0xb24   : > { %12085 = vst [vmem:[#allocation22_spill] sm:$0xff] %v11387_v22  ;;  %v11999_v50 = vmax.f32 %v11387_v22, 0.0  ;;  %v5447_v37 = vpack.c.bf16 %v11996_v23, %v11995_v39  ;;  %v11414_v46 = vadd.f32 %v5402_v35, %v12093_v9 }
 0xb25   : > { %v5404_v7 = vpop.f32.mrf.mxu1 }
 0xb26   : > { %v5448_v13 = vpack.c.bf16 %v11999_v50, %v11997_v18  ;;  %v11406_v14 = vadd.f32 %v5404_v7, %v12087_v42  ;;  %12094 = vst [vmem:[#allocation2_spill] sm:$0xff] %v11414_v46  ;;  %v11998_v17 = vmax.f32 %v11414_v46, 0.0  ;;  %v12116_v7 = vld [vmem:[#allocation16_spill] sm:$0xff] }
 0xb27   : > { %v5406_v47 = vpop.f32.mrf.mxu1 }
 0xb28   : > { %12088 = vst [vmem:[#allocation19_spill] sm:$0xff] %v11406_v14  ;;  %v11410_v31 = vadd.f32 %v5406_v47, %v12090_v1  ;;  %5615 = vmatprep.mubr.bf16.mxu0 %v5448_v13  ;;  %v12001_v56 = vmax.f32 %v11406_v14, 0.0  ;;  %v12117_v13 = vmax.f32 %v12116_v7, 0.0  ;;  %v12119_v47 = vld [vmem:[#allocation17_spill] sm:$0xff] }
 0xb29   : > { %v5408_v43 = vpop.f32.mrf.mxu1  ;;  %5616 = vmatmul.mubr.bf16.vlgmr.msra.gmra.mxu0 %v5447_v37  ;;  %v12120_v44 = vmax.f32 %v12119_v47, 0.0 }
 0xb2a   : > { %12091 = vst [vmem:[#allocation5_spill] sm:$0xff] %v11410_v31  ;;  %v11418_v11 = vadd.f32 %v5408_v43, %v12096_v51  ;;  %5882 = vmatpush1.bf16.msra.mxu0 %v9472_v30  ;;  %v12000_v59 = vmax.f32 %v11410_v31, 0.0  ;;  %v9475_v51 = vld [vmem:[%s11955_s12 + $0x50] ss:$20 sps:$4 sm:$0xff]  }
 0xb2b   : > { %v5412_v2 = vpop.f32.mrf.mxu1 }
 0xb2c   : > { %12097 = vst [vmem:[#allocation3_spill] sm:$0xff] %v11418_v11  ;;  %v12003_v52 = vmax.f32 %v11418_v11, 0.0  ;;  %v5449_v8 = vpack.c.bf16 %v12000_v59, %v11998_v17  ;;  %v11442_v4 = vadd.f32 %v5412_v2, %v12105_v0  ;;  %v9477_v2 = vld [vmem:[%s11955_s12 + $0x54] ss:$20 sps:$4 sm:$0xff]  }
 0xb2d   : > { %v5414_v62 = vpop.f32.mrf.mxu1  ;;  %5810 = vmatprep.subr.bf16.mxu1 %v9477_v2  ;;  %v9490_v0 = vld [vmem:[%s11955_s12 + $0x8] ss:$20 sps:$4 sm:$0xff]  }
 0xb2e   : > { %v5450_v12 = vpack.c.bf16 %v12003_v52, %v12001_v56  ;;  %v11434_v6 = vadd.f32 %v5414_v62, %v12099_v20  ;;  %12106 = vst [vmem:[#allocation7_spill] sm:$0xff] %v11442_v4  ;;  %v12002_v10 = vmax.f32 %v11442_v4, 0.0  ;;  %v9478_v62 = vld [vmem:[%s11955_s12 + $0x58] ss:$20 sps:$4 sm:$0xff]   ;;  %5811 = vmatpush1.bf16.msra.mxu1 %v9475_v51  ;;  %v9484_v20 = vld [vmem:[%s11955_s12 + $0x30] ss:$20 sps:$4 sm:$0xff]  }
 0xb2f   : > { %v5416_v15 = vpop.f32.mrf.mxu1 }
 0xb30   : > { %12100 = vst [vmem:[#allocation4_spill] sm:$0xff] %v11434_v6  ;;  %v11438_v55 = vadd.f32 %v5416_v15, %v12102_v33  ;;  %5623 = vmatprep.mubr.bf16.mxu0 %v5450_v12  ;;  %v12006_v54 = vmax.f32 %v11434_v6, 0.0  ;;  %v9480_v12 = vld [vmem:[%s11955_s12 + $0x5c] ss:$20 sps:$4 sm:$0xff]   ;;  %v9486_v15 = vld [vmem:[%s11955_s12 + $0x34] ss:$20 sps:$4 sm:$0xff]  }
 0xb31   : > { %v5418_v16 = vpop.f32.mrf.mxu1  ;;  %5624 = vmatmul.mubr.bf16.gmra.mxu0 %v5449_v8  ;;  %5883 = vmatprep.subr.bf16.mxu0 %v9480_v12  ;;  %v9483_v8 = vld [vmem:[%s11955_s12 + $0x2c] ss:$20 sps:$4 sm:$0xff]  }
 0xb32   : > { %12103 = vst [vmem:[#allocation6_spill] sm:$0xff] %v11438_v55  ;;  %v11446_v38 = vadd.f32 %v5418_v16, %v12108_v53  ;;  %v12004_v63 = vmax.f32 %v11438_v55, 0.0  ;;  %5884 = vmatpush1.bf16.msra.mxu0 %v9478_v62  ;;  %5812 = vmatprep.subr.bf16.mxu1 %v9483_v8  ;;  %v9492_v33 = vld [vmem:[%s11955_s12 + $0xc] ss:$20 sps:$4 sm:$0xff]   ;;  %v9493_v16 = vld [vmem:[%s11955_s12 + $0x88] ss:$20 sps:$4 sm:$0xff]  }
 0xb33   : > { %v5422_v57 = vpop.f32.mrf.mxu1  ;;  %5885 = vmatprep.subr.bf16.mxu0 %v9486_v15  ;;  %5813 = vmatpush1.bf16.msra.mxu1 %v9481_v60  ;;  %v9496_v15 = vld [vmem:[%s11955_s12 + $0x10] ss:$20 sps:$4 sm:$0xff]  }
 0xb34   : > { %12109 = vst [vmem:[#allocation8_spill] sm:$0xff] %v11446_v38  ;;  %v12010_v34 = vmax.f32 %v11446_v38, 0.0  ;;  %v5451_v45 = vpack.c.bf16 %v12004_v63, %v12002_v10  ;;  %v11470_v30 = vadd.f32 %v5422_v57, %v12117_v13  ;;  %5814 = vmatprep.subr.bf16.mxu1 %v9489_v5  ;;  %v9494_v13 = vld [vmem:[%s11955_s12 + $0x60] ss:$20 sps:$4 sm:$0xff]  }
 0xb35   : > { %v5424_v61 = vpop.f32.mrf.mxu1 }
 0xb36   : > { %v5452_v27 = vpack.c.bf16 %v12010_v34, %v12006_v54  ;;  %v11462_v3 = vadd.f32 %v5424_v61, %v12111_v25  ;;  %12118 = vst [vmem:[#allocation11_spill] sm:$0xff] %v11470_v30  ;;  %v12007_v9 = vmax.f32 %v11470_v30, 0.0  ;;  %5886 = vmatpush1.bf16.msra.mxu0 %v9484_v20 }
 0xb37   : > { %v5426_v36 = vpop.f32.mrf.mxu1  ;;  %5887 = vmatprep.subr.bf16.mxu0 %v9492_v33  ;;  %5815 = vmatpush1.bf16.msra.mxu1 %v9487_v58 }
 0xb38   : > { %12112 = vst [vmem:[#allocation9_spill] sm:$0xff] %v11462_v3  ;;  %v11466_v35 = vadd.f32 %v5426_v36, %v12114_v48  ;;  %5631 = vmatprep.mubr.bf16.mxu0 %v5452_v27  ;;  %v12009_v1 = vmax.f32 %v11462_v3, 0.0  ;;  %8946 = vmatprep.subr.bf16.mxu1 %v9493_v16 }
 0xb39   : > { %v5428_v37 = vpop.f32.mrf.mxu1  ;;  %5632 = vmatmul.mubr.bf16.gmra.mxu0 %v5451_v45 }
 0xb3a   : > { %12115 = vst [vmem:[#allocation10_spill] sm:$0xff] %v11466_v35  ;;  %v11474_v42 = vadd.f32 %v5428_v37, %v12120_v44  ;;  %v12008_v26 = vmax.f32 %v11466_v35, 0.0  ;;  %5888 = vmatpush1.bf16.msra.mxu0 %v9490_v0 }
 0xb3c   : > { %12121 = vst [vmem:[#allocation12_spill] sm:$0xff] %v11474_v42  ;;  %v12005_v19 = vmax.f32 %v11474_v42, 0.0  ;;  %v5453_v24 = vpack.c.bf16 %v12008_v26, %v12007_v9 }
 0xb3e   : > { %v5454_v43 = vpack.c.bf16 %v12005_v19, %v12009_v1 }
 0xb40   : > { %5639 = vmatprep.mubr.bf16.mxu0 %v5454_v43 }
 0xb41   : > { %5640 = vmatmul.mubr.bf16.gmra.mxu0 %v5453_v24  ;;  %v9495_v24 = vld [vmem:[%s11955_s12 + $0x38] ss:$20 sps:$4 sm:$0xff]  }
 0xb42   : > { %5905 = vmatprep.mubr.bf16.mxu0 %v12073_v29 }
 0xbe9   : > { %v8484_v41 = vpop.f32.mrf.mxu0 }
 0xbeb   : > { %v8485_v53 = vpop.f32.mrf.mxu0 }
 0xbec   : > { %v8486_v61 = vadd.f32 %v8485_v53, %v8484_v41 }
 0xbed   : > { %v8487_v57 = vpop.f32.mrf.mxu0 }
 0xbee   : > { %v5648_v32 = vmax.f32 %v8486_v61, 0.0 }
 0xbef   : > { %v8488_v27 = vpop.f32.mrf.mxu0 }
 0xbf0   : > { %v8489_v45 = vadd.f32 %v8488_v27, %v8487_v57 }
 0xbf1   : > { %v8490_v36 = vpop.f32.mrf.mxu0 }
 0xbf2   : > { %v5649_v25 = vmax.f32 %v8489_v45, 0.0 }
 0xbf3   : > { %v8491_v21 = vpop.f32.mrf.mxu0 }
 0xbf4   : > { %v5656_v48 = vpack.c.bf16 %v5649_v25, %v5648_v32  ;;  %v8492_v37 = vadd.f32 %v8491_v21, %v8490_v36  ;;  %v9563_v25 = vld [vmem:[%s11946_s3] sm:$0xff]  }
 0xbf5   : > { %v8493_v7 = vpop.f32.mrf.mxu0  ;;  %v9564_v21 = vld [vmem:[%s11946_s3 + $0x20] sm:$0xff]  }
 0xbf6   : > { %7707 = vmatmul.mubr.msk.bf16.vlgmr.msra.gmra.mxu1 %vm2181_vm0, %v5656_v48  ;;  %7711 = vmatmul.mubr.msk.bf16.vlgmr.msra.gmra.mxu0 %vm2181_vm0, %v5656_v48  ;;  %v5650_v51 = vmax.f32 %v8492_v37, 0.0 }
 0xbf7   : > { %v8494_v47 = vpop.f32.mrf.mxu0  ;;  %5842 = vmatprep.mubr.bf16.mxu1 %v12073_v29  ;;  %5915 = vmatprep.mubr.bf16.mxu0 %v12073_v29 }
 0xbf8   : > { %v8495_v44 = vadd.f32 %v8494_v47, %v8493_v7  ;;  %8947 = vmatpush3.bf16.msra.mxu1 %v9493_v16 }
 0xbf9   : > { %v8496_v43 = vpop.f32.mrf.mxu0  ;;  %8948 = vmatprep.subr.bf16.mxu1 %v9494_v13 }
 0xbfa   : > { %v5651_v2 = vmax.f32 %v8495_v44, 0.0 }
 0xbfb   : > { %v8497_v62 = vpop.f32.mrf.mxu0 }
 0xbfc   : > { %v5657_v12 = vpack.c.bf16 %v5651_v2, %v5650_v51  ;;  %8949 = vmatpush3.bf16.msra.mxu1 %v9494_v13  ;;  %v8498_v60 = vadd.f32 %v8497_v62, %v8496_v43 }
 0xbfd   : > { %v8499_v8 = vpop.f32.mrf.mxu0  ;;  %8950 = vmatprep.subr.bf16.mxu1 %v9495_v24 }
 0xbfe   : > { %7708 = vmatmul.mubr.msk.bf16.gmra.mxu1 %vm2181_vm0, %v5657_v12  ;;  %7712 = vmatmul.mubr.msk.bf16.gmra.mxu0 %vm2181_vm0, %v5657_v12  ;;  %v5652_v58 = vmax.f32 %v8498_v60, 0.0 }
 0xbff   : > { %v8500_v20 = vpop.f32.mrf.mxu0  ;;  %5852 = vmatprep.mubr.bf16.mxu1 %v12073_v29  ;;  %5925 = vmatprep.mubr.bf16.mxu0 %v12073_v29 }
 0xc00   : > { %v8501_v5 = vadd.f32 %v8500_v20, %v8499_v8  ;;  %8951 = vmatpush3.bf16.msra.mxu1 %v9495_v24 }
 0xc01   : > { %v8502_v33 = vpop.f32.mrf.mxu0  ;;  %8952 = vmatprep.subr.bf16.mxu1 %v9496_v15 }
 0xc02   : > { %v5653_v0 = vmax.f32 %v8501_v5, 0.0 }
 0xc03   : > { %v8503_v16 = vpop.f32.mrf.mxu0 }
 0xc04   : > { %v5658_v41 = vpack.c.bf16 %v5653_v0, %v5652_v58  ;;  %8953 = vmatpush3.bf16.msra.mxu1 %v9496_v15  ;;  %v8504_v57 = vadd.f32 %v8503_v16, %v8502_v33 }
 0xc05   : > { %v8505_v53 = vpop.f32.mrf.mxu0 }
 0xc06   : > { %7709 = vmatmul.mubr.msk.bf16.gmra.mxu1 %vm2181_vm0, %v5658_v41  ;;  %7713 = vmatmul.mubr.msk.bf16.gmra.mxu0 %vm2181_vm0, %v5658_v41  ;;  %v5654_v45 = vmax.f32 %v8504_v57, 0.0 }
 0xc07   : > { %v8506_v61 = vpop.f32.mrf.mxu0  ;;  %5862 = vmatprep.mubr.bf16.mxu1 %v12073_v29  ;;  %5935 = vmatprep.mubr.bf16.mxu0 %v12073_v29 }
 0xc08   : > { %v8507_v27 = vadd.f32 %v8506_v61, %v8505_v53 }
 0xc0a   : > { %v5655_v36 = vmax.f32 %v8507_v27, 0.0 }
 0xc0c   : > { %v5659_v32 = vpack.c.bf16 %v5655_v36, %v5654_v45 }
 0xc0e   : > { %7710 = vmatmul.mubr.msk.bf16.gmra.mxu1 %vm2181_vm0, %v5659_v32  ;;  %7714 = vmatmul.mubr.msk.bf16.gmra.mxu0 %vm2181_vm0, %v5659_v32 }
 0xc0f   : > { %8954 = vmatprep.mubr.msk.bf16.mxu1 %vm2181_vm0, %v5656_v48  ;;  %8986 = vmatprep.mubr.msk.bf16.mxu0 %vm2181_vm0, %v9563_v25 }
 0xc16   : > { %8955 = vmatmul.mubr.msk.bf16.vlgmr.msra.gmra.mxu1 %vm2181_vm0, %v5657_v12 }
 0xc17   : > { %8958 = vmatprep.mubr.msk.bf16.mxu1 %vm2181_vm0, %v5658_v41 }
 0xc1e   : > { %8959 = vmatmul.mubr.msk.bf16.gmra.mxu1 %vm2181_vm0, %v5659_v32 }
 0xc1f   : > { %8970 = vmatprep.mubr.msk.bf16.mxu1 %vm2181_vm0, %v9564_v21 }
 0xcb6   : > { %v5834_v7 = vpop.f32.mrf.mxu1  ;;  %v5907_v48 = vpop.f32.mrf.mxu0 }
 0xcb8   : > { %v5836_v13 = vpop.f32.mrf.mxu1  ;;  %v5909_v37 = vpop.f32.mrf.mxu0 }
 0xcba   : > { %v5838_v47 = vpop.f32.mrf.mxu1  ;;  %v5911_v44 = vpop.f32.mrf.mxu0 }
 0xcbb   : > { %v6011_v61 = vpack.c.bf16 %v5838_v47, %v5834_v7 }
 0xcbc   : > { %v5840_v43 = vpop.f32.mrf.mxu1  ;;  %v5913_v24 = vpop.f32.mrf.mxu0 }
 0xcbe   : > { %v5844_v51 = vpop.f32.mrf.mxu1  ;;  %v5917_v2 = vpop.f32.mrf.mxu0 }
 0xcc0   : > { %v5846_v62 = vpop.f32.mrf.mxu1  ;;  %v11563_v12 = vpop.f32.mrf.mxu0 }
 0xcc2   : > { %v5848_v8 = vpop.f32.mrf.mxu1  ;;  %v5921_v15 = vpop.f32.mrf.mxu0 }
 0xcc4   : > { %v5850_v60 = vpop.f32.mrf.mxu1  ;;  %v5923_v20 = vpop.f32.mrf.mxu0 }
 0xcc6   : > { %v5854_v5 = vpop.f32.mrf.mxu1  ;;  %v5927_v33 = vpop.f32.mrf.mxu0 }
 0xcc8   : > { %v5856_v58 = vpop.f32.mrf.mxu1  ;;  %v5929_v41 = vpop.f32.mrf.mxu0 }
 0xcca   : > { %v5858_v0 = vpop.f32.mrf.mxu1  ;;  %v5931_v27 = vpop.f32.mrf.mxu0 }
 0xccb   : > { %v6021_v16 = vpack.c.bf16 %v5858_v0, %v5854_v5  ;;  %v11572_v5 = vpack.c.bf16 %v5840_v43, %v5836_v13  ;;  %v6016_v0 = vpack.c.bf16 %v5848_v8, %v5844_v51  ;;  %v11582_v13 = vpack.c.bf16 %v5911_v44, %v5907_v48  ;;  %v9565_v48 = vld [vmem:[%s11946_s3 + $0x8] sm:$0xff]  }
 0xccc   : > { %v5860_v53 = vpop.f32.mrf.mxu1  ;;  %v5933_v21 = vpop.f32.mrf.mxu0  ;;  %v11584_v43 = vpack.c.bf16 %v5850_v60, %v5846_v62  ;;  %v11602_v44 = vpack.c.bf16 %v5913_v24, %v5909_v37  ;;  %v11604_v62 = vpack.c.bf16 %v5921_v15, %v5917_v2  ;;  %v9566_v60 = vld [vmem:[%s11946_s3 + $0x10] sm:$0xff]   ;;  %v9567_v37 = vld [vmem:[%s11946_s3 + $0x18] sm:$0xff]   ;;  %v11623_v24 = vpack.c.bf16 %v5923_v20, %v11563_v12  ;;  %v9568_v2 = vld [vmem:[%s11946_s3 + $0x60] sm:$0xff]  }
 0xccd   : > { %6039 = vrot.lane.b32.xlu1 %v6021_v16, %s9608_s18  ;;  %v11567_v32 = vpack.c.bf16 %v5860_v53, %v5856_v58  ;;  %v11577_v58 = vpack.c.bf16 %v5931_v27, %v5927_v33  ;;  %v11590_v8 = vpack.c.bf16 %v5933_v21, %v5929_v41 }
 0xcce   : > { %v5864_v57 = vpop.f32.mrf.mxu1  ;;  %v5937_v7 = vpop.f32.mrf.mxu0 }
 0xcd0   : > { %v5866_v45 = vpop.f32.mrf.mxu1 }
 0xcd1   : > { %6035 = vrot.lane.b32.xlu1 %v6011_v61, %s9608_s18 }
 0xcd2   : > { %v5868_v36 = vpop.f32.mrf.mxu1 }
 0xcd3   : > { %v6026_v25 = vpack.c.bf16 %v5868_v36, %v5864_v57  ;;  %v5939_v57 = vpop.f32.mrf.mxu0 }
 0xcd4   : > { %v5870_v47 = vpop.f32.mrf.mxu1 }
 0xcd5   : > { %6258 = vrot.lane.b32.xlu1 %v11567_v32, %s9608_s18  ;;  %6041 = vrot.lane.b32.xlu0 %v6026_v25, %s9608_s18  ;;  %v6027_v53 = vpack.c.bf16 %v5870_v47, %v5866_v45  ;;  %v5941_v51 = vpop.f32.mrf.mxu0  ;;  %v9571_v47 = vld [vmem:[%s11946_s3 + $0x38] sm:$0xff]  }
 0xcd6   : > { %8978 = vmatprep.subr.bf16.mxu0 %v6026_v25  ;;  %v11592_v33 = vpack.c.bf16 %v5941_v51, %v5937_v7  ;;  %v9574_v51 = vld [vmem:[%s11946_s3 + $0x70] sm:$0xff]  }
 0xcd7   : > { %8979 = vmatpush3.bf16.msra.mxu0 %v6026_v25  ;;  %v9569_v25 = vld [vmem:[%s11946_s3 + $0x28] sm:$0xff]  }
 0xcd8   : > { %8980 = vmatprep.subr.bf16.mxu0 %v6021_v16 }
 0xcd9   : > { %6254 = vrot.lane.b32.xlu1 %v11572_v5, %s9608_s18  ;;  %6037 = vrot.lane.b32.xlu0 %v6016_v0, %s9608_s18 }
 0xcdb   : > { %8981 = vmatpush3.bf16.msra.mxu0 %v6021_v16  ;;  %v5943_v16 = vpop.f32.mrf.mxu0 }
 0xcdc   : > { %8982 = vmatprep.subr.bf16.mxu0 %v6016_v0  ;;  %v11614_v41 = vpack.c.bf16 %v5943_v16, %v5939_v57  ;;  %v11670_v16 = vpop.f32.mrf.mxu1 }
 0xcdd   : > { %6420 = vrot.lane.b32.xlu1 %v11577_v58, %s9608_s18  ;;  %6260 = vrot.lane.b32.xlu0 %v6027_v53, %s9608_s18 }
 0xcdf   : > { %8983 = vmatpush3.bf16.msra.mxu0 %v6016_v0  ;;  %v9570_v0 = vld [vmem:[%s11946_s3 + $0x30] sm:$0xff]  }
 0xce0   : > { %8984 = vmatprep.subr.bf16.mxu0 %v6011_v61 }
 0xce1   : > { %6416 = vrot.lane.b32.xlu1 %v11582_v13, %s9608_s18  ;;  %6256 = vrot.lane.b32.xlu0 %v11584_v43, %s9608_s18 }
 0xce3   : > { %8985 = vmatpush3.bf16.msra.mxu0 %v6011_v61 }
 0xce5   : > { %6582 = vrot.lane.b32.xlu1 %v11590_v8, %s9608_s18  ;;  %6422 = vrot.lane.b32.xlu0 %v11592_v33, %s9608_s18 }
 0xce6   : > { %8987 = vmatmul.mubr.msk.bf16.vlgmr.msra.gmra.mxu0 %vm2181_vm0, %v9565_v48 }
 0xce7   : > { %8990 = vmatprep.mubr.msk.bf16.mxu0 %vm2181_vm0, %v9566_v60  ;;  %v9576_v60 = vld [vmem:[%s11946_s3 + $0x78] sm:$0xff]  }
 0xce9   : > { %6578 = vrot.lane.b32.xlu1 %v11602_v44, %s9608_s18  ;;  %6418 = vrot.lane.b32.xlu0 %v11604_v62, %s9608_s18 }
 0xced   : > { %6584 = vrot.lane.b32.xlu0 %v11614_v41, %s9608_s18 }
 0xcee   : > { %8991 = vmatmul.mubr.msk.bf16.gmra.mxu0 %vm2181_vm0, %v9567_v37 }
 0xcef   : > { %9018 = vmatprep.mubr.msk.bf16.mxu0 %vm2181_vm0, %v9568_v2  ;;  %v9578_v2 = vld [vmem:[%s11946_s3 + $0xa0] sm:$0xff]  }
 0xcf1   : > { %6580 = vrot.lane.b32.xlu0 %v11623_v24, %s9608_s18 }
 0xd3f   : > { %v6040_v15 = vpop.permute.xlu1 %6039 }
 0xd43   : > { %v6036_v27 = vpop.permute.xlu1 %6035 }
 0xd47   : > { %v6042_v61 = vpop.permute.xlu0 %6041  ;;  %v6259_v20 = vpop.permute.xlu1 %6258 }
 0xd48   : > { %8962 = vmatprep.subr.bf16.mxu1 %v6042_v61 }
 0xd49   : > { %8963 = vmatpush3.bf16.msra.mxu1 %v6042_v61 }
 0xd4a   : > { %8964 = vmatprep.subr.bf16.mxu1 %v6040_v15 }
 0xd4b   : > { %v6038_v45 = vpop.permute.xlu0 %6037  ;;  %v6255_v21 = vpop.permute.xlu1 %6254 }
 0xd4d   : > { %8965 = vmatpush3.bf16.msra.mxu1 %v6040_v15  ;;  %v11682_v15 = vpop.f32.mrf.mxu1 }
 0xd4e   : > { %8966 = vmatprep.subr.bf16.mxu1 %v6038_v45 }
 0xd4f   : > { %v6261_v12 = vpop.permute.xlu0 %6260  ;;  %v6421_v57 = vpop.permute.xlu1 %6420 }
 0xd50   : > { %9010 = vmatprep.subr.bf16.mxu0 %v6261_v12 }
 0xd51   : > { %8967 = vmatpush3.bf16.msra.mxu1 %v6038_v45  ;;  %9011 = vmatpush3.bf16.msra.mxu0 %v6261_v12  ;;  %v8957_v45 = vpop.f32.mrf.mxu1 }
 0xd52   : > { %8968 = vmatprep.subr.bf16.mxu1 %v6036_v27  ;;  %9012 = vmatprep.subr.bf16.mxu0 %v6259_v20 }
 0xd53   : > { %v6257_v36 = vpop.permute.xlu0 %6256  ;;  %v6417_v37 = vpop.permute.xlu1 %6416 }
 0xd55   : > { %8969 = vmatpush3.bf16.msra.mxu1 %v6036_v27  ;;  %9013 = vmatpush3.bf16.msra.mxu0 %v6259_v20  ;;  %v9580_v27 = vld [vmem:[%s11946_s3 + $0xa8] sm:$0xff]   ;;  %v9582_v20 = vld [vmem:[%s11946_s3 + $0xb0] sm:$0xff]  }
 0xd56   : > { %8994 = vmatprep.subr.bf16.mxu1 %v6027_v53  ;;  %9014 = vmatprep.subr.bf16.mxu0 %v6257_v36 }
 0xd57   : > { %v6423_v7 = vpop.permute.xlu0 %6422  ;;  %v6583_v12 = vpop.permute.xlu1 %6582 }
 0xd58   : > { %8971 = vmatmul.mubr.msk.bf16.vlgmr.msra.gmra.mxu1 %vm2181_vm0, %v9569_v25 }
 0xd59   : > { %8995 = vmatpush3.bf16.msra.mxu1 %v6027_v53  ;;  %9015 = vmatpush3.bf16.msra.mxu0 %v6257_v36  ;;  %v9572_v53 = vld [vmem:[%s11946_s3 + $0x68] sm:$0xff]   ;;  %v5983_v36 = vpop.f32.mrf.mxu1 }
 0xd5a   : > { %8996 = vmatprep.subr.bf16.mxu1 %v11567_v32  ;;  %9016 = vmatprep.subr.bf16.mxu0 %v6255_v21 }
 0xd5b   : > { %8974 = vmatprep.mubr.msk.bf16.mxu1 %vm2181_vm0, %v9570_v0  ;;  %v6419_v48 = vpop.permute.xlu0 %6418  ;;  %v8960_v0 = vpop.f32.mrf.mxu1 }
 0xd5d   : > { %8997 = vmatpush3.bf16.msra.mxu1 %v11567_v32  ;;  %9017 = vmatpush3.bf16.msra.mxu0 %v6255_v21  ;;  %v9573_v32 = vld [vmem:[%s11946_s3 + $0x40] sm:$0xff]   ;;  %v9584_v21 = vld [vmem:[%s11946_s3 + $0xb8] sm:$0xff]  }
 0xd5e   : > { %8998 = vmatprep.subr.bf16.mxu1 %v11584_v43  ;;  %9042 = vmatprep.subr.bf16.mxu0 %v6423_v7 }
 0xd5f   : > { %v6585_v61 = vpop.permute.xlu0 %6584 }
 0xd60   : > { %8975 = vmatmul.mubr.msk.bf16.gmra.mxu1 %vm2181_vm0, %v9571_v47  ;;  %9019 = vmatmul.mubr.msk.bf16.vlgmr.msra.gmra.mxu0 %vm2181_vm0, %v9572_v53  ;;  %v9586_v47 = vld [vmem:[%s11946_s3 + $0xe0] sm:$0xff]   ;;  %v5996_v53 = vpop.f32.mrf.mxu1 }
 0xd61   : > { %8999 = vmatpush3.bf16.msra.mxu1 %v11584_v43  ;;  %9043 = vmatpush3.bf16.msra.mxu0 %v6423_v7  ;;  %v9575_v43 = vld [vmem:[%s11946_s3 + $0x48] sm:$0xff]   ;;  %v6579_v7 = vpop.permute.xlu1 %6578 }
 0xd62   : > { %9000 = vmatprep.subr.bf16.mxu1 %v11572_v5  ;;  %9044 = vmatprep.subr.bf16.mxu0 %v6421_v57 }
 0xd63   : > { %9002 = vmatprep.mubr.msk.bf16.mxu1 %vm2181_vm0, %v9573_v32  ;;  %9022 = vmatprep.mubr.msk.bf16.mxu0 %vm2181_vm0, %v9574_v51  ;;  %v6581_v25 = vpop.permute.xlu0 %6580  ;;  %v8961_v32 = vpop.f32.mrf.mxu1  ;;  %v9590_v51 = vld [vmem:[%s11946_s3 + $0xf0] sm:$0xff]  }
 0xd65   : > { %9001 = vmatpush3.bf16.msra.mxu1 %v11572_v5  ;;  %9045 = vmatpush3.bf16.msra.mxu0 %v6421_v57  ;;  %v9577_v5 = vld [vmem:[%s11946_s3 + $0x50] sm:$0xff]   ;;  %v9588_v57 = vld [vmem:[%s11946_s3 + $0xe8] sm:$0xff]  }
 0xd66   : > { %9026 = vmatprep.subr.bf16.mxu1 %v11592_v33  ;;  %9046 = vmatprep.subr.bf16.mxu0 %v6419_v48 }
 0xd68   : > { %9003 = vmatmul.mubr.msk.bf16.vlgmr.msra.gmra.mxu1 %vm2181_vm0, %v9575_v43  ;;  %9023 = vmatmul.mubr.msk.bf16.gmra.mxu0 %vm2181_vm0, %v9576_v60  ;;  %v5999_v43 = vpop.f32.mrf.mxu1  ;;  %v9591_v60 = vld [vmem:[%s11946_s3 + $0xc8] sm:$0xff]  }
 0xd69   : > { %9027 = vmatpush3.bf16.msra.mxu1 %v11592_v33  ;;  %9047 = vmatpush3.bf16.msra.mxu0 %v6419_v48  ;;  %v9579_v33 = vld [vmem:[%s11946_s3 + $0x58] sm:$0xff]   ;;  %v6030_v48 = vpack.c.bf16 %v8961_v32, %v8960_v0 }
 0xd6a   : > { %9028 = vmatprep.subr.bf16.mxu1 %v11577_v58  ;;  %9048 = vmatprep.subr.bf16.mxu0 %v6417_v37 }
 0xd6b   : > { %9006 = vmatprep.mubr.msk.bf16.mxu1 %vm2181_vm0, %v9577_v5  ;;  %9050 = vmatprep.mubr.msk.bf16.mxu0 %vm2181_vm0, %v9578_v2  ;;  %v9593_v5 = vld [vmem:[%s11946_s3 + $0xd0] sm:$0xff]   ;;  %v6015_v2 = vpack.c.bf16 %v5983_v36, %v11682_v15 }
 0xd6c   : > { %v9597_v15 = vld [vmem:[%s11946_s3 + $0x110] sm:$0xff]  }
 0xd6d   : > { %9029 = vmatpush3.bf16.msra.mxu1 %v11577_v58  ;;  %9049 = vmatpush3.bf16.msra.mxu0 %v6417_v37  ;;  %v9581_v58 = vld [vmem:[%s11946_s3 + $0x80] sm:$0xff]   ;;  %v9592_v37 = vld [vmem:[%s11946_s3 + $0xf8] sm:$0xff]  }
 0xd6e   : > { %9030 = vmatprep.subr.bf16.mxu1 %v11604_v62  ;;  %9074 = vmatprep.subr.bf16.mxu0 %v6585_v61  ;;  %v9505_v36 = vld [vmem:[%s11956_s13 + $0x14] ss:$8 sps:$4 sm:$0xff]  }
 0xd70   : > { %9007 = vmatmul.mubr.msk.bf16.gmra.mxu1 %vm2181_vm0, %v9579_v33  ;;  %9051 = vmatmul.mubr.msk.bf16.vlgmr.msra.gmra.mxu0 %vm2181_vm0, %v9580_v27  ;;  %v9595_v33 = vld [vmem:[%s11946_s3 + $0x100] sm:$0xff]   ;;  %v9598_v27 = vld [vmem:[%s11946_s3 + $0x118] sm:$0xff]  }
 0xd71   : > { %9031 = vmatpush3.bf16.msra.mxu1 %v11604_v62  ;;  %9075 = vmatpush3.bf16.msra.mxu0 %v6585_v61  ;;  %v9583_v62 = vld [vmem:[%s11946_s3 + $0x88] sm:$0xff]   ;;  %v9594_v61 = vld [vmem:[%s11946_s3 + $0xd8] sm:$0xff]  }
 0xd72   : > { %9032 = vmatprep.subr.bf16.mxu1 %v11582_v13  ;;  %9076 = vmatprep.subr.bf16.mxu0 %v6583_v12 }
 0xd73   : > { %9034 = vmatprep.mubr.msk.bf16.mxu1 %vm2181_vm0, %v9581_v58  ;;  %9054 = vmatprep.mubr.msk.bf16.mxu0 %vm2181_vm0, %v9582_v20  ;;  %v9502_v58 = vld [vmem:[%s11956_s13 + $0x24] ss:$8 sps:$4 sm:$0xff]   ;;  %v9500_v20 = vld [vmem:[%s11956_s13 + $0x20] ss:$8 sps:$4 sm:$0xff]  }
 0xd75   : > { %9033 = vmatpush3.bf16.msra.mxu1 %v11582_v13  ;;  %9077 = vmatpush3.bf16.msra.mxu0 %v6583_v12  ;;  %v9585_v13 = vld [vmem:[%s11946_s3 + $0x90] sm:$0xff]  }
 0xd76   : > { %9058 = vmatprep.subr.bf16.mxu1 %v11614_v41  ;;  %9078 = vmatprep.subr.bf16.mxu0 %v6581_v25  ;;  %v9497_v12 = vld [vmem:[%s11956_s13 + $0x30] ss:$8 sps:$4 sm:$0xff]  }
 0xd78   : > { %9035 = vmatmul.mubr.msk.bf16.vlgmr.msra.gmra.mxu1 %vm2181_vm0, %v9583_v62  ;;  %9055 = vmatmul.mubr.msk.bf16.gmra.mxu0 %vm2181_vm0, %v9584_v21  ;;  %v9508_v62 = vld [vmem:[%s11956_s13 + $0x4] ss:$8 sps:$4 sm:$0xff]   ;;  %v9506_v21 = vld [vmem:[%s11956_s13] ss:$8 sps:$4 sm:$0xff]  }
 0xd79   : > { %9059 = vmatpush3.bf16.msra.mxu1 %v11614_v41  ;;  %9079 = vmatpush3.bf16.msra.mxu0 %v6581_v25  ;;  %v9587_v41 = vld [vmem:[%s11946_s3 + $0x98] sm:$0xff]  }
 0xd7a   : > { %9060 = vmatprep.subr.bf16.mxu1 %v11590_v8  ;;  %9080 = vmatprep.subr.bf16.mxu0 %v6579_v7  ;;  %v9503_v25 = vld [vmem:[%s11956_s13 + $0x10] ss:$8 sps:$4 sm:$0xff]  }
 0xd7b   : > { %9038 = vmatprep.mubr.msk.bf16.mxu1 %vm2181_vm0, %v9585_v13  ;;  %9082 = vmatprep.mubr.msk.bf16.mxu0 %vm2181_vm0, %v9586_v47 }
 0xd7d   : > { %9061 = vmatpush3.bf16.msra.mxu1 %v11590_v8  ;;  %9081 = vmatpush3.bf16.msra.mxu0 %v6579_v7  ;;  %v9589_v8 = vld [vmem:[%s11946_s3 + $0xc0] sm:$0xff]  }
 0xd7e   : > { %9062 = vmatprep.subr.bf16.mxu1 %v11623_v24 }
 0xd80   : > { %9039 = vmatmul.mubr.msk.bf16.gmra.mxu1 %vm2181_vm0, %v9587_v41  ;;  %9083 = vmatmul.mubr.msk.bf16.vlgmr.msra.gmra.mxu0 %vm2181_vm0, %v9588_v57 }
 0xd81   : > { %9063 = vmatpush3.bf16.msra.mxu1 %v11623_v24  ;;  %9066 = vmatprep.mubr.msk.bf16.mxu1 %vm2181_vm0, %v9589_v8  ;;  %v6025_v24 = vpack.c.bf16 %v5999_v43, %v5996_v53 }
 0xd82   : > { %9064 = vmatprep.subr.bf16.mxu1 %v11602_v44  ;;  %9086 = vmatprep.mubr.msk.bf16.mxu0 %vm2181_vm0, %v9590_v51 }
 0xd85   : > { %9065 = vmatpush3.bf16.msra.mxu1 %v11602_v44  ;;  %v6020_v44 = vpack.c.bf16 %v8957_v45, %v11670_v16  ;;  %v9596_v16 = vld [vmem:[%s11946_s3 + $0x108] sm:$0xff]   ;;  %v9499_v45 = vld [vmem:[%s11956_s13 + $0x34] ss:$8 sps:$4 sm:$0xff]  }
 0xd86   : > { %9090 = vmatprep.subr.bf16.mxu1 %v6030_v48  ;;  %6816 = vmatprep.subr.bf16.mxu0 %v9499_v45 }
 0xd87   : > { %6817 = vmatpush1.bf16.msra.mxu0 %v9497_v12 }
 0xd88   : > { %9067 = vmatmul.mubr.msk.bf16.vlgmr.msra.gmra.mxu1 %vm2181_vm0, %v9591_v60  ;;  %9087 = vmatmul.mubr.msk.bf16.gmra.mxu0 %vm2181_vm0, %v9592_v37 }
 0xd89   : > { %9091 = vmatpush3.bf16.msra.mxu1 %v6030_v48  ;;  %9070 = vmatprep.mubr.msk.bf16.mxu1 %vm2181_vm0, %v9593_v5 }
 0xd8a   : > { %9092 = vmatprep.subr.bf16.mxu1 %v6025_v24  ;;  %6840 = vmatprep.mubr.bf16.mxu0 %v12073_v29 }
 0xd8b   : > { %6818 = vmatprep.subr.bf16.mxu0 %v9502_v58 }
 0xd8c   : > { %6819 = vmatpush1.bf16.msra.mxu0 %v9500_v20 }
 0xd8d   : > { %9093 = vmatpush3.bf16.msra.mxu1 %v6025_v24  ;;  %6820 = vmatprep.subr.bf16.mxu0 %v9505_v36 }
 0xd8e   : > { %9094 = vmatprep.subr.bf16.mxu1 %v6020_v44 }
 0xd90   : > { %9071 = vmatmul.mubr.msk.bf16.gmra.mxu1 %vm2181_vm0, %v9594_v61  ;;  %6821 = vmatpush1.bf16.msra.mxu0 %v9503_v25 }
 0xd91   : > { %9095 = vmatpush3.bf16.msra.mxu1 %v6020_v44  ;;  %9098 = vmatprep.mubr.msk.bf16.mxu1 %vm2181_vm0, %v9595_v33 }
 0xd92   : > { %9096 = vmatprep.subr.bf16.mxu1 %v6015_v2  ;;  %6822 = vmatprep.subr.bf16.mxu0 %v9508_v62 }
 0xd94   : > { %6823 = vmatpush1.bf16.msra.mxu0 %v9506_v21 }
 0xd95   : > { %9097 = vmatpush3.bf16.msra.mxu1 %v6015_v2 }
 0xd98   : > { %9099 = vmatmul.mubr.msk.bf16.vlgmr.msra.gmra.mxu1 %vm2181_vm0, %v9596_v16 }
 0xd99   : > { %9102 = vmatprep.mubr.msk.bf16.mxu1 %vm2181_vm0, %v9597_v15 }
 0xda0   : > { %9103 = vmatmul.mubr.msk.bf16.gmra.mxu1 %vm2181_vm0, %v9598_v27 }
 0xda1   : > { %6940 = vmatprep.mubr.bf16.mxu1 %v12073_v29 }
 0xda6   : > { %v8988_v0 = vpop.f32.mrf.mxu0 }
 0xda8   : > { %v6146_v7 = vpop.f32.mrf.mxu0 }
 0xdaa   : > { %v8989_v13 = vpop.f32.mrf.mxu0 }
 0xdac   : > { %v6149_v47 = vpop.f32.mrf.mxu0 }
 0xdae   : > { %v8992_v53 = vpop.f32.mrf.mxu0 }
 0xdb0   : > { %v11805_v41 = vpop.f32.mrf.mxu0 }
 0xdb2   : > { %v8993_v8 = vpop.f32.mrf.mxu0 }
 0xdb4   : > { %v11807_v43 = vpop.f32.mrf.mxu0 }
 0xe18   : > { %v8972_v57 = vpop.f32.mrf.mxu1 }
 0xe19   : > { %v6155_v3 = vadd.f32 %v8988_v0, %v8972_v57 }
 0xe1a   : > { %v6081_v32 = vpop.f32.mrf.mxu1 }
 0xe1b   : > { %v6147_v46 = vadd.f32 %v6146_v7, %v6081_v32 }
 0xe1c   : > { %v8973_v51 = vpop.f32.mrf.mxu1 }
 0xe1d   : > { %v6158_v6 = vadd.f32 %v8989_v13, %v8973_v51 }
 0xe1e   : > { %v6084_v48 = vpop.f32.mrf.mxu1 }
 0xe1f   : > { %v6150_v31 = vadd.f32 %v6149_v47, %v6084_v48 }
 0xe20   : > { %v8976_v24 = vpop.f32.mrf.mxu1  ;;  %v11809_v60 = vpop.f32.mrf.mxu0 }
 0xe21   : > { %v6171_v30 = vadd.f32 %v8992_v53, %v8976_v24 }
 0xe22   : > { %v11811_v37 = vpop.f32.mrf.mxu1  ;;  %v6300_v5 = vpop.f32.mrf.mxu0 }
 0xe24   : > { %v8977_v44 = vpop.f32.mrf.mxu1  ;;  %v9021_v2 = vpop.f32.mrf.mxu0 }
 0xe25   : > { %v6174_v38 = vadd.f32 %v8993_v8, %v8977_v44 }
 0xe26   : > { %v6100_v61 = vpop.f32.mrf.mxu1  ;;  %v6303_v33 = vpop.f32.mrf.mxu0 }
 0xe28   : > { %v9004_v16 = vpop.f32.mrf.mxu1  ;;  %v9024_v15 = vpop.f32.mrf.mxu0 }
 0xe2a   : > { %v6211_v27 = vpop.f32.mrf.mxu1  ;;  %v11813_v45 = vpop.f32.mrf.mxu0 }
 0xe2b   : > { %12122 = vst [vmem:[#allocation13_spill] sm:$0xff] %v11813_v45  ;;  %v6242_v14 = vadd.f32 %v6211_v27, %v6147_v46 }
 0xe2c   : > { %v9005_v12 = vpop.f32.mrf.mxu1  ;;  %v9025_v58 = vpop.f32.mrf.mxu0 }
 0xe2d   : > { %v6331_v35 = vadd.f32 %v6300_v5, %v6242_v14  ;;  %v6166_v14 = vadd.f32 %v11807_v43, %v6100_v61 }
 0xe2e   : > { %v6214_v20 = vpop.f32.mrf.mxu1  ;;  %v11815_v36 = vpop.f32.mrf.mxu0 }
 0xe2f   : > { %v6243_v55 = vadd.f32 %v6214_v20, %v6150_v31 }
 0xe30   : > { %v9008_v25 = vpop.f32.mrf.mxu1  ;;  %v11817_v62 = vpop.f32.mrf.mxu0 }
 0xe31   : > { %12123 = vst [vmem:[#allocation14_spill] sm:$0xff] %v11817_v62  ;;  %v6332_v45 = vadd.f32 %v6303_v33, %v6243_v55 }
 0xe32   : > { %v11819_v21 = vpop.f32.mrf.mxu1  ;;  %v6462_v39 = vpop.f32.mrf.mxu0 }
 0xe34   : > { %v9009_v23 = vpop.f32.mrf.mxu1  ;;  %v9053_v18 = vpop.f32.mrf.mxu0 }
 0xe35   : > { %v6249_v7 = vadd.f32 %v9009_v23, %v6174_v38  ;;  %v6163_v23 = vadd.f32 %v11805_v41, %v11811_v37  ;;  %v12129_v37 = vld [vmem:[#allocation13_spill] sm:$0xff] }
 0xe36   : > { %v6230_v17 = vpop.f32.mrf.mxu1  ;;  %v6465_v50 = vpop.f32.mrf.mxu0 }
 0xe37   : > { %v6338_v53 = vadd.f32 %v9025_v58, %v6249_v7  ;;  %v6247_v38 = vadd.f32 %v6230_v17, %v6166_v14 }
 0xe38   : > { %v9036_v59 = vpop.f32.mrf.mxu1  ;;  %v9056_v56 = vpop.f32.mrf.mxu0 }
 0xe3a   : > { %v6373_v10 = vpop.f32.mrf.mxu1  ;;  %v11821_v63 = vpop.f32.mrf.mxu0 }
 0xe3b   : > { %12124 = vst [vmem:[#allocation15_spill] sm:$0xff] %v11821_v63  ;;  %v6404_v62 = vadd.f32 %v6373_v10, %v6331_v35 }
 0xe3c   : > { %v9037_v52 = vpop.f32.mrf.mxu1  ;;  %v9057_v9 = vpop.f32.mrf.mxu0 }
 0xe3d   : > { %v6493_v13 = vadd.f32 %v6462_v39, %v6404_v62  ;;  %v6246_v39 = vadd.f32 %v11819_v21, %v6163_v23 }
 0xe3e   : > { %v6376_v19 = vpop.f32.mrf.mxu1  ;;  %v11825_v34 = vpop.f32.mrf.mxu0 }
 0xe3f   : > { %12126 = vst [vmem:[#allocation17_spill] sm:$0xff] %v11825_v34  ;;  %v6245_v34 = vadd.f32 %v9005_v12, %v6158_v6  ;;  %v6405_v46 = vadd.f32 %v6376_v19, %v6332_v45  ;;  %v6335_v5 = vadd.f32 %v12129_v37, %v6246_v39  ;;  %v9511_v39 = vld [vmem:[%s11957_s14 + $0x70] sm:$0xff]  }
 0xe40   : > { %v9040_v54 = vpop.f32.mrf.mxu1  ;;  %v11827_v49 = vpop.f32.mrf.mxu0 }
 0xe41   : > { %12127 = vst [vmem:[#allocation23_spill] sm:$0xff] %v11827_v49  ;;  %v6244_v49 = vadd.f32 %v9004_v16, %v6155_v3  ;;  %v6334_v31 = vadd.f32 %v9021_v2, %v6245_v34  ;;  %v6494_v55 = vadd.f32 %v6465_v50, %v6405_v46 }
 0xe42   : > { %v11823_v26 = vpop.f32.mrf.mxu1  ;;  %v6624_v11 = vpop.f32.mrf.mxu0  ;;  %v12133_v7 = vld [vmem:[#allocation15_spill] sm:$0xff] }
 0xe43   : > { %12125 = vst [vmem:[#allocation16_spill] sm:$0xff] %v11823_v26  ;;  %v6248_v26 = vadd.f32 %v9008_v25, %v6171_v30  ;;  %v6333_v0 = vadd.f32 %v11809_v60, %v6244_v49  ;;  %v6407_v6 = vadd.f32 %v9037_v52, %v6334_v31  ;;  %v6336_v52 = vadd.f32 %v11815_v36, %v6247_v38 }
 0xe44   : > { %v9041_v1 = vpop.f32.mrf.mxu1  ;;  %v9085_v29 = vpop.f32.mrf.mxu0 }
 0xe45   : > { %v6337_v27 = vadd.f32 %v9024_v15, %v6248_v26  ;;  %v6406_v3 = vadd.f32 %v9036_v59, %v6333_v0  ;;  %v6411_v35 = vadd.f32 %v9041_v1, %v6338_v53  ;;  %v6496_v51 = vadd.f32 %v9053_v18, %v6407_v6 }
 0xe46   : > { %v6392_v40 = vpop.f32.mrf.mxu1  ;;  %v6627_v47 = vpop.f32.mrf.mxu0  ;;  %v12131_v58 = vld [vmem:[#allocation17_spill] sm:$0xff] }
 0xe47   : > { %v6410_v30 = vadd.f32 %v9040_v54, %v6337_v27  ;;  %v12128_v54 = vld [vmem:[#allocation14_spill] sm:$0xff]  ;;  %v12134_v27 = vmov 0  }
 0xe48   : > { %v9068_v28 = vpop.f32.mrf.mxu1  ;;  %v9088_v19 = vpop.f32.mrf.mxu0  ;;  %v6495_v50 = vadd.f32 %v12128_v54, %v6406_v3  ;;  %v9517_v54 = vld [vmem:[%s11957_s14 + $0x58] sm:$0xff]  }
 0xe49   : > { %v6499_v49 = vadd.f32 %v9056_v56, %v6410_v30 }
 0xe4a   : > { %v6535_v22 = vpop.f32.mrf.mxu1  ;;  %v6640_v24 = vpop.f32.mrf.mxu0  ;;  %v6568_v44 = vadd.f32 %v9068_v28, %v6495_v50  ;;  %v12130_v56 = vld [vmem:[#allocation16_spill] sm:$0xff]  ;;  %v9518_v50 = vld [vmem:[%s11957_s14 + $0x18] sm:$0xff]  }
 0xe4b   : > { %v6566_v10 = vadd.f32 %v6535_v22, %v6493_v13  ;;  %v6500_v22 = vadd.f32 %v9057_v9, %v6411_v35 }
 0xe4c   : > { %v9069_v4 = vpop.f32.mrf.mxu1  ;;  %v9089_v33 = vpop.f32.mrf.mxu0 }
 0xe4d   : > { %v6655_v43 = vadd.f32 %v6624_v11, %v6566_v10  ;;  %v6569_v41 = vadd.f32 %v9069_v4, %v6496_v51  ;;  %v6408_v11 = vadd.f32 %v12130_v56, %v6335_v5  ;;  %v9513_v51 = vld [vmem:[%s11957_s14 + $0x68] sm:$0xff]  }
 0xe4e   : > { %v6538_v42 = vpop.f32.mrf.mxu1 }
 0xe4f   : > { %v6567_v26 = vadd.f32 %v6538_v42, %v6494_v55  ;;  %v6409_v42 = vadd.f32 %v6392_v40, %v6336_v52  ;;  %v6658_v15 = vadd.f32 %v9085_v29, %v6569_v41  ;;  %v6497_v46 = vadd.f32 %v12133_v7, %v6408_v11  ;;  %v6643_v29 = vpop.f32.mrf.mxu0  ;;  %v9516_v52 = vld [vmem:[%s11957_s14 + $0x20] sm:$0xff]   ;;  %v9522_v41 = vld [vmem:[%s11957_s14 + $0x8] sm:$0xff]   ;;  %v12143_v7 = vld [vmem:[#allocation4_spill] sm:$0xff] }
 0xe50   : > { %v9072_v63 = vpop.f32.mrf.mxu1 }
 0xe51   : > { %v6572_v17 = vadd.f32 %v9072_v63, %v6499_v49  ;;  %v6656_v59 = vadd.f32 %v6627_v47, %v6567_v26  ;;  %v6498_v4 = vadd.f32 %v12131_v58, %v6409_v42  ;;  %v12132_v63 = vld [vmem:[#allocation23_spill] sm:$0xff]  ;;  %v9510_v26 = vld [vmem:[%s11957_s14 + $0x38] sm:$0xff]  }
 0xe52   : > { %v11829_v32 = vpop.f32.mrf.mxu1  ;;  %v6657_v20 = vadd.f32 %v12132_v63, %v6568_v44  ;;  %v9514_v49 = vld [vmem:[%s11957_s14 + $0x28] sm:$0xff]   ;;  %v12137_v58 = vld [vmem:[#allocation9_spill] sm:$0xff] }
 0xe53   : > { %v6661_v45 = vadd.f32 %v9088_v19, %v6572_v17  ;;  %v6570_v13 = vadd.f32 %v11829_v32, %v6497_v46  ;;  %v9509_v32 = vld [vmem:[%s11957_s14 + $0x78] sm:$0xff]   ;;  %v12144_v46 = vmax.f32 %v12143_v7, 0.0 }
 0xe54   : > { %v9073_v48 = vpop.f32.mrf.mxu1  ;;  %8588 = vmatprep.subr.bf16.mxu0 %v9509_v32 }
 0xe55   : > { %v6573_v61 = vadd.f32 %v9073_v48, %v6500_v22  ;;  %v6659_v23 = vadd.f32 %v6640_v24, %v6570_v13  ;;  %v9519_v22 = vld [vmem:[%s11957_s14 + $0x50] sm:$0xff]  }
 0xe56   : > { %v6554_v57 = vpop.f32.mrf.mxu1  ;;  %v9520_v24 = vld [vmem:[%s11957_s14 + $0x10] sm:$0xff]  }
 0xe57   : > { %v6662_v25 = vadd.f32 %v9089_v33, %v6573_v61  ;;  %v6571_v47 = vadd.f32 %v6554_v57, %v6498_v4  ;;  %v12138_v4 = vmax.f32 %v12137_v58, 0.0  ;;  %v12165_v58 = vld [vmem:[#allocation21_spill] sm:$0xff] }
 0xe58   : > { %v9100_v34 = vpop.f32.mrf.mxu1 }
 0xe59   : > { %v6730_v48 = vadd.f32 %v9100_v34, %v6657_v20  ;;  %v6660_v30 = vadd.f32 %v6643_v29, %v6571_v47  ;;  %v12139_v20 = vld [vmem:[#allocation10_spill] sm:$0xff] }
 0xe5a   : > { %v6697_v8 = vpop.f32.mrf.mxu1 }
 0xe5b   : > { %v6728_v1 = vadd.f32 %v6697_v8, %v6655_v43  ;;  %v6738_v55 = vmax.f32 %v6730_v48, 0.0  ;;  %v9512_v8 = vld [vmem:[%s11957_s14 + $0x30] sm:$0xff]   ;;  %v9515_v43 = vld [vmem:[%s11957_s14 + $0x60] sm:$0xff]  }
 0xe5c   : > { %v9101_v60 = vpop.f32.mrf.mxu1  ;;  %v12145_v48 = vld [vmem:[#allocation12_spill] sm:$0xff] }
 0xe5d   : > { %v6736_v9 = vmax.f32 %v6728_v1, 0.0  ;;  %v6731_v62 = vadd.f32 %v9101_v60, %v6658_v15  ;;  %v9521_v60 = vld [vmem:[%s11957_s14 + $0x48] sm:$0xff]  }
 0xe5e   : > { %v6700_v2 = vpop.f32.mrf.mxu1 }
 0xe5f   : > { %v6729_v18 = vadd.f32 %v6700_v2, %v6656_v59  ;;  %v6739_v14 = vmax.f32 %v6731_v62, 0.0  ;;  %v12141_v62 = vld [vmem:[#allocation11_spill] sm:$0xff] }
 0xe60   : > { %v9104_v16 = vpop.f32.mrf.mxu1 }
 0xe61   : > { %v6737_v12 = vmax.f32 %v6729_v18, 0.0  ;;  %v6734_v28 = vadd.f32 %v9104_v16, %v6661_v45  ;;  %v6745_v38 = vpack.c.bf16 %v6739_v14, %v6738_v55  ;;  %v12135_v45 = vld [vmem:[#allocation8_spill] sm:$0xff] }
 0xe62   : > { %v6713_v36 = vpop.f32.mrf.mxu1 }
 0xe63   : > { %v6744_v40 = vpack.c.bf16 %v6737_v12, %v6736_v9  ;;  %v6742_v0 = vmax.f32 %v6734_v28, 0.0  ;;  %v6732_v57 = vadd.f32 %v6713_v36, %v6659_v23  ;;  %v12136_v9 = vmax.f32 %v12135_v45, 0.0 }
 0xe64   : > { %v9105_v21 = vpop.f32.mrf.mxu1  ;;  %v12140_v36 = vmax.f32 %v12139_v20, 0.0 }
 0xe65   : > { %v6735_v31 = vadd.f32 %v9105_v21, %v6662_v25  ;;  %7763 = vmatmul.mubr.msk.bf16.vlgmr.msra.gmra.mxu0 %vm2181_vm0, %v6744_v40  ;;  %v6740_v19 = vmax.f32 %v6732_v57, 0.0  ;;  %v12142_v40 = vmax.f32 %v12141_v62, 0.0 }
 0xe66   : > { %6850 = vmatprep.mubr.bf16.mxu0 %v12134_v27  ;;  %v6716_v6 = vpop.f32.mrf.mxu1  ;;  %8589 = vmatpush3.bf16.msra.mxu0 %v9510_v26 }
 0xe67   : > { %v6743_v53 = vmax.f32 %v6735_v31, 0.0  ;;  %v6733_v3 = vadd.f32 %v6716_v6, %v6660_v30  ;;  %8590 = vmatprep.subr.bf16.mxu0 %v9511_v39  ;;  %v12146_v31 = vmax.f32 %v12145_v48, 0.0 }
 0xe69   : > { %v6747_v10 = vpack.c.bf16 %v6743_v53, %v6742_v0  ;;  %v6741_v35 = vmax.f32 %v6733_v3, 0.0  ;;  %v12149_v53 = vld [vmem:[#allocation3_spill] sm:$0xff] }
 0xe6a   : > { %8591 = vmatpush3.bf16.msra.mxu0 %v9512_v8  ;;  %v12150_v6 = vmax.f32 %v12149_v53, 0.0  ;;  %v12155_v8 = vld [vmem:[#allocation5_spill] sm:$0xff] }
 0xe6b   : > { %v6746_v34 = vpack.c.bf16 %v6741_v35, %v6740_v19  ;;  %8592 = vmatprep.subr.bf16.mxu0 %v9513_v51  ;;  %v12153_v19 = vld [vmem:[#allocation19_spill] sm:$0xff]  ;;  %v12156_v51 = vmax.f32 %v12155_v8, 0.0 }
 0xe6d   : > { %7764 = vmatmul.mubr.msk.bf16.gmra.mxu0 %vm2181_vm0, %v6745_v38  ;;  %v12151_v38 = vld [vmem:[#allocation7_spill] sm:$0xff] }
 0xe6e   : > { %6860 = vmatprep.mubr.bf16.mxu0 %v12134_v27  ;;  %8593 = vmatpush3.bf16.msra.mxu0 %v9514_v49  ;;  %v12152_v3 = vmax.f32 %v12151_v38, 0.0 }
 0xe6f   : > { %8594 = vmatprep.subr.bf16.mxu0 %v9515_v43 }
 0xe72   : > { %8595 = vmatpush3.bf16.msra.mxu0 %v9516_v52 }
 0xe73   : > { %8596 = vmatprep.subr.bf16.mxu0 %v9517_v54  ;;  %v12157_v54 = vld [vmem:[#allocation22_spill] sm:$0xff] }
 0xe75   : > { %7765 = vmatmul.mubr.msk.bf16.gmra.mxu0 %vm2181_vm0, %v6746_v34  ;;  %v12154_v34 = vmax.f32 %v12153_v19, 0.0 }
 0xe76   : > { %6870 = vmatprep.mubr.bf16.mxu0 %v12134_v27  ;;  %8597 = vmatpush3.bf16.msra.mxu0 %v9518_v50  ;;  %v12147_v27 = vld [vmem:[#allocation6_spill] sm:$0xff]  ;;  %v12158_v50 = vmax.f32 %v12157_v54, 0.0 }
 0xe77   : > { %8598 = vmatprep.subr.bf16.mxu0 %v9519_v22  ;;  %v12148_v13 = vmax.f32 %v12147_v27, 0.0  ;;  %v7768_v27 = vld [vmem:[%s11958_s15] ss:$0 sm:$0xff] }
 0xe7a   : > { %8599 = vmatpush3.bf16.msra.mxu0 %v9520_v24 }
 0xe7b   : > { %8600 = vmatprep.subr.bf16.mxu0 %v9521_v60 }
 0xe7d   : > { %7766 = vmatmul.mubr.msk.bf16.gmra.mxu0 %vm2181_vm0, %v6747_v10 }
 0xe7e   : > { %8601 = vmatpush3.bf16.msra.mxu0 %v9522_v41  ;;  %v12159_v41 = vld [vmem:[#allocation2_spill] sm:$0xff] }
 0xf25   : > { %v6842_v17 = vpop.f32.mrf.mxu0 }
 0xf27   : > { %v6844_v59 = vpop.f32.mrf.mxu0 }
 0xf29   : > { %v6846_v1 = vpop.f32.mrf.mxu0 }
 0xf2b   : > { %v6848_v37 = vpop.f32.mrf.mxu0 }
 0xf2c   : > { %v6849_v22 = vadd.f32 %v6848_v37, %v12158_v50 }
 0xf2d   : > { %v6852_v5 = vpop.f32.mrf.mxu0 }
 0xf2f   : > { %v6854_v42 = vpop.f32.mrf.mxu0 }
 0xf30   : > { %v6855_v32 = vadd.f32 %v6854_v42, %v12154_v34 }
 0xf31   : > { %v6856_v44 = vpop.f32.mrf.mxu0 }
 0xf32   : > { %v6857_v49 = vadd.f32 %v6856_v44, %v12156_v51 }
 0xf33   : > { %v6858_v2 = vpop.f32.mrf.mxu0 }
 0xf34   : > { %v6859_v30 = vadd.f32 %v6858_v2, %v12150_v6  ;;  %v12160_v2 = vmax.f32 %v12159_v41, 0.0  ;;  %v6887_v45 = vmax.f32 %v6857_v49, 0.0 }
 0xf35   : > { %v6862_v61 = vpop.f32.mrf.mxu0 }
 0xf36   : > { %v6863_v57 = vadd.f32 %v6862_v61, %v12152_v3  ;;  %v6888_v24 = vmax.f32 %v6859_v30, 0.0  ;;  %v6853_v61 = vadd.f32 %v6852_v5, %v12160_v2 }
 0xf37   : > { %v6864_v18 = vpop.f32.mrf.mxu0 }
 0xf38   : > { %v6865_v47 = vadd.f32 %v6864_v18, %v12144_v46  ;;  %v6889_v18 = vmax.f32 %v6863_v57, 0.0  ;;  %v6885_v20 = vmax.f32 %v6853_v61, 0.0 }
 0xf39   : > { %v6866_v56 = vpop.f32.mrf.mxu0 }
 0xf3a   : > { %v6867_v14 = vadd.f32 %v6866_v56, %v12148_v13  ;;  %v6890_v26 = vmax.f32 %v6865_v47, 0.0  ;;  %v12161_v56 = vld [vmem:[#allocation18_spill] sm:$0xff] }
 0xf3b   : > { %v6868_v11 = vpop.f32.mrf.mxu0  ;;  %v12162_v42 = vmax.f32 %v12161_v56, 0.0 }
 0xf3c   : > { %v6869_v12 = vadd.f32 %v6868_v11, %v12136_v9  ;;  %v6891_v43 = vmax.f32 %v6867_v14, 0.0 }
 0xf3d   : > { %v6872_v33 = vpop.f32.mrf.mxu0  ;;  %v6845_v11 = vadd.f32 %v6844_v59, %v12162_v42 }
 0xf3e   : > { %v6873_v28 = vadd.f32 %v6872_v33, %v12142_v40  ;;  %v6892_v55 = vmax.f32 %v6869_v12, 0.0  ;;  %v6886_v33 = vmax.f32 %v6855_v32, 0.0  ;;  %v6901_v9 = vpack.c.bf16 %v6891_v43, %v6889_v18 }
 0xf3f   : > { %v6874_v16 = vpop.f32.mrf.mxu0  ;;  %v6884_v12 = vmax.f32 %v6849_v22, 0.0  ;;  %v6882_v5 = vmax.f32 %v6845_v11, 0.0 }
 0xf40   : > { %v6875_v63 = vadd.f32 %v6874_v16, %v12138_v4  ;;  %v6893_v35 = vmax.f32 %v6873_v28, 0.0  ;;  %v6902_v60 = vpack.c.bf16 %v6892_v55, %v6890_v26  ;;  %v12163_v16 = vld [vmem:[#allocation20_spill] sm:$0xff]  ;;  %v6900_v37 = vpack.c.bf16 %v6888_v24, %v6886_v33  ;;  %v9523_v28 = vld [vmem:[%s11957_s14 + $0x40] sm:$0xff]  }
 0xf41   : > { %v6876_v15 = vpop.f32.mrf.mxu0  ;;  %v12164_v44 = vmax.f32 %v12163_v16, 0.0  ;;  %v12166_v4 = vmax.f32 %v12165_v58, 0.0  ;;  %v6898_v62 = vpack.c.bf16 %v6884_v12, %v6882_v5  ;;  %8602 = vmatprep.subr.bf16.mxu0 %v9523_v28 }
 0xf42   : > { %v6877_v25 = vadd.f32 %v6876_v15, %v12140_v36  ;;  %v6894_v10 = vmax.f32 %v6875_v63, 0.0 }
 0xf43   : > { %v6878_v21 = vpop.f32.mrf.mxu0  ;;  %v6847_v15 = vadd.f32 %v6846_v1, %v12164_v44  ;;  %v6843_v63 = vadd.f32 %v6842_v17, %v12166_v4  ;;  %v9609_v1 = vmov 1015037056   ;;  %v9524_v17 = vld [vmem:[%s11957_s14] sm:$0xff]  }
 0xf44   : > { %v6879_v29 = vadd.f32 %v6878_v21, %v12146_v31  ;;  %v6895_v0 = vmax.f32 %v6877_v25, 0.0  ;;  %v6899_v25 = vpack.c.bf16 %v6887_v45, %v6885_v20  ;;  %8603 = vmatpush3.bf16.msra.mxu0 %v9524_v17 }
 0xf45   : > { %v6883_v36 = vmax.f32 %v6847_v15, 0.0  ;;  %v6881_v59 = vmax.f32 %v6843_v63, 0.0 }
 0xf46   : > { %v6896_v23 = vmax.f32 %v6879_v29, 0.0  ;;  %v6903_v52 = vpack.c.bf16 %v6895_v0, %v6893_v35 }
 0xf47   : > { %v6897_v40 = vpack.c.bf16 %v6883_v36, %v6881_v59 }
 0xf48   : > { %v6904_v39 = vpack.c.bf16 %v6896_v23, %v6894_v10 }
 0xf4a   : > { %6916 = vmatprep.subr.bf16.mxu1 %v6904_v39 }
 0xf4b   : > { %6917 = vmatpush1.bf16.msra.mxu1 %v6903_v52 }
 0xf4c   : > { %6918 = vmatprep.subr.bf16.mxu1 %v6902_v60 }
 0xf4f   : > { %6919 = vmatpush1.bf16.msra.mxu1 %v6901_v9 }
 0xf50   : > { %6920 = vmatprep.subr.bf16.mxu1 %v6900_v37 }
 0xf53   : > { %6921 = vmatpush1.bf16.msra.mxu1 %v6899_v25 }
 0xf54   : > { %6922 = vmatprep.subr.bf16.mxu1 %v6898_v62 }
 0xf57   : > { %6923 = vmatpush1.bf16.msra.mxu1 %v6897_v40 }
 0xf5a   : > { %7767 = vmatmul.mubr.msk.bf16.vlgmr.msra.gmra.mxu1 %vm2181_vm0, %v9609_v1 }
0x101a   : > { %v6942_v21 = vpop.f32.mrf.mxu1 }
0x101b   : > { %v6949_v47 = vpack.c.bf16 %v6942_v21, %v6942_v21 }
0x101c   : > { %v6944_v7 = vpop.f32.mrf.mxu1 }
0x101d   : > { %v6950_v46 = vpack.c.bf16 %v6944_v7, %v6944_v7 }
0x101e   : > { %v6946_v48 = vpop.f32.mrf.mxu1 }
0x101f   : > { %7118 = vmatprep.mubr.bf16.mxu0 %v6950_v46 }
0x1020   : > { %7119 = vmatmul.mubr.bf16.vlgmr.msra.gmra.mxu0 %v6949_v47  ;;  %v6947_v31 = vpop.f32.mrf.mxu1 }
0x10e0   : > { %v8604_v29 = vpop.f32.mrf.mxu0 }
0x10e2   : > { %v8605_v13 = vpop.f32.mrf.mxu0 }
0x10e3   : > { %v8606_v14 = vadd.f32 %v8605_v13, %v8604_v29 }
0x10e4   : > { %v8607_v0 = vpop.f32.mrf.mxu0 }
0x10e5   : > { %v7121_v53 = vadd.f32 %v8606_v14, %v7768_v27 }
0x10e6   : > { %v8608_v6 = vpop.f32.mrf.mxu0 }
0x10e7   : > { %9525 = vtanh.f32 %v7121_v53 }
0x10f4   : > { %v9526_v30 = vpop.eup %9525 }
0x10f5   : > { %v7127_v55 = vmul.f32 1.5707964, %v9526_v30 }
0x10f7   : > { %7128 = vst [vmem:[%s524_s29] sm:$0xff] %v7127_v55 }
0x10f8 PF: > { %s26_s21 = sadd.s32 1, %s9605_s21  }
0x10f9   : > { %p23_p5 = scmp.ge.s32.totalorder %s26_s21, 4  }
0x10fb   :  { %25 = sbr.rel (!%p23_p5) target bundleno = 2 (0x2), region = 130 }

</bundles_post_ra>
